<compile_context>
chip_gen: v7x
topology: tpu7x:2x2x1
jax: 0.10.0
libtpu: 0.0.40
codegen_flags: <defaults>
</compile_context>

<pallas_src>
import functools
import math

import jax
import jax.numpy as jnp
from jax.experimental import pallas as pl
from jax.experimental.pallas import tpu as pltpu

LANE = 128


def _round_up(n, m):
    return pl.cdiv(n, m) * m


# ----------------------------- fused kernel --------------------------------- #
def _fused_kernel(t_ref,
                  cw1_ref, cb1_ref, cw2_ref, cb2_ref, cw3_ref, cb3_ref,
                  mw1_ref, mb1_ref, mw2_ref, mb2_ref, mw3_ref, mb3_ref,
                  x_ref, out_ref, *, rank):
    """Rebuild all layer params from the subspace sample and run the MLP."""

    def recon(mean_ref, cov_ref):
        acc = mean_ref[...]
        for r in range(rank):              # rank is small & static: unrolled FMAs
            acc = acc + t_ref[r] * cov_ref[r]
        return acc

    w1 = recon(mw1_ref, cw1_ref)           # (in, h)
    b1 = recon(mb1_ref, cb1_ref)           # (1, h)
    w2 = recon(mw2_ref, cw2_ref)           # (h, h)
    b2 = recon(mb2_ref, cb2_ref)
    w3 = recon(mw3_ref, cw3_ref)           # (h, n_pad)  lane-dense padded
    b3 = recon(mb3_ref, cb3_ref)

    h = jnp.dot(x_ref[...], w1, preferred_element_type=jnp.float32) + b1
    h = jnp.maximum(h, 0.0)
    h = jnp.dot(h, w2, preferred_element_type=jnp.float32) + b2
    h = jnp.maximum(h, 0.0)
    y = jnp.dot(h, w3, preferred_element_type=jnp.float32) + b3
    out_ref[...] = y.astype(out_ref.dtype)


def _fused_forward(t, x, consts, *, rank, n_pad, n_classes):
    """Single-dispatch forward: reshape x, one pallas_call, slice padded lanes."""
    batch = x.shape[0]
    xf = x.reshape(batch, -1).astype(jnp.float32)
    in_dim = xf.shape[1]
    hidden = consts[0].shape[2]            # cw1 is (rank, in, hidden)

    cov_elems = sum(int(c.size) for c in consts[:6])
    mean_elems = sum(int(c.size) for c in consts[6:])
    matmul_flops = 2 * batch * (in_dim * hidden + hidden * hidden + hidden * n_pad)
    cost = pl.CostEstimate(
        flops=2 * cov_elems + mean_elems + matmul_flops,
        transcendentals=0,
        bytes_accessed=4 * (rank + cov_elems + mean_elems + xf.size + batch * n_pad),
    )

    out_pad = pl.pallas_call(
        functools.partial(_fused_kernel, rank=rank),
        out_shape=jax.ShapeDtypeStruct((batch, n_pad), jnp.float32),
        in_specs=[pl.BlockSpec(memory_space=pltpu.MemorySpace.SMEM)]       # t: rank scalars
                 + [pl.BlockSpec(memory_space=pltpu.MemorySpace.VMEM)] * 13,
        out_specs=pl.BlockSpec(memory_space=pltpu.MemorySpace.VMEM),
        cost_estimate=cost,
    )(t, *consts, xf)
    return out_pad[:, :n_classes]


# --------------------------- ProjectedModel glue ---------------------------- #
class ProjectedModelJAX:
    """JAX/Pallas equivalent of ProjectedModel(proj_params, model, projection, mean).

    # TODO(synk): PyTorch's in-place `param.detach_(); param.mul_(0).add_(v)` has
    # no JAX equivalent; parameters are rebuilt functionally (in-kernel) each call.
    """

    def __init__(self, proj_params, mean, cov_factor, in_dim, hidden, n_classes):
        rank = int(cov_factor.shape[0])
        self.rank = rank
        self.n_classes = n_classes
        n_pad = int(_round_up(n_classes, LANE))
        self.n_pad = n_pad

        mean = jnp.asarray(mean, jnp.float32)
        cov = jnp.asarray(cov_factor, jnp.float32)

        # ---- constant preprocessing hoisted out of the per-call jitted path ----
        def take(off, n):
            return mean[off:off + n], cov[:, off:off + n], off + n

        off = 0
        m_w1, c_w1, off = take(off, hidden * in_dim)
        m_b1, c_b1, off = take(off, hidden)
        m_w2, c_w2, off = take(off, hidden * hidden)
        m_b2, c_b2, off = take(off, hidden)
        m_w3, c_w3, off = take(off, n_classes * hidden)
        m_b3, c_b3, off = take(off, n_classes)
        assert off == mean.shape[0], "flat parameter vector size mismatch"

        def weight(m, c, n_out, n_in, pad_out=0):
            # PyTorch nn.Linear weight is (out, in), row-major in the flat vector;
            # transpose to (in, out) so the kernel needs no in-kernel .T.
            mw = m.reshape(n_out, n_in).T
            cw = c.reshape(rank, n_out, n_in).transpose(0, 2, 1)
            if pad_out:
                mw = jnp.pad(mw, ((0, 0), (0, pad_out)))
                cw = jnp.pad(cw, ((0, 0), (0, 0), (0, pad_out)))
            return mw, cw

        def bias(m, c, n_out, pad_out=0):
            mb = jnp.pad(m, (0, pad_out)).reshape(1, n_out + pad_out)
            cb = jnp.pad(c, ((0, 0), (0, pad_out))).reshape(rank, 1, n_out + pad_out)
            return mb, cb

        mw1, cw1 = weight(m_w1, c_w1, hidden, in_dim)
        mb1, cb1 = bias(m_b1, c_b1, hidden)
        mw2, cw2 = weight(m_w2, c_w2, hidden, hidden)
        mb2, cb2 = bias(m_b2, c_b2, hidden)
        mw3, cw3 = weight(m_w3, c_w3, n_classes, hidden, pad_out=n_pad - n_classes)
        mb3, cb3 = bias(m_b3, c_b3, n_classes, pad_out=n_pad - n_classes)

        # NOTE: cov_* could be stored bf16 to halve the dominant HBM traffic
        # (upcast inside the kernel); kept f32 here because in this synthetic
        # setup the t*cov term dominates `mean` and bf16 visibly perturbs logits.
        self._consts = tuple(jax.device_put(a) for a in
                             (cw1, cb1, cw2, cb2, cw3, cb3,
                              mw1, mb1, mw2, mb2, mw3, mb3))
        self.proj_params = jnp.asarray(proj_params, jnp.float32)
        self._forward = jax.jit(functools.partial(
            _fused_forward, rank=rank, n_pad=n_pad, n_classes=n_classes))

    def __call__(self, x):
        return self._forward(self.proj_params, x, self._consts)


# --------------------------------- Reference -------------------------------- #
def _unflatten(y, param_specs):
    """JAX equivalent of unflatten_like(): row-major slices -> param shapes."""
    params = {}
    off = 0
    for name, shape in param_specs:
        n = int(math.prod(shape))
        params[name] = y[off:off + n].reshape(shape)
        off += n
    return params


def _reference_forward(t, cov_factor, mean, x, param_specs):
    y = mean + cov_factor.T @ t
    params = _unflatten(y, param_specs)
    h = x.reshape(x.shape[0], -1)
    h = jnp.maximum(h @ params["fc1.weight"].T + params["fc1.bias"], 0.0)
    h = jnp.maximum(h @ params["fc2.weight"].T + params["fc2.bias"], 0.0)
    return h @ params["fc3.weight"].T + params["fc3.bias"]


# ----------------------------------- Main ----------------------------------- #
if __name__ == "__main__":
    key = jax.random.PRNGKey(0)

    # Small MLP "model" over CIFAR-ish inputs flattened to 768 features.
    batch, chans, hw = 8, 3, 16
    in_dim = chans * hw * hw            # 768
    hidden = 128
    n_classes = 10
    rank = 8                            # subspace rank

    param_specs = (
        ("fc1.weight", (hidden, in_dim)),
        ("fc1.bias", (hidden,)),
        ("fc2.weight", (hidden, hidden)),
        ("fc2.bias", (hidden,)),
        ("fc3.weight", (n_classes, hidden)),
        ("fc3.bias", (n_classes,)),
    )
    n_params = sum(int(math.prod(s)) for _, s in param_specs)   # 116234

    key, k_mean, k_cov, k_t, k_x = jax.random.split(key, 5)
    mean = jax.random.normal(k_mean, (n_params,), dtype=jnp.float32) * 0.01
    cov_factor = jax.random.normal(k_cov, (rank, n_params), dtype=jnp.float32) * 0.02
    proj_params = jax.random.normal(k_t, (rank,), dtype=jnp.float32)
    x = jax.random.normal(k_x, (batch, chans, hw, hw), dtype=jnp.float32)

    model = ProjectedModelJAX(proj_params, mean, cov_factor, in_dim, hidden, n_classes)

    logits = model(x)
    logits = jax.block_until_ready(logits)

    ref = _reference_forward(proj_params, cov_factor, mean, x, param_specs)
    assert logits.shape == (batch, n_classes)
    assert logits.dtype == jnp.float32
    assert jnp.allclose(logits, ref, atol=1e-3, rtol=1e-3), (
        float(jnp.max(jnp.abs(logits - ref))))

    print("KERNEL_OK")
</pallas_src>

<mosaic_0001>
module attributes {stable_mosaic.version = 11 : i64} {
  func.func @_fused_kernel(%arg0: memref<8xf32, #tpu.memory_space<smem>>, %arg1: memref<8x768x128xf32, #tpu.memory_space<vmem>>, %arg2: memref<8x1x128xf32, #tpu.memory_space<vmem>>, %arg3: memref<8x128x128xf32, #tpu.memory_space<vmem>>, %arg4: memref<8x1x128xf32, #tpu.memory_space<vmem>>, %arg5: memref<8x128x128xf32, #tpu.memory_space<vmem>>, %arg6: memref<8x1x128xf32, #tpu.memory_space<vmem>>, %arg7: memref<768x128xf32, #tpu.memory_space<vmem>>, %arg8: memref<1x128xf32, #tpu.memory_space<vmem>>, %arg9: memref<128x128xf32, #tpu.memory_space<vmem>>, %arg10: memref<1x128xf32, #tpu.memory_space<vmem>>, %arg11: memref<128x128xf32, #tpu.memory_space<vmem>>, %arg12: memref<1x128xf32, #tpu.memory_space<vmem>>, %arg13: memref<8x768xf32, #tpu.memory_space<vmem>>, %arg14: memref<8x128xf32, #tpu.memory_space<vmem>>) attributes {dimension_semantics = [], scalar_prefetch = 0 : i64, scratch_operands = 0 : i64, tpu.core_type = #tpu.core_type<tc>} {
    %c0 = arith.constant 0 : index
    %c0_0 = arith.constant 0 : index
    %0 = vector.load %arg7[%c0, %c0_0] : memref<768x128xf32, #tpu.memory_space<vmem>>, vector<768x128xf32>
    %c0_1 = arith.constant 0 : index
    %1 = memref.load %arg0[%c0_1] : memref<8xf32, #tpu.memory_space<smem>>
    %c0_2 = arith.constant 0 : index
    %c0_3 = arith.constant 0 : index
    %c0_4 = arith.constant 0 : index
    %2 = vector.load %arg1[%c0_2, %c0_3, %c0_4] : memref<8x768x128xf32, #tpu.memory_space<vmem>>, vector<1x768x128xf32>
    %3 = vector.shape_cast %2 : vector<1x768x128xf32> to vector<768x128xf32>
    %4 = vector.broadcast %1 : f32 to vector<768x128xf32>
    %5 = arith.mulf %4, %3 : vector<768x128xf32>
    %6 = arith.addf %0, %5 : vector<768x128xf32>
    %c1 = arith.constant 1 : index
    %7 = memref.load %arg0[%c1] : memref<8xf32, #tpu.memory_space<smem>>
    %c1_5 = arith.constant 1 : index
    %c0_6 = arith.constant 0 : index
    %c0_7 = arith.constant 0 : index
    %8 = vector.load %arg1[%c1_5, %c0_6, %c0_7] : memref<8x768x128xf32, #tpu.memory_space<vmem>>, vector<1x768x128xf32>
    %9 = vector.shape_cast %8 : vector<1x768x128xf32> to vector<768x128xf32>
    %10 = vector.broadcast %7 : f32 to vector<768x128xf32>
    %11 = arith.mulf %10, %9 : vector<768x128xf32>
    %12 = arith.addf %6, %11 : vector<768x128xf32>
    %c2 = arith.constant 2 : index
    %13 = memref.load %arg0[%c2] : memref<8xf32, #tpu.memory_space<smem>>
    %c2_8 = arith.constant 2 : index
    %c0_9 = arith.constant 0 : index
    %c0_10 = arith.constant 0 : index
    %14 = vector.load %arg1[%c2_8, %c0_9, %c0_10] : memref<8x768x128xf32, #tpu.memory_space<vmem>>, vector<1x768x128xf32>
    %15 = vector.shape_cast %14 : vector<1x768x128xf32> to vector<768x128xf32>
    %16 = vector.broadcast %13 : f32 to vector<768x128xf32>
    %17 = arith.mulf %16, %15 : vector<768x128xf32>
    %18 = arith.addf %12, %17 : vector<768x128xf32>
    %c3 = arith.constant 3 : index
    %19 = memref.load %arg0[%c3] : memref<8xf32, #tpu.memory_space<smem>>
    %c3_11 = arith.constant 3 : index
    %c0_12 = arith.constant 0 : index
    %c0_13 = arith.constant 0 : index
    %20 = vector.load %arg1[%c3_11, %c0_12, %c0_13] : memref<8x768x128xf32, #tpu.memory_space<vmem>>, vector<1x768x128xf32>
    %21 = vector.shape_cast %20 : vector<1x768x128xf32> to vector<768x128xf32>
    %22 = vector.broadcast %19 : f32 to vector<768x128xf32>
    %23 = arith.mulf %22, %21 : vector<768x128xf32>
    %24 = arith.addf %18, %23 : vector<768x128xf32>
    %c4 = arith.constant 4 : index
    %25 = memref.load %arg0[%c4] : memref<8xf32, #tpu.memory_space<smem>>
    %c4_14 = arith.constant 4 : index
    %c0_15 = arith.constant 0 : index
    %c0_16 = arith.constant 0 : index
    %26 = vector.load %arg1[%c4_14, %c0_15, %c0_16] : memref<8x768x128xf32, #tpu.memory_space<vmem>>, vector<1x768x128xf32>
    %27 = vector.shape_cast %26 : vector<1x768x128xf32> to vector<768x128xf32>
    %28 = vector.broadcast %25 : f32 to vector<768x128xf32>
    %29 = arith.mulf %28, %27 : vector<768x128xf32>
    %30 = arith.addf %24, %29 : vector<768x128xf32>
    %c5 = arith.constant 5 : index
    %31 = memref.load %arg0[%c5] : memref<8xf32, #tpu.memory_space<smem>>
    %c5_17 = arith.constant 5 : index
    %c0_18 = arith.constant 0 : index
    %c0_19 = arith.constant 0 : index
    %32 = vector.load %arg1[%c5_17, %c0_18, %c0_19] : memref<8x768x128xf32, #tpu.memory_space<vmem>>, vector<1x768x128xf32>
    %33 = vector.shape_cast %32 : vector<1x768x128xf32> to vector<768x128xf32>
    %34 = vector.broadcast %31 : f32 to vector<768x128xf32>
    %35 = arith.mulf %34, %33 : vector<768x128xf32>
    %36 = arith.addf %30, %35 : vector<768x128xf32>
    %c6 = arith.constant 6 : index
    %37 = memref.load %arg0[%c6] : memref<8xf32, #tpu.memory_space<smem>>
    %c6_20 = arith.constant 6 : index
    %c0_21 = arith.constant 0 : index
    %c0_22 = arith.constant 0 : index
    %38 = vector.load %arg1[%c6_20, %c0_21, %c0_22] : memref<8x768x128xf32, #tpu.memory_space<vmem>>, vector<1x768x128xf32>
    %39 = vector.shape_cast %38 : vector<1x768x128xf32> to vector<768x128xf32>
    %40 = vector.broadcast %37 : f32 to vector<768x128xf32>
    %41 = arith.mulf %40, %39 : vector<768x128xf32>
    %42 = arith.addf %36, %41 : vector<768x128xf32>
    %c7 = arith.constant 7 : index
    %43 = memref.load %arg0[%c7] : memref<8xf32, #tpu.memory_space<smem>>
    %c7_23 = arith.constant 7 : index
    %c0_24 = arith.constant 0 : index
    %c0_25 = arith.constant 0 : index
    %44 = vector.load %arg1[%c7_23, %c0_24, %c0_25] : memref<8x768x128xf32, #tpu.memory_space<vmem>>, vector<1x768x128xf32>
    %45 = vector.shape_cast %44 : vector<1x768x128xf32> to vector<768x128xf32>
    %46 = vector.broadcast %43 : f32 to vector<768x128xf32>
    %47 = arith.mulf %46, %45 : vector<768x128xf32>
    %48 = arith.addf %42, %47 : vector<768x128xf32>
    %c0_26 = arith.constant 0 : index
    %c0_27 = arith.constant 0 : index
    %49 = vector.load %arg8[%c0_26, %c0_27] : memref<1x128xf32, #tpu.memory_space<vmem>>, vector<1x128xf32>
    %c0_28 = arith.constant 0 : index
    %50 = memref.load %arg0[%c0_28] : memref<8xf32, #tpu.memory_space<smem>>
    %c0_29 = arith.constant 0 : index
    %c0_30 = arith.constant 0 : index
    %c0_31 = arith.constant 0 : index
    %51 = vector.load %arg2[%c0_29, %c0_30, %c0_31] : memref<8x1x128xf32, #tpu.memory_space<vmem>>, vector<1x1x128xf32>
    %52 = vector.shape_cast %51 : vector<1x1x128xf32> to vector<1x128xf32>
    %53 = vector.broadcast %50 : f32 to vector<1x128xf32>
    %54 = arith.mulf %53, %52 : vector<1x128xf32>
    %55 = arith.addf %49, %54 : vector<1x128xf32>
    %c1_32 = arith.constant 1 : index
    %56 = memref.load %arg0[%c1_32] : memref<8xf32, #tpu.memory_space<smem>>
    %c1_33 = arith.constant 1 : index
    %c0_34 = arith.constant 0 : index
    %c0_35 = arith.constant 0 : index
    %57 = vector.load %arg2[%c1_33, %c0_34, %c0_35] : memref<8x1x128xf32, #tpu.memory_space<vmem>>, vector<1x1x128xf32>
    %58 = vector.shape_cast %57 : vector<1x1x128xf32> to vector<1x128xf32>
    %59 = vector.broadcast %56 : f32 to vector<1x128xf32>
    %60 = arith.mulf %59, %58 : vector<1x128xf32>
    %61 = arith.addf %55, %60 : vector<1x128xf32>
    %c2_36 = arith.constant 2 : index
    %62 = memref.load %arg0[%c2_36] : memref<8xf32, #tpu.memory_space<smem>>
    %c2_37 = arith.constant 2 : index
    %c0_38 = arith.constant 0 : index
    %c0_39 = arith.constant 0 : index
    %63 = vector.load %arg2[%c2_37, %c0_38, %c0_39] : memref<8x1x128xf32, #tpu.memory_space<vmem>>, vector<1x1x128xf32>
    %64 = vector.shape_cast %63 : vector<1x1x128xf32> to vector<1x128xf32>
    %65 = vector.broadcast %62 : f32 to vector<1x128xf32>
    %66 = arith.mulf %65, %64 : vector<1x128xf32>
    %67 = arith.addf %61, %66 : vector<1x128xf32>
    %c3_40 = arith.constant 3 : index
    %68 = memref.load %arg0[%c3_40] : memref<8xf32, #tpu.memory_space<smem>>
    %c3_41 = arith.constant 3 : index
    %c0_42 = arith.constant 0 : index
    %c0_43 = arith.constant 0 : index
    %69 = vector.load %arg2[%c3_41, %c0_42, %c0_43] : memref<8x1x128xf32, #tpu.memory_space<vmem>>, vector<1x1x128xf32>
    %70 = vector.shape_cast %69 : vector<1x1x128xf32> to vector<1x128xf32>
    %71 = vector.broadcast %68 : f32 to vector<1x128xf32>
    %72 = arith.mulf %71, %70 : vector<1x128xf32>
    %73 = arith.addf %67, %72 : vector<1x128xf32>
    %c4_44 = arith.constant 4 : index
    %74 = memref.load %arg0[%c4_44] : memref<8xf32, #tpu.memory_space<smem>>
    %c4_45 = arith.constant 4 : index
    %c0_46 = arith.constant 0 : index
    %c0_47 = arith.constant 0 : index
    %75 = vector.load %arg2[%c4_45, %c0_46, %c0_47] : memref<8x1x128xf32, #tpu.memory_space<vmem>>, vector<1x1x128xf32>
    %76 = vector.shape_cast %75 : vector<1x1x128xf32> to vector<1x128xf32>
    %77 = vector.broadcast %74 : f32 to vector<1x128xf32>
    %78 = arith.mulf %77, %76 : vector<1x128xf32>
    %79 = arith.addf %73, %78 : vector<1x128xf32>
    %c5_48 = arith.constant 5 : index
    %80 = memref.load %arg0[%c5_48] : memref<8xf32, #tpu.memory_space<smem>>
    %c5_49 = arith.constant 5 : index
    %c0_50 = arith.constant 0 : index
    %c0_51 = arith.constant 0 : index
    %81 = vector.load %arg2[%c5_49, %c0_50, %c0_51] : memref<8x1x128xf32, #tpu.memory_space<vmem>>, vector<1x1x128xf32>
    %82 = vector.shape_cast %81 : vector<1x1x128xf32> to vector<1x128xf32>
    %83 = vector.broadcast %80 : f32 to vector<1x128xf32>
    %84 = arith.mulf %83, %82 : vector<1x128xf32>
    %85 = arith.addf %79, %84 : vector<1x128xf32>
    %c6_52 = arith.constant 6 : index
    %86 = memref.load %arg0[%c6_52] : memref<8xf32, #tpu.memory_space<smem>>
    %c6_53 = arith.constant 6 : index
    %c0_54 = arith.constant 0 : index
    %c0_55 = arith.constant 0 : index
    %87 = vector.load %arg2[%c6_53, %c0_54, %c0_55] : memref<8x1x128xf32, #tpu.memory_space<vmem>>, vector<1x1x128xf32>
    %88 = vector.shape_cast %87 : vector<1x1x128xf32> to vector<1x128xf32>
    %89 = vector.broadcast %86 : f32 to vector<1x128xf32>
    %90 = arith.mulf %89, %88 : vector<1x128xf32>
    %91 = arith.addf %85, %90 : vector<1x128xf32>
    %c7_56 = arith.constant 7 : index
    %92 = memref.load %arg0[%c7_56] : memref<8xf32, #tpu.memory_space<smem>>
    %c7_57 = arith.constant 7 : index
    %c0_58 = arith.constant 0 : index
    %c0_59 = arith.constant 0 : index
    %93 = vector.load %arg2[%c7_57, %c0_58, %c0_59] : memref<8x1x128xf32, #tpu.memory_space<vmem>>, vector<1x1x128xf32>
    %94 = vector.shape_cast %93 : vector<1x1x128xf32> to vector<1x128xf32>
    %95 = vector.broadcast %92 : f32 to vector<1x128xf32>
    %96 = arith.mulf %95, %94 : vector<1x128xf32>
    %97 = arith.addf %91, %96 : vector<1x128xf32>
    %c0_60 = arith.constant 0 : index
    %c0_61 = arith.constant 0 : index
    %98 = vector.load %arg9[%c0_60, %c0_61] : memref<128x128xf32, #tpu.memory_space<vmem>>, vector<128x128xf32>
    %c0_62 = arith.constant 0 : index
    %99 = memref.load %arg0[%c0_62] : memref<8xf32, #tpu.memory_space<smem>>
    %c0_63 = arith.constant 0 : index
    %c0_64 = arith.constant 0 : index
    %c0_65 = arith.constant 0 : index
    %100 = vector.load %arg3[%c0_63, %c0_64, %c0_65] : memref<8x128x128xf32, #tpu.memory_space<vmem>>, vector<1x128x128xf32>
    %101 = vector.shape_cast %100 : vector<1x128x128xf32> to vector<128x128xf32>
    %102 = vector.broadcast %99 : f32 to vector<128x128xf32>
    %103 = arith.mulf %102, %101 : vector<128x128xf32>
    %104 = arith.addf %98, %103 : vector<128x128xf32>
    %c1_66 = arith.constant 1 : index
    %105 = memref.load %arg0[%c1_66] : memref<8xf32, #tpu.memory_space<smem>>
    %c1_67 = arith.constant 1 : index
    %c0_68 = arith.constant 0 : index
    %c0_69 = arith.constant 0 : index
    %106 = vector.load %arg3[%c1_67, %c0_68, %c0_69] : memref<8x128x128xf32, #tpu.memory_space<vmem>>, vector<1x128x128xf32>
    %107 = vector.shape_cast %106 : vector<1x128x128xf32> to vector<128x128xf32>
    %108 = vector.broadcast %105 : f32 to vector<128x128xf32>
    %109 = arith.mulf %108, %107 : vector<128x128xf32>
    %110 = arith.addf %104, %109 : vector<128x128xf32>
    %c2_70 = arith.constant 2 : index
    %111 = memref.load %arg0[%c2_70] : memref<8xf32, #tpu.memory_space<smem>>
    %c2_71 = arith.constant 2 : index
    %c0_72 = arith.constant 0 : index
    %c0_73 = arith.constant 0 : index
    %112 = vector.load %arg3[%c2_71, %c0_72, %c0_73] : memref<8x128x128xf32, #tpu.memory_space<vmem>>, vector<1x128x128xf32>
    %113 = vector.shape_cast %112 : vector<1x128x128xf32> to vector<128x128xf32>
    %114 = vector.broadcast %111 : f32 to vector<128x128xf32>
    %115 = arith.mulf %114, %113 : vector<128x128xf32>
    %116 = arith.addf %110, %115 : vector<128x128xf32>
    %c3_74 = arith.constant 3 : index
    %117 = memref.load %arg0[%c3_74] : memref<8xf32, #tpu.memory_space<smem>>
    %c3_75 = arith.constant 3 : index
    %c0_76 = arith.constant 0 : index
    %c0_77 = arith.constant 0 : index
    %118 = vector.load %arg3[%c3_75, %c0_76, %c0_77] : memref<8x128x128xf32, #tpu.memory_space<vmem>>, vector<1x128x128xf32>
    %119 = vector.shape_cast %118 : vector<1x128x128xf32> to vector<128x128xf32>
    %120 = vector.broadcast %117 : f32 to vector<128x128xf32>
    %121 = arith.mulf %120, %119 : vector<128x128xf32>
    %122 = arith.addf %116, %121 : vector<128x128xf32>
    %c4_78 = arith.constant 4 : index
    %123 = memref.load %arg0[%c4_78] : memref<8xf32, #tpu.memory_space<smem>>
    %c4_79 = arith.constant 4 : index
    %c0_80 = arith.constant 0 : index
    %c0_81 = arith.constant 0 : index
    %124 = vector.load %arg3[%c4_79, %c0_80, %c0_81] : memref<8x128x128xf32, #tpu.memory_space<vmem>>, vector<1x128x128xf32>
    %125 = vector.shape_cast %124 : vector<1x128x128xf32> to vector<128x128xf32>
    %126 = vector.broadcast %123 : f32 to vector<128x128xf32>
    %127 = arith.mulf %126, %125 : vector<128x128xf32>
    %128 = arith.addf %122, %127 : vector<128x128xf32>
    %c5_82 = arith.constant 5 : index
    %129 = memref.load %arg0[%c5_82] : memref<8xf32, #tpu.memory_space<smem>>
    %c5_83 = arith.constant 5 : index
    %c0_84 = arith.constant 0 : index
    %c0_85 = arith.constant 0 : index
    %130 = vector.load %arg3[%c5_83, %c0_84, %c0_85] : memref<8x128x128xf32, #tpu.memory_space<vmem>>, vector<1x128x128xf32>
    %131 = vector.shape_cast %130 : vector<1x128x128xf32> to vector<128x128xf32>
    %132 = vector.broadcast %129 : f32 to vector<128x128xf32>
    %133 = arith.mulf %132, %131 : vector<128x128xf32>
    %134 = arith.addf %128, %133 : vector<128x128xf32>
    %c6_86 = arith.constant 6 : index
    %135 = memref.load %arg0[%c6_86] : memref<8xf32, #tpu.memory_space<smem>>
    %c6_87 = arith.constant 6 : index
    %c0_88 = arith.constant 0 : index
    %c0_89 = arith.constant 0 : index
    %136 = vector.load %arg3[%c6_87, %c0_88, %c0_89] : memref<8x128x128xf32, #tpu.memory_space<vmem>>, vector<1x128x128xf32>
    %137 = vector.shape_cast %136 : vector<1x128x128xf32> to vector<128x128xf32>
    %138 = vector.broadcast %135 : f32 to vector<128x128xf32>
    %139 = arith.mulf %138, %137 : vector<128x128xf32>
    %140 = arith.addf %134, %139 : vector<128x128xf32>
    %c7_90 = arith.constant 7 : index
    %141 = memref.load %arg0[%c7_90] : memref<8xf32, #tpu.memory_space<smem>>
    %c7_91 = arith.constant 7 : index
    %c0_92 = arith.constant 0 : index
    %c0_93 = arith.constant 0 : index
    %142 = vector.load %arg3[%c7_91, %c0_92, %c0_93] : memref<8x128x128xf32, #tpu.memory_space<vmem>>, vector<1x128x128xf32>
    %143 = vector.shape_cast %142 : vector<1x128x128xf32> to vector<128x128xf32>
    %144 = vector.broadcast %141 : f32 to vector<128x128xf32>
    %145 = arith.mulf %144, %143 : vector<128x128xf32>
    %146 = arith.addf %140, %145 : vector<128x128xf32>
    %c0_94 = arith.constant 0 : index
    %c0_95 = arith.constant 0 : index
    %147 = vector.load %arg10[%c0_94, %c0_95] : memref<1x128xf32, #tpu.memory_space<vmem>>, vector<1x128xf32>
    %c0_96 = arith.constant 0 : index
    %148 = memref.load %arg0[%c0_96] : memref<8xf32, #tpu.memory_space<smem>>
    %c0_97 = arith.constant 0 : index
    %c0_98 = arith.constant 0 : index
    %c0_99 = arith.constant 0 : index
    %149 = vector.load %arg4[%c0_97, %c0_98, %c0_99] : memref<8x1x128xf32, #tpu.memory_space<vmem>>, vector<1x1x128xf32>
    %150 = vector.shape_cast %149 : vector<1x1x128xf32> to vector<1x128xf32>
    %151 = vector.broadcast %148 : f32 to vector<1x128xf32>
    %152 = arith.mulf %151, %150 : vector<1x128xf32>
    %153 = arith.addf %147, %152 : vector<1x128xf32>
    %c1_100 = arith.constant 1 : index
    %154 = memref.load %arg0[%c1_100] : memref<8xf32, #tpu.memory_space<smem>>
    %c1_101 = arith.constant 1 : index
    %c0_102 = arith.constant 0 : index
    %c0_103 = arith.constant 0 : index
    %155 = vector.load %arg4[%c1_101, %c0_102, %c0_103] : memref<8x1x128xf32, #tpu.memory_space<vmem>>, vector<1x1x128xf32>
    %156 = vector.shape_cast %155 : vector<1x1x128xf32> to vector<1x128xf32>
    %157 = vector.broadcast %154 : f32 to vector<1x128xf32>
    %158 = arith.mulf %157, %156 : vector<1x128xf32>
    %159 = arith.addf %153, %158 : vector<1x128xf32>
    %c2_104 = arith.constant 2 : index
    %160 = memref.load %arg0[%c2_104] : memref<8xf32, #tpu.memory_space<smem>>
    %c2_105 = arith.constant 2 : index
    %c0_106 = arith.constant 0 : index
    %c0_107 = arith.constant 0 : index
    %161 = vector.load %arg4[%c2_105, %c0_106, %c0_107] : memref<8x1x128xf32, #tpu.memory_space<vmem>>, vector<1x1x128xf32>
    %162 = vector.shape_cast %161 : vector<1x1x128xf32> to vector<1x128xf32>
    %163 = vector.broadcast %160 : f32 to vector<1x128xf32>
    %164 = arith.mulf %163, %162 : vector<1x128xf32>
    %165 = arith.addf %159, %164 : vector<1x128xf32>
    %c3_108 = arith.constant 3 : index
    %166 = memref.load %arg0[%c3_108] : memref<8xf32, #tpu.memory_space<smem>>
    %c3_109 = arith.constant 3 : index
    %c0_110 = arith.constant 0 : index
    %c0_111 = arith.constant 0 : index
    %167 = vector.load %arg4[%c3_109, %c0_110, %c0_111] : memref<8x1x128xf32, #tpu.memory_space<vmem>>, vector<1x1x128xf32>
    %168 = vector.shape_cast %167 : vector<1x1x128xf32> to vector<1x128xf32>
    %169 = vector.broadcast %166 : f32 to vector<1x128xf32>
    %170 = arith.mulf %169, %168 : vector<1x128xf32>
    %171 = arith.addf %165, %170 : vector<1x128xf32>
    %c4_112 = arith.constant 4 : index
    %172 = memref.load %arg0[%c4_112] : memref<8xf32, #tpu.memory_space<smem>>
    %c4_113 = arith.constant 4 : index
    %c0_114 = arith.constant 0 : index
    %c0_115 = arith.constant 0 : index
    %173 = vector.load %arg4[%c4_113, %c0_114, %c0_115] : memref<8x1x128xf32, #tpu.memory_space<vmem>>, vector<1x1x128xf32>
    %174 = vector.shape_cast %173 : vector<1x1x128xf32> to vector<1x128xf32>
    %175 = vector.broadcast %172 : f32 to vector<1x128xf32>
    %176 = arith.mulf %175, %174 : vector<1x128xf32>
    %177 = arith.addf %171, %176 : vector<1x128xf32>
    %c5_116 = arith.constant 5 : index
    %178 = memref.load %arg0[%c5_116] : memref<8xf32, #tpu.memory_space<smem>>
    %c5_117 = arith.constant 5 : index
    %c0_118 = arith.constant 0 : index
    %c0_119 = arith.constant 0 : index
    %179 = vector.load %arg4[%c5_117, %c0_118, %c0_119] : memref<8x1x128xf32, #tpu.memory_space<vmem>>, vector<1x1x128xf32>
    %180 = vector.shape_cast %179 : vector<1x1x128xf32> to vector<1x128xf32>
    %181 = vector.broadcast %178 : f32 to vector<1x128xf32>
    %182 = arith.mulf %181, %180 : vector<1x128xf32>
    %183 = arith.addf %177, %182 : vector<1x128xf32>
    %c6_120 = arith.constant 6 : index
    %184 = memref.load %arg0[%c6_120] : memref<8xf32, #tpu.memory_space<smem>>
    %c6_121 = arith.constant 6 : index
    %c0_122 = arith.constant 0 : index
    %c0_123 = arith.constant 0 : index
    %185 = vector.load %arg4[%c6_121, %c0_122, %c0_123] : memref<8x1x128xf32, #tpu.memory_space<vmem>>, vector<1x1x128xf32>
    %186 = vector.shape_cast %185 : vector<1x1x128xf32> to vector<1x128xf32>
    %187 = vector.broadcast %184 : f32 to vector<1x128xf32>
    %188 = arith.mulf %187, %186 : vector<1x128xf32>
    %189 = arith.addf %183, %188 : vector<1x128xf32>
    %c7_124 = arith.constant 7 : index
    %190 = memref.load %arg0[%c7_124] : memref<8xf32, #tpu.memory_space<smem>>
    %c7_125 = arith.constant 7 : index
    %c0_126 = arith.constant 0 : index
    %c0_127 = arith.constant 0 : index
    %191 = vector.load %arg4[%c7_125, %c0_126, %c0_127] : memref<8x1x128xf32, #tpu.memory_space<vmem>>, vector<1x1x128xf32>
    %192 = vector.shape_cast %191 : vector<1x1x128xf32> to vector<1x128xf32>
    %193 = vector.broadcast %190 : f32 to vector<1x128xf32>
    %194 = arith.mulf %193, %192 : vector<1x128xf32>
    %195 = arith.addf %189, %194 : vector<1x128xf32>
    %c0_128 = arith.constant 0 : index
    %c0_129 = arith.constant 0 : index
    %196 = vector.load %arg11[%c0_128, %c0_129] : memref<128x128xf32, #tpu.memory_space<vmem>>, vector<128x128xf32>
    %c0_130 = arith.constant 0 : index
    %197 = memref.load %arg0[%c0_130] : memref<8xf32, #tpu.memory_space<smem>>
    %c0_131 = arith.constant 0 : index
    %c0_132 = arith.constant 0 : index
    %c0_133 = arith.constant 0 : index
    %198 = vector.load %arg5[%c0_131, %c0_132, %c0_133] : memref<8x128x128xf32, #tpu.memory_space<vmem>>, vector<1x128x128xf32>
    %199 = vector.shape_cast %198 : vector<1x128x128xf32> to vector<128x128xf32>
    %200 = vector.broadcast %197 : f32 to vector<128x128xf32>
    %201 = arith.mulf %200, %199 : vector<128x128xf32>
    %202 = arith.addf %196, %201 : vector<128x128xf32>
    %c1_134 = arith.constant 1 : index
    %203 = memref.load %arg0[%c1_134] : memref<8xf32, #tpu.memory_space<smem>>
    %c1_135 = arith.constant 1 : index
    %c0_136 = arith.constant 0 : index
    %c0_137 = arith.constant 0 : index
    %204 = vector.load %arg5[%c1_135, %c0_136, %c0_137] : memref<8x128x128xf32, #tpu.memory_space<vmem>>, vector<1x128x128xf32>
    %205 = vector.shape_cast %204 : vector<1x128x128xf32> to vector<128x128xf32>
    %206 = vector.broadcast %203 : f32 to vector<128x128xf32>
    %207 = arith.mulf %206, %205 : vector<128x128xf32>
    %208 = arith.addf %202, %207 : vector<128x128xf32>
    %c2_138 = arith.constant 2 : index
    %209 = memref.load %arg0[%c2_138] : memref<8xf32, #tpu.memory_space<smem>>
    %c2_139 = arith.constant 2 : index
    %c0_140 = arith.constant 0 : index
    %c0_141 = arith.constant 0 : index
    %210 = vector.load %arg5[%c2_139, %c0_140, %c0_141] : memref<8x128x128xf32, #tpu.memory_space<vmem>>, vector<1x128x128xf32>
    %211 = vector.shape_cast %210 : vector<1x128x128xf32> to vector<128x128xf32>
    %212 = vector.broadcast %209 : f32 to vector<128x128xf32>
    %213 = arith.mulf %212, %211 : vector<128x128xf32>
    %214 = arith.addf %208, %213 : vector<128x128xf32>
    %c3_142 = arith.constant 3 : index
    %215 = memref.load %arg0[%c3_142] : memref<8xf32, #tpu.memory_space<smem>>
    %c3_143 = arith.constant 3 : index
    %c0_144 = arith.constant 0 : index
    %c0_145 = arith.constant 0 : index
    %216 = vector.load %arg5[%c3_143, %c0_144, %c0_145] : memref<8x128x128xf32, #tpu.memory_space<vmem>>, vector<1x128x128xf32>
    %217 = vector.shape_cast %216 : vector<1x128x128xf32> to vector<128x128xf32>
    %218 = vector.broadcast %215 : f32 to vector<128x128xf32>
    %219 = arith.mulf %218, %217 : vector<128x128xf32>
    %220 = arith.addf %214, %219 : vector<128x128xf32>
    %c4_146 = arith.constant 4 : index
    %221 = memref.load %arg0[%c4_146] : memref<8xf32, #tpu.memory_space<smem>>
    %c4_147 = arith.constant 4 : index
    %c0_148 = arith.constant 0 : index
    %c0_149 = arith.constant 0 : index
    %222 = vector.load %arg5[%c4_147, %c0_148, %c0_149] : memref<8x128x128xf32, #tpu.memory_space<vmem>>, vector<1x128x128xf32>
    %223 = vector.shape_cast %222 : vector<1x128x128xf32> to vector<128x128xf32>
    %224 = vector.broadcast %221 : f32 to vector<128x128xf32>
    %225 = arith.mulf %224, %223 : vector<128x128xf32>
    %226 = arith.addf %220, %225 : vector<128x128xf32>
    %c5_150 = arith.constant 5 : index
    %227 = memref.load %arg0[%c5_150] : memref<8xf32, #tpu.memory_space<smem>>
    %c5_151 = arith.constant 5 : index
    %c0_152 = arith.constant 0 : index
    %c0_153 = arith.constant 0 : index
    %228 = vector.load %arg5[%c5_151, %c0_152, %c0_153] : memref<8x128x128xf32, #tpu.memory_space<vmem>>, vector<1x128x128xf32>
    %229 = vector.shape_cast %228 : vector<1x128x128xf32> to vector<128x128xf32>
    %230 = vector.broadcast %227 : f32 to vector<128x128xf32>
    %231 = arith.mulf %230, %229 : vector<128x128xf32>
    %232 = arith.addf %226, %231 : vector<128x128xf32>
    %c6_154 = arith.constant 6 : index
    %233 = memref.load %arg0[%c6_154] : memref<8xf32, #tpu.memory_space<smem>>
    %c6_155 = arith.constant 6 : index
    %c0_156 = arith.constant 0 : index
    %c0_157 = arith.constant 0 : index
    %234 = vector.load %arg5[%c6_155, %c0_156, %c0_157] : memref<8x128x128xf32, #tpu.memory_space<vmem>>, vector<1x128x128xf32>
    %235 = vector.shape_cast %234 : vector<1x128x128xf32> to vector<128x128xf32>
    %236 = vector.broadcast %233 : f32 to vector<128x128xf32>
    %237 = arith.mulf %236, %235 : vector<128x128xf32>
    %238 = arith.addf %232, %237 : vector<128x128xf32>
    %c7_158 = arith.constant 7 : index
    %239 = memref.load %arg0[%c7_158] : memref<8xf32, #tpu.memory_space<smem>>
    %c7_159 = arith.constant 7 : index
    %c0_160 = arith.constant 0 : index
    %c0_161 = arith.constant 0 : index
    %240 = vector.load %arg5[%c7_159, %c0_160, %c0_161] : memref<8x128x128xf32, #tpu.memory_space<vmem>>, vector<1x128x128xf32>
    %241 = vector.shape_cast %240 : vector<1x128x128xf32> to vector<128x128xf32>
    %242 = vector.broadcast %239 : f32 to vector<128x128xf32>
    %243 = arith.mulf %242, %241 : vector<128x128xf32>
    %244 = arith.addf %238, %243 : vector<128x128xf32>
    %c0_162 = arith.constant 0 : index
    %c0_163 = arith.constant 0 : index
    %245 = vector.load %arg12[%c0_162, %c0_163] : memref<1x128xf32, #tpu.memory_space<vmem>>, vector<1x128xf32>
    %c0_164 = arith.constant 0 : index
    %246 = memref.load %arg0[%c0_164] : memref<8xf32, #tpu.memory_space<smem>>
    %c0_165 = arith.constant 0 : index
    %c0_166 = arith.constant 0 : index
    %c0_167 = arith.constant 0 : index
    %247 = vector.load %arg6[%c0_165, %c0_166, %c0_167] : memref<8x1x128xf32, #tpu.memory_space<vmem>>, vector<1x1x128xf32>
    %248 = vector.shape_cast %247 : vector<1x1x128xf32> to vector<1x128xf32>
    %249 = vector.broadcast %246 : f32 to vector<1x128xf32>
    %250 = arith.mulf %249, %248 : vector<1x128xf32>
    %251 = arith.addf %245, %250 : vector<1x128xf32>
    %c1_168 = arith.constant 1 : index
    %252 = memref.load %arg0[%c1_168] : memref<8xf32, #tpu.memory_space<smem>>
    %c1_169 = arith.constant 1 : index
    %c0_170 = arith.constant 0 : index
    %c0_171 = arith.constant 0 : index
    %253 = vector.load %arg6[%c1_169, %c0_170, %c0_171] : memref<8x1x128xf32, #tpu.memory_space<vmem>>, vector<1x1x128xf32>
    %254 = vector.shape_cast %253 : vector<1x1x128xf32> to vector<1x128xf32>
    %255 = vector.broadcast %252 : f32 to vector<1x128xf32>
    %256 = arith.mulf %255, %254 : vector<1x128xf32>
    %257 = arith.addf %251, %256 : vector<1x128xf32>
    %c2_172 = arith.constant 2 : index
    %258 = memref.load %arg0[%c2_172] : memref<8xf32, #tpu.memory_space<smem>>
    %c2_173 = arith.constant 2 : index
    %c0_174 = arith.constant 0 : index
    %c0_175 = arith.constant 0 : index
    %259 = vector.load %arg6[%c2_173, %c0_174, %c0_175] : memref<8x1x128xf32, #tpu.memory_space<vmem>>, vector<1x1x128xf32>
    %260 = vector.shape_cast %259 : vector<1x1x128xf32> to vector<1x128xf32>
    %261 = vector.broadcast %258 : f32 to vector<1x128xf32>
    %262 = arith.mulf %261, %260 : vector<1x128xf32>
    %263 = arith.addf %257, %262 : vector<1x128xf32>
    %c3_176 = arith.constant 3 : index
    %264 = memref.load %arg0[%c3_176] : memref<8xf32, #tpu.memory_space<smem>>
    %c3_177 = arith.constant 3 : index
    %c0_178 = arith.constant 0 : index
    %c0_179 = arith.constant 0 : index
    %265 = vector.load %arg6[%c3_177, %c0_178, %c0_179] : memref<8x1x128xf32, #tpu.memory_space<vmem>>, vector<1x1x128xf32>
    %266 = vector.shape_cast %265 : vector<1x1x128xf32> to vector<1x128xf32>
    %267 = vector.broadcast %264 : f32 to vector<1x128xf32>
    %268 = arith.mulf %267, %266 : vector<1x128xf32>
    %269 = arith.addf %263, %268 : vector<1x128xf32>
    %c4_180 = arith.constant 4 : index
    %270 = memref.load %arg0[%c4_180] : memref<8xf32, #tpu.memory_space<smem>>
    %c4_181 = arith.constant 4 : index
    %c0_182 = arith.constant 0 : index
    %c0_183 = arith.constant 0 : index
    %271 = vector.load %arg6[%c4_181, %c0_182, %c0_183] : memref<8x1x128xf32, #tpu.memory_space<vmem>>, vector<1x1x128xf32>
    %272 = vector.shape_cast %271 : vector<1x1x128xf32> to vector<1x128xf32>
    %273 = vector.broadcast %270 : f32 to vector<1x128xf32>
    %274 = arith.mulf %273, %272 : vector<1x128xf32>
    %275 = arith.addf %269, %274 : vector<1x128xf32>
    %c5_184 = arith.constant 5 : index
    %276 = memref.load %arg0[%c5_184] : memref<8xf32, #tpu.memory_space<smem>>
    %c5_185 = arith.constant 5 : index
    %c0_186 = arith.constant 0 : index
    %c0_187 = arith.constant 0 : index
    %277 = vector.load %arg6[%c5_185, %c0_186, %c0_187] : memref<8x1x128xf32, #tpu.memory_space<vmem>>, vector<1x1x128xf32>
    %278 = vector.shape_cast %277 : vector<1x1x128xf32> to vector<1x128xf32>
    %279 = vector.broadcast %276 : f32 to vector<1x128xf32>
    %280 = arith.mulf %279, %278 : vector<1x128xf32>
    %281 = arith.addf %275, %280 : vector<1x128xf32>
    %c6_188 = arith.constant 6 : index
    %282 = memref.load %arg0[%c6_188] : memref<8xf32, #tpu.memory_space<smem>>
    %c6_189 = arith.constant 6 : index
    %c0_190 = arith.constant 0 : index
    %c0_191 = arith.constant 0 : index
    %283 = vector.load %arg6[%c6_189, %c0_190, %c0_191] : memref<8x1x128xf32, #tpu.memory_space<vmem>>, vector<1x1x128xf32>
    %284 = vector.shape_cast %283 : vector<1x1x128xf32> to vector<1x128xf32>
    %285 = vector.broadcast %282 : f32 to vector<1x128xf32>
    %286 = arith.mulf %285, %284 : vector<1x128xf32>
    %287 = arith.addf %281, %286 : vector<1x128xf32>
    %c7_192 = arith.constant 7 : index
    %288 = memref.load %arg0[%c7_192] : memref<8xf32, #tpu.memory_space<smem>>
    %c7_193 = arith.constant 7 : index
    %c0_194 = arith.constant 0 : index
    %c0_195 = arith.constant 0 : index
    %289 = vector.load %arg6[%c7_193, %c0_194, %c0_195] : memref<8x1x128xf32, #tpu.memory_space<vmem>>, vector<1x1x128xf32>
    %290 = vector.shape_cast %289 : vector<1x1x128xf32> to vector<1x128xf32>
    %291 = vector.broadcast %288 : f32 to vector<1x128xf32>
    %292 = arith.mulf %291, %290 : vector<1x128xf32>
    %293 = arith.addf %287, %292 : vector<1x128xf32>
    %c0_196 = arith.constant 0 : index
    %c0_197 = arith.constant 0 : index
    %294 = vector.load %arg13[%c0_196, %c0_197] : memref<8x768xf32, #tpu.memory_space<vmem>>, vector<8x768xf32>
    %cst = arith.constant dense<0.000000e+00> : vector<8x128xf32>
    %295 = tpu.matmul %294, %48, %cst {dimension_numbers = #tpu.dot_dimension_numbers<[1], [0], [0], [1], [0, 0, 1, 1], [], []>} : vector<8x768xf32>, vector<768x128xf32>, vector<8x128xf32> -> vector<8x128xf32>
    %296 = vector.broadcast %97 : vector<1x128xf32> to vector<8x128xf32>
    %297 = arith.addf %295, %296 : vector<8x128xf32>
    %cst_198 = arith.constant 0.000000e+00 : f32
    %298 = vector.broadcast %cst_198 : f32 to vector<8x128xf32>
    %299 = arith.maximumf %297, %298 : vector<8x128xf32>
    %cst_199 = arith.constant dense<0.000000e+00> : vector<8x128xf32>
    %300 = tpu.matmul %299, %146, %cst_199 {dimension_numbers = #tpu.dot_dimension_numbers<[1], [0], [0], [1], [0, 0, 1, 1], [], []>} : vector<8x128xf32>, vector<128x128xf32>, vector<8x128xf32> -> vector<8x128xf32>
    %301 = vector.broadcast %195 : vector<1x128xf32> to vector<8x128xf32>
    %302 = arith.addf %300, %301 : vector<8x128xf32>
    %cst_200 = arith.constant 0.000000e+00 : f32
    %303 = vector.broadcast %cst_200 : f32 to vector<8x128xf32>
    %304 = arith.maximumf %302, %303 : vector<8x128xf32>
    %cst_201 = arith.constant dense<0.000000e+00> : vector<8x128xf32>
    %305 = tpu.matmul %304, %244, %cst_201 {dimension_numbers = #tpu.dot_dimension_numbers<[1], [0], [0], [1], [0, 0, 1, 1], [], []>} : vector<8x128xf32>, vector<128x128xf32>, vector<8x128xf32> -> vector<8x128xf32>
    %306 = vector.broadcast %293 : vector<1x128xf32> to vector<8x128xf32>
    %307 = arith.addf %305, %306 : vector<8x128xf32>
    %c0_202 = arith.constant 0 : index
    %c0_203 = arith.constant 0 : index
    %308 = vector.load %arg14[%c0_202, %c0_203] : memref<8x128xf32, #tpu.memory_space<vmem>>, vector<8x128xf32>
    tpu.vector_store %arg14[%c0_202, %c0_203], %307 {strides = array<i32>} : memref<8x128xf32, #tpu.memory_space<vmem>>, vector<8x128xf32>,
    return
  }
}

</mosaic_0001>

<bundles_post_ra>
// kernel: _fused_forward.1
= control target key start
LH: loop header
LB: loop body
LE: loop exit
PB: predicated region body
PF: predicated region fallthrough
CT: control target
= control target key end

     0   :  { %19 = vsyncpa [#allocation5], 0  ;;  %s6067_s0 = inlined_call_operand.hbm [shape: f32[8], index: 0, kind: input, shape index: {}]   ;;  %s6068_s1 = inlined_call_operand.hbm [shape: f32[8,768,128], index: 1, kind: input, shape index: {}]   ;;  %s6069_s2 = inlined_call_operand.hbm [shape: f32[8,1,128], index: 2, kind: input, shape index: {}]   ;;  %s6070_s3 = inlined_call_operand.hbm [shape: f32[8,128,128], index: 3, kind: input, shape index: {}]   ;;  %s6071_s4 = inlined_call_operand.hbm [shape: f32[8,1,128], index: 4, kind: input, shape index: {}]   ;;  %s6072_s5 = inlined_call_operand.hbm [shape: f32[8,128,128], index: 5, kind: input, shape index: {}]   ;;  %s6073_s6 = inlined_call_operand.hbm [shape: f32[8,1,128], index: 6, kind: input, shape index: {}]   ;;  %s6074_s7 = inlined_call_operand.hbm [shape: f32[768,128], index: 7, kind: input, shape index: {}]   ;;  %s6075_s8 = inlined_call_operand.hbm [shape: f32[1,128], index: 8, kind: input, shape index: {}]   ;;  %s6076_s9 = inlined_call_operand.hbm [shape: f32[128,128], index: 9, kind: input, shape index: {}]   ;;  %s6077_s10 = inlined_call_operand.hbm [shape: f32[1,128], index: 10, kind: input, shape index: {}]   ;;  %s6078_s11 = inlined_call_operand.hbm [shape: f32[128,128], index: 11, kind: input, shape index: {}]   ;;  %s6079_s12 = inlined_call_operand.hbm [shape: f32[1,128], index: 12, kind: input, shape index: {}]   ;;  %s6080_s13 = inlined_call_operand.vmem [shape: f32[8,768], index: 13, kind: input, shape index: {}]   ;;  %s6081_s14 = inlined_call_operand.hbm [shape: f32[8,128], index: 14, kind: output, shape index: {}]  }
   0x1   :  { %20 = vsyncpa [#allocation3], 0 }
   0x2   :  { %21 = vsyncpa [#allocation8], 0 }
   0x3   :  { %22 = vsyncpa [#allocation11], 0 }
   0x4   :  { %23 = vsyncpa [#allocation14], 0 }
   0x5   :  { %24 = vsyncpa [#allocation17], 0 }
   0x6   :  { %25 = vsyncpa [#allocation20], 0 }
   0x7   :  { %26 = vsyncpa [#allocation23], 0 }
   0x8   :  { %27 = vsyncpa [#allocation4], 0  ;;  %s4643_s29 = smov [#allocation7]   ;;  %s4329_s17 = scalar_lea.hbm %s6069_s2, 128 }
   0x9   :  { %s53_s30 = sshll.u32 %s4643_s29, 4  ;;  %p4330_p0 = scmp.ne.s32.totalorder %s6069_s2, %s4329_s17  ;;  %s54_s30 = int_to_ptr.vmem [resolvable:$true] %s53_s30 }
   0xa   :  { %p4333_p1 = scmp.lt.u32.totalorder %s4329_s17, %s6069_s2 }
   0xc   :  { %p4335_p2 = pnand %p4333_p1, %p4330_p0 }
   0xe   :  { %4338 = shalt.err (!%p4335_p2)
}
   0xf   :  { %s4339_s22 = scalar_lea.vmem %s54_s30, 128  ;;  %p4344_p4 = scmp.lt.s32.totalorder %s54_s30, %s54_s30 }
  0x10   :  { %p4340_p3 = scmp.ne.s32.totalorder %s54_s30, %s4339_s22  ;;  %p4345_p5 = scmp.lt.s32.totalorder %s4339_s22, %s4339_s22 }
  0x12   :  { %p4346_p6 = por %p4345_p5, %p4344_p4 }
  0x14   :  { %p4347_p7 = pnand %p4346_p6, %p4340_p3 }
  0x16   :  { %4350 = shalt.err (!%p4347_p7)
}
  0x17   :  { %s4644_s23 = smov 16   ;;  %s4645_s24 = smov 1  }
  0x18   :  { %59 = dma.hbm_to_vmem [thread:$0]  %s6069_s2, 128, %s54_s30, [#allocation8], %s4644_s23, %s4644_s23, %s4645_s24  }
  0x19   :  { %s4646_s27 = smov [#allocation10]   ;;  %s4647_s29 = smov [#allocation13]  }
  0x1a   :  { %s77_s28 = sshll.u32 %s4646_s27, 4  ;;  %s101_s15 = sshll.u32 %s4647_s29, 4  ;;  %s78_s28 = int_to_ptr.vmem [resolvable:$true] %s77_s28  ;;  %s102_s15 = int_to_ptr.vmem [resolvable:$true] %s101_s15 }
  0x1b   :  { %s4351_s18 = scalar_lea.hbm %s6071_s4, 128 }
  0x1c   :  { %p4352_p8 = scmp.ne.s32.totalorder %s6071_s4, %s4351_s18  ;;  %p4355_p9 = scmp.lt.u32.totalorder %s4351_s18, %s6071_s4 }
  0x1e   :  { %p4357_p10 = pnand %p4355_p9, %p4352_p8 }
  0x20   :  { %4360 = shalt.err (!%p4357_p10)
}
  0x21   :  { %s4361_s2 = scalar_lea.vmem %s78_s28, 128  ;;  %p4366_p12 = scmp.lt.s32.totalorder %s78_s28, %s78_s28 }
  0x22   :  { %p4362_p11 = scmp.ne.s32.totalorder %s78_s28, %s4361_s2  ;;  %p4367_p13 = scmp.lt.s32.totalorder %s4361_s2, %s4361_s2 }
  0x24   :  { %p4368_p0 = por %p4367_p13, %p4366_p12 }
  0x26   :  { %p4369_p1 = pnand %p4368_p0, %p4362_p11 }
  0x28   :  { %4372 = shalt.err (!%p4369_p1)
}
  0x29   :  { %83 = dma.hbm_to_vmem [thread:$0]  %s6071_s4, 128, %s78_s28, [#allocation11], %s4644_s23, %s4644_s23, %s4645_s24  }
  0x2a   :  { %s4373_s29 = scalar_lea.hbm %s6073_s6, 128 }
  0x2b   :  { %p4374_p2 = scmp.ne.s32.totalorder %s6073_s6, %s4373_s29  ;;  %p4377_p3 = scmp.lt.u32.totalorder %s4373_s29, %s6073_s6 }
  0x2d   :  { %p4379_p4 = pnand %p4377_p3, %p4374_p2 }
  0x2f   :  { %4382 = shalt.err (!%p4379_p4)
}
  0x30   :  { %s4383_s20 = scalar_lea.vmem %s102_s15, 128  ;;  %p4388_p6 = scmp.lt.s32.totalorder %s102_s15, %s102_s15 }
  0x31   :  { %p4384_p5 = scmp.ne.s32.totalorder %s102_s15, %s4383_s20  ;;  %p4389_p7 = scmp.lt.s32.totalorder %s4383_s20, %s4383_s20 }
  0x33   :  { %p4390_p8 = por %p4389_p7, %p4388_p6 }
  0x35   :  { %p4391_p9 = pnand %p4390_p8, %p4384_p5 }
  0x37   :  { %4394 = shalt.err (!%p4391_p9)
}
  0x38   :  { %107 = dma.hbm_to_vmem [thread:$0]  %s6073_s6, 128, %s102_s15, [#allocation14], %s4644_s23, %s4644_s23, %s4645_s24  }
  0x39   :  { %s4648_s21 = smov [#allocation16]   ;;  %s4649_s2 = smov [#allocation19]  }
  0x3a   :  { %s126_s22 = sshll.u32 %s4648_s21, 4  ;;  %s148_s30 = sshll.u32 %s4649_s2, 4  ;;  %s127_s22 = int_to_ptr.vmem [resolvable:$true] %s126_s22  ;;  %s149_s30 = int_to_ptr.vmem [resolvable:$true] %s148_s30 }
  0x3b   :  { %s4395_s27 = scalar_lea.hbm %s6075_s8, 16 }
  0x3c   :  { %p4396_p10 = scmp.ne.s32.totalorder %s6075_s8, %s4395_s27  ;;  %p4399_p11 = scmp.lt.u32.totalorder %s4395_s27, %s6075_s8 }
  0x3e   :  { %p4401_p12 = pnand %p4399_p11, %p4396_p10 }
  0x40   :  { %4404 = shalt.err (!%p4401_p12)
}
  0x41   :  { %s4405_s6 = scalar_lea.vmem %s127_s22, 16  ;;  %s4409_s23 = scalar_lea.vmem %s127_s22, 32 }
  0x42   :  { %p4406_p13 = scmp.ne.s32.totalorder %s127_s22, %s4405_s6  ;;  %p4410_p0 = scmp.lt.s32.totalorder %s127_s22, %s127_s22 }
  0x43   :  { %p4411_p1 = scmp.lt.s32.totalorder %s4409_s23, %s4405_s6 }
  0x45   :  { %p4412_p2 = por %p4411_p1, %p4410_p0 }
  0x47   :  { %p4413_p3 = pnand %p4412_p2, %p4406_p13 }
  0x49   :  { %4416 = shalt.err (!%p4413_p3)
}
  0x4a   :  { %129 = dma.hbm_to_vmem [thread:$0]  %s6075_s8, 16, %s127_s22, [#allocation17]  }
  0x4b   :  { %s4417_s4 = scalar_lea.hbm %s6077_s10, 16 }
  0x4c   :  { %p4418_p4 = scmp.ne.s32.totalorder %s6077_s10, %s4417_s4  ;;  %p4421_p5 = scmp.lt.u32.totalorder %s4417_s4, %s6077_s10 }
  0x4e   :  { %p4423_p6 = pnand %p4421_p5, %p4418_p4 }
  0x50   :  { %4426 = shalt.err (!%p4423_p6)
}
  0x51   :  { %s4427_s26 = scalar_lea.vmem %s149_s30, 16  ;;  %s4431_s27 = scalar_lea.vmem %s149_s30, 32 }
  0x52   :  { %p4428_p7 = scmp.ne.s32.totalorder %s149_s30, %s4427_s26  ;;  %p4432_p8 = scmp.lt.s32.totalorder %s149_s30, %s149_s30 }
  0x53   :  { %p4433_p9 = scmp.lt.s32.totalorder %s4431_s27, %s4427_s26 }
  0x55   :  { %p4434_p10 = por %p4433_p9, %p4432_p8 }
  0x57   :  { %p4435_p11 = pnand %p4434_p10, %p4428_p7 }
  0x59   :  { %4438 = shalt.err (!%p4435_p11)
}
  0x5a   :  { %151 = dma.hbm_to_vmem [thread:$0]  %s6077_s10, 16, %s149_s30, [#allocation20]  }
  0x5b   :  { %s4439_s17 = scalar_lea.hbm %s6067_s0, 16 }
  0x5c   :  { %p4440_p12 = scmp.ne.s32.totalorder %s6067_s0, %s4439_s17  ;;  %p4443_p13 = scmp.lt.u32.totalorder %s4439_s17, %s6067_s0 }
  0x5e   :  { %p4445_p0 = pnand %p4443_p13, %p4440_p12 }
  0x60   :  { %4448 = shalt.err (!%p4445_p0)
}
  0x61   :  { %s4650_s15 = smov [#allocation2]   ;;  %s4651_s10 = smov [#allocation6]  }
  0x62   :  { %35 = dma.hbm_to_smem %s6067_s0, 16, %s4650_s15, [#allocation5]  }
  0x63   :  { %s41_s30 = sshll.u32 %s4651_s10, 4  ;;  %s4449_s21 = scalar_lea.hbm %s6068_s1, 98304  ;;  %s42_s30 = int_to_ptr.vmem [resolvable:$true] %s41_s30 }
  0x64   :  { %p4450_p1 = scmp.ne.s32.totalorder %s6068_s1, %s4449_s21  ;;  %p4453_p2 = scmp.lt.u32.totalorder %s4449_s21, %s6068_s1 }
  0x66   :  { %p4455_p3 = pnand %p4453_p2, %p4450_p1 }
  0x68   :  { %4458 = shalt.err (!%p4455_p3)
}
  0x69   :  { %s4459_s8 = scalar_lea.vmem %s42_s30, 98304  ;;  %p4464_p5 = scmp.lt.s32.totalorder %s42_s30, %s42_s30 }
  0x6a   :  { %p4460_p4 = scmp.ne.s32.totalorder %s42_s30, %s4459_s8  ;;  %p4465_p6 = scmp.lt.s32.totalorder %s4459_s8, %s4459_s8 }
  0x6c   :  { %p4466_p7 = por %p4465_p6, %p4464_p5 }
  0x6e   :  { %p4467_p8 = pnand %p4466_p7, %p4460_p4 }
  0x70   :  { %4470 = shalt.err (!%p4467_p8)
}
  0x71   :  { %s4652_s0 = smov 128   ;;  %s4653_s22 = smov 8  }
  0x72   :  { %47 = dma.hbm_to_vmem [thread:$0]  %s6068_s1, 98304, %s42_s30, [#allocation3], %s4652_s0, %s4652_s0, %s4653_s22  }
  0x73   :  { %s4654_s17 = smov [#allocation9]   ;;  %s4655_s6 = smov [#allocation12]  }
  0x74   :  { %s65_s18 = sshll.u32 %s4654_s17, 4  ;;  %s89_s23 = sshll.u32 %s4655_s6, 4  ;;  %s66_s18 = int_to_ptr.vmem [resolvable:$true] %s65_s18  ;;  %s90_s23 = int_to_ptr.vmem [resolvable:$true] %s89_s23 }
  0x75   :  { %s4471_s19 = scalar_lea.hbm %s6070_s3, 16384 }
  0x76   :  { %p4472_p9 = scmp.ne.s32.totalorder %s6070_s3, %s4471_s19  ;;  %p4475_p10 = scmp.lt.u32.totalorder %s4471_s19, %s6070_s3 }
  0x78   :  { %p4477_p11 = pnand %p4475_p10, %p4472_p9 }
  0x7a   :  { %4480 = shalt.err (!%p4477_p11)
}
  0x7b   :  { %s4481_s1 = scalar_lea.vmem %s66_s18, 16384  ;;  %p4486_p13 = scmp.lt.s32.totalorder %s66_s18, %s66_s18 }
  0x7c   :  { %p4482_p12 = scmp.ne.s32.totalorder %s66_s18, %s4481_s1  ;;  %p4487_p0 = scmp.lt.s32.totalorder %s4481_s1, %s4481_s1 }
  0x7e   :  { %p4488_p1 = por %p4487_p0, %p4486_p13 }
  0x80   :  { %p4489_p2 = pnand %p4488_p1, %p4482_p12 }
  0x82   :  { %4492 = shalt.err (!%p4489_p2)
}
  0x83   :  { %71 = dma.hbm_to_vmem [thread:$0]  %s6070_s3, 16384, %s66_s18, [#allocation8], %s4652_s0, %s4652_s0, %s4653_s22  }
  0x84   :  { %s4493_s26 = scalar_lea.hbm %s6072_s5, 16384 }
  0x85   :  { %p4494_p3 = scmp.ne.s32.totalorder %s6072_s5, %s4493_s26  ;;  %p4497_p4 = scmp.lt.u32.totalorder %s4493_s26, %s6072_s5 }
  0x87   :  { %p4499_p5 = pnand %p4497_p4, %p4494_p3 }
  0x89   :  { %4502 = shalt.err (!%p4499_p5)
}
  0x8a   :  { %s4503_s17 = scalar_lea.vmem %s90_s23, 16384  ;;  %p4508_p7 = scmp.lt.s32.totalorder %s90_s23, %s90_s23 }
  0x8b   :  { %p4504_p6 = scmp.ne.s32.totalorder %s90_s23, %s4503_s17  ;;  %p4509_p8 = scmp.lt.s32.totalorder %s4503_s17, %s4503_s17 }
  0x8d   :  { %p4510_p9 = por %p4509_p8, %p4508_p7 }
  0x8f   :  { %p4511_p10 = pnand %p4510_p9, %p4504_p6 }
  0x91   :  { %4514 = shalt.err (!%p4511_p10)
}
  0x92   :  { %95 = dma.hbm_to_vmem [thread:$0]  %s6072_s5, 16384, %s90_s23, [#allocation11], %s4652_s0, %s4652_s0, %s4653_s22  }
  0x93   :  { %s4656_s6 = smov [#allocation15]   ;;  %s4657_s15 = smov [#allocation18]  }
  0x94   :  { %s113_s24 = sshll.u32 %s4656_s6, 4  ;;  %s135_s19 = sshll.u32 %s4657_s15, 4  ;;  %s114_s24 = int_to_ptr.vmem [resolvable:$true] %s113_s24  ;;  %s136_s19 = int_to_ptr.vmem [resolvable:$true] %s135_s19 }
  0x95   :  { %s4515_s4 = scalar_lea.hbm %s6074_s7, 12288 }
  0x96   :  { %p4516_p11 = scmp.ne.s32.totalorder %s6074_s7, %s4515_s4  ;;  %p4519_p12 = scmp.lt.u32.totalorder %s4515_s4, %s6074_s7 }
  0x98   :  { %p4521_p13 = pnand %p4519_p12, %p4516_p11 }
  0x9a   :  { %4524 = shalt.err (!%p4521_p13)
}
  0x9b   :  { %s4525_s5 = scalar_lea.vmem %s114_s24, 12288  ;;  %p4530_p1 = scmp.lt.s32.totalorder %s114_s24, %s114_s24 }
  0x9c   :  { %p4526_p0 = scmp.ne.s32.totalorder %s114_s24, %s4525_s5  ;;  %p4531_p2 = scmp.lt.s32.totalorder %s4525_s5, %s4525_s5 }
  0x9e   :  { %p4532_p3 = por %p4531_p2, %p4530_p1 }
  0xa0   :  { %p4533_p4 = pnand %p4532_p3, %p4526_p0 }
  0xa2   :  { %4536 = shalt.err (!%p4533_p4)
}
  0xa3   :  { %119 = dma.hbm_to_vmem [thread:$0]  %s6074_s7, 12288, %s114_s24, [#allocation14], %s4652_s0, %s4652_s0, %s4653_s22  }
  0xa4   :  { %s4537_s27 = scalar_lea.hbm %s6076_s9, 2048 }
  0xa5   :  { %p4538_p5 = scmp.ne.s32.totalorder %s6076_s9, %s4537_s27  ;;  %p4541_p6 = scmp.lt.u32.totalorder %s4537_s27, %s6076_s9 }
  0xa7   :  { %p4543_p7 = pnand %p4541_p6, %p4538_p5 }
  0xa9   :  { %4546 = shalt.err (!%p4543_p7)
}
  0xaa   :  { %s4547_s3 = scalar_lea.vmem %s136_s19, 2048  ;;  %p4552_p9 = scmp.lt.s32.totalorder %s136_s19, %s136_s19 }
  0xab   :  { %p4548_p8 = scmp.ne.s32.totalorder %s136_s19, %s4547_s3  ;;  %p4553_p10 = scmp.lt.s32.totalorder %s4547_s3, %s4547_s3 }
  0xad   :  { %p4554_p11 = por %p4553_p10, %p4552_p9 }
  0xaf   :  { %p4555_p12 = pnand %p4554_p11, %p4548_p8 }
  0xb1   :  { %4558 = shalt.err (!%p4555_p12)
}
  0xb2   :  { %141 = dma.hbm_to_vmem [thread:$0]  %s6076_s9, 2048, %s136_s19, [#allocation17], %s4652_s0, %s4652_s0, %s4653_s22  }
  0xb3   :  { %s4658_s6 = smov [#allocation21]   ;;  %s4659_s15 = smov [#allocation22]  }
  0xb4   :  { %s157_s24 = sshll.u32 %s4658_s6, 4  ;;  %s170_s20 = sshll.u32 %s4659_s15, 4  ;;  %s158_s24 = int_to_ptr.vmem [resolvable:$true] %s157_s24  ;;  %s171_s20 = int_to_ptr.vmem [resolvable:$true] %s170_s20 }
  0xb5   :  { %s4559_s28 = scalar_lea.hbm %s6078_s11, 2048 }
  0xb6   :  { %p4560_p13 = scmp.ne.s32.totalorder %s6078_s11, %s4559_s28  ;;  %p4563_p0 = scmp.lt.u32.totalorder %s4559_s28, %s6078_s11 }
  0xb8   :  { %p4565_p1 = pnand %p4563_p0, %p4560_p13 }
  0xba   :  { %4568 = shalt.err (!%p4565_p1)
}
  0xbb   :  { %s4569_s9 = scalar_lea.vmem %s158_s24, 2048  ;;  %p4574_p3 = scmp.lt.s32.totalorder %s158_s24, %s158_s24 }
  0xbc   :  { %p4570_p2 = scmp.ne.s32.totalorder %s158_s24, %s4569_s9  ;;  %p4575_p4 = scmp.lt.s32.totalorder %s4569_s9, %s4569_s9 }
  0xbe   :  { %p4576_p5 = por %p4575_p4, %p4574_p3 }
  0xc0   :  { %p4577_p6 = pnand %p4576_p5, %p4570_p2 }
  0xc2   :  { %4580 = shalt.err (!%p4577_p6)
}
  0xc3   :  { %163 = dma.hbm_to_vmem [thread:$0]  %s6078_s11, 2048, %s158_s24, [#allocation20], %s4652_s0, %s4652_s0, %s4653_s22  }
  0xc4   :  { %s4581_s26 = scalar_lea.hbm %s6079_s12, 16 }
  0xc5   :  { %p4582_p7 = scmp.ne.s32.totalorder %s6079_s12, %s4581_s26  ;;  %p4585_p8 = scmp.lt.u32.totalorder %s4581_s26, %s6079_s12 }
  0xc7   :  { %p4587_p9 = pnand %p4585_p8, %p4582_p7 }
  0xc9   :  { %4590 = shalt.err (!%p4587_p9)
}
  0xca   :  { %s4591_s17 = scalar_lea.vmem %s171_s20, 16  ;;  %s4595_s3 = scalar_lea.vmem %s171_s20, 32 }
  0xcb   :  { %p4592_p10 = scmp.ne.s32.totalorder %s171_s20, %s4591_s17  ;;  %p4596_p11 = scmp.lt.s32.totalorder %s171_s20, %s171_s20 }
  0xcc   :  { %p4597_p12 = scmp.lt.s32.totalorder %s4595_s3, %s4591_s17 }
  0xce   :  { %p4598_p13 = por %p4597_p12, %p4596_p11 }
  0xd0   :  { %p4599_p0 = pnand %p4598_p13, %p4592_p10 }
  0xd2   :  { %4602 = shalt.err (!%p4599_p0)
}
  0xd3   :  { %173 = dma.hbm_to_vmem [thread:$0]  %s6079_s12, 16, %s171_s20, [#allocation23]  }
  0xd4   :  { %4625 = dma.done.wait [#allocation5], 16  }
  0xd5   :  { %4626 = vsyncadd [#allocation5], 4294967280 }
  0xd6   :  { %4627 = dma.done.wait [#allocation3], 98304  }
  0xd7   :  { %4628 = vsyncadd [#allocation3], 4294868992 }
  0xd8   :  { %4629 = dma.done.wait [#allocation8], 16512  }
  0xd9   :  { %4630 = vsyncadd [#allocation8], 4294950784 }
  0xda   :  { %4631 = dma.done.wait [#allocation11], 16512  }
  0xdb   :  { %4632 = vsyncadd [#allocation11], 4294950784 }
  0xdc   :  { %4633 = dma.done.wait [#allocation14], 12416  }
  0xdd   :  { %4634 = vsyncadd [#allocation14], 4294954880 }
  0xde   :  { %4635 = dma.done.wait [#allocation17], 2064  }
  0xdf   :  { %4636 = vsyncadd [#allocation17], 4294965232 }
  0xe0   :  { %4637 = dma.done.wait [#allocation20], 2064  }
  0xe1   :  { %4638 = vsyncadd [#allocation20], 4294965232 }
  0xe2   :  { %4639 = dma.done.wait [#allocation23], 16  }
  0xe3   :  { %4640 = vsyncadd [#allocation23], 4294967280 }
  0xe4   :  { %215 = sfence }
  0xe5   :  { %s312_s22 = sld [smem:[#allocation2]]  ;;  %s3948_s7 = sld [smem:[#allocation2 + $0x1]]  ;;  %v232_v0 = vld [vmem:[#allocation15 + $0x80] sm:$0xff]  ;;  %v329_v1 = vld [vmem:[#allocation6 + $0x80] sm:$0xff]  ;;  %v330_v2 = vld [vmem:[#allocation6 + $0x88] sm:$0xff]  ;;  %vm4661_vm0 = vmmov 0  }
  0xe6   :  { %s3949_s12 = sld [smem:[#allocation2 + $0x2]]  ;;  %s3950_s18 = sld [smem:[#allocation2 + $0x3]]  ;;  %v620_v3 = vld [vmem:[#allocation6 + $0x380] sm:$0xff]  ;;  %v621_v4 = vld [vmem:[#allocation6 + $0x388] sm:$0xff]  ;;  %v216_v44 = vld [vmem:[#allocation15] sm:$0xff] }
  0xe7   :  { %s4922_s6 = sld [smem:[#allocation2 + $0x4]]  ;;  %s3952_s24 = sld [smem:[#allocation2 + $0x5]]  ;;  %v233_v5 = vld [vmem:[#allocation15 + $0x88] sm:$0xff]  ;;  %v912_v8 = vld [vmem:[#allocation6 + $0x688] sm:$0xff] }
  0xe8   :  { %s4924_s15 = sld [smem:[#allocation2 + $0x6]]  ;;  %s4926_s20 = sld [smem:[#allocation2 + $0x7]]  ;;  %v911_v7 = vld [vmem:[#allocation6 + $0x680] sm:$0xff]  ;;  %v1203_v13 = vld [vmem:[#allocation6 + $0x988] sm:$0xff] }
  0xe9   :  { %v1202_v12 = vld [vmem:[#allocation6 + $0x980] sm:$0xff]  ;;  %v1494_v19 = vld [vmem:[#allocation6 + $0xc88] sm:$0xff] }
  0xea   :  { %v1493_v18 = vld [vmem:[#allocation6 + $0xc80] sm:$0xff]  ;;  %v1785_v25 = vld [vmem:[#allocation6 + $0xf88] sm:$0xff] }
  0xeb   :  { %v4928_v6 = vstv %s312_s22  ;;  %v4932_v11 = vstv %s3948_s7  ;;  %v1784_v24 = vld [vmem:[#allocation6 + $0xf80] sm:$0xff]  ;;  %v2076_v31 = vld [vmem:[#allocation6 + $0x1288] sm:$0xff] }
  0xec   :  { %v426_v9 = vmul.f32 %v4928_v6, %v329_v1  ;;  %v427_v10 = vmul.f32 %v4928_v6, %v330_v2  ;;  %v717_v14 = vmul.f32 %v4932_v11, %v620_v3  ;;  %v718_v15 = vmul.f32 %v4932_v11, %v621_v4  ;;  %v2075_v30 = vld [vmem:[#allocation6 + $0x1280] sm:$0xff]  ;;  %v2367_v37 = vld [vmem:[#allocation6 + $0x1588] sm:$0xff] }
  0xed   :  { %v4936_v16 = vstv %s3949_s12  ;;  %v4938_v17 = vstv %s3950_s18  ;;  %v4945_v28 = vstv %s4922_s6  ;;  %v4947_v29 = vstv %s3952_s24  ;;  %v2366_v32 = vld [vmem:[#allocation6 + $0x1580] sm:$0xff]  ;;  %v314_v39 = vld [vmem:[#allocation6 + $0x8] sm:$0xff] }
  0xee   :  { %v522_v20 = vadd.f32 %v426_v9, %v232_v0  ;;  %v523_v21 = vadd.f32 %v427_v10, %v233_v5  ;;  %v1008_v22 = vmul.f32 %v4936_v16, %v911_v7  ;;  %v1009_v23 = vmul.f32 %v4936_v16, %v912_v8  ;;  %v313_v38 = vld [vmem:[#allocation6] sm:$0xff]  ;;  %v605_v46 = vld [vmem:[#allocation6 + $0x308] sm:$0xff] }
  0xef   :  { %v1299_v26 = vmul.f32 %v4938_v17, %v1202_v12  ;;  %v1300_v27 = vmul.f32 %v4938_v17, %v1203_v13  ;;  %v1590_v35 = vmul.f32 %v4945_v28, %v1493_v18  ;;  %v1591_v36 = vmul.f32 %v4945_v28, %v1494_v19  ;;  %v604_v45 = vld [vmem:[#allocation6 + $0x300] sm:$0xff]  ;;  %v896_v53 = vld [vmem:[#allocation6 + $0x608] sm:$0xff] }
  0xf0   :  { %v813_v33 = vadd.f32 %v717_v14, %v522_v20  ;;  %v814_v34 = vadd.f32 %v718_v15, %v523_v21  ;;  %v1881_v40 = vmul.f32 %v4947_v29, %v1784_v24  ;;  %v1882_v41 = vmul.f32 %v4947_v29, %v1785_v25  ;;  %v217_v51 = vld [vmem:[#allocation15 + $0x8] sm:$0xff]  ;;  %v1187_v59 = vld [vmem:[#allocation6 + $0x908] sm:$0xff] }
  0xf1   :  { %v4954_v42 = vstv %s4924_s15  ;;  %v4957_v43 = vstv %s4926_s20  ;;  %v895_v52 = vld [vmem:[#allocation6 + $0x600] sm:$0xff]  ;;  %v410_v56 = vmul.f32 %v4928_v6, %v313_v38  ;;  %v411_v57 = vmul.f32 %v4928_v6, %v314_v39  ;;  %v1478_v1 = vld [vmem:[#allocation6 + $0xc08] sm:$0xff] }
  0xf2   :  { %v1104_v47 = vadd.f32 %v1008_v22, %v813_v33  ;;  %v1105_v48 = vadd.f32 %v1009_v23, %v814_v34  ;;  %v2172_v49 = vmul.f32 %v4954_v42, %v2075_v30  ;;  %v2173_v50 = vmul.f32 %v4954_v42, %v2076_v31  ;;  %v1186_v58 = vld [vmem:[#allocation6 + $0x900] sm:$0xff]  ;;  %v1769_v8 = vld [vmem:[#allocation6 + $0xf08] sm:$0xff] }
  0xf3   :  { %v2463_v54 = vmul.f32 %v4957_v43, %v2366_v32  ;;  %v2464_v55 = vmul.f32 %v4957_v43, %v2367_v37  ;;  %v701_v62 = vmul.f32 %v4932_v11, %v604_v45  ;;  %v702_v63 = vmul.f32 %v4932_v11, %v605_v46  ;;  %v1477_v0 = vld [vmem:[#allocation6 + $0xc00] sm:$0xff]  ;;  %v2060_v15 = vld [vmem:[#allocation6 + $0x1208] sm:$0xff] }
  0xf4   :  { %v1395_v60 = vadd.f32 %v1299_v26, %v1104_v47  ;;  %v1396_v61 = vadd.f32 %v1300_v27, %v1105_v48  ;;  %v506_v2 = vadd.f32 %v410_v56, %v216_v44  ;;  %v507_v3 = vadd.f32 %v411_v57, %v217_v51  ;;  %v1768_v7 = vld [vmem:[#allocation6 + $0xf00] sm:$0xff]  ;;  %v2351_v23 = vld [vmem:[#allocation6 + $0x1508] sm:$0xff] }
  0xf5   :  { %v992_v4 = vmul.f32 %v4936_v16, %v895_v52  ;;  %v993_v5 = vmul.f32 %v4936_v16, %v896_v53  ;;  %v1283_v12 = vmul.f32 %v4938_v17, %v1186_v58  ;;  %v1284_v13 = vmul.f32 %v4938_v17, %v1187_v59  ;;  %v2059_v14 = vld [vmem:[#allocation6 + $0x1200] sm:$0xff]  ;;  %v362_v31 = vld [vmem:[#allocation6 + $0x188] sm:$0xff] }
  0xf6   :  { %v1686_v9 = vadd.f32 %v1590_v35, %v1395_v60  ;;  %v1687_v10 = vadd.f32 %v1591_v36, %v1396_v61  ;;  %v797_v18 = vadd.f32 %v701_v62, %v506_v2  ;;  %v798_v19 = vadd.f32 %v702_v63, %v507_v3  ;;  %v2350_v22 = vld [vmem:[#allocation6 + $0x1500] sm:$0xff]  ;;  %v653_v37 = vld [vmem:[#allocation6 + $0x488] sm:$0xff] }
  0xf7   :  { %v1574_v20 = vmul.f32 %v4945_v28, %v1477_v0  ;;  %v1575_v21 = vmul.f32 %v4945_v28, %v1478_v1  ;;  %v1865_v26 = vmul.f32 %v4947_v29, %v1768_v7  ;;  %v1866_v27 = vmul.f32 %v4947_v29, %v1769_v8  ;;  %v361_v30 = vld [vmem:[#allocation6 + $0x180] sm:$0xff]  ;;  %v944_v53 = vld [vmem:[#allocation6 + $0x788] sm:$0xff] }
  0xf8   :  { %v1977_v24 = vadd.f32 %v1881_v40, %v1686_v9  ;;  %v1978_v25 = vadd.f32 %v1882_v41, %v1687_v10  ;;  %v1088_v32 = vadd.f32 %v992_v4, %v797_v18  ;;  %v1089_v33 = vadd.f32 %v993_v5, %v798_v19  ;;  %v652_v36 = vld [vmem:[#allocation6 + $0x480] sm:$0xff]  ;;  %v264_v41 = vld [vmem:[#allocation15 + $0x180] sm:$0xff]  ;;  %v1235_v63 = vld [vmem:[#allocation6 + $0xa88] sm:$0xff] }
  0xf9   :  { %v2156_v34 = vmul.f32 %v4954_v42, %v2059_v14  ;;  %v2157_v35 = vmul.f32 %v4954_v42, %v2060_v15  ;;  %v2447_v44 = vmul.f32 %v4957_v43, %v2350_v22  ;;  %v2448_v40 = vmul.f32 %v4957_v43, %v2351_v23  ;;  %v265_v45 = vld [vmem:[#allocation15 + $0x188] sm:$0xff]  ;;  %v1526_v1 = vld [vmem:[#allocation6 + $0xd88] sm:$0xff] }
  0xfa   :  { %v2268_v38 = vadd.f32 %v2172_v49, %v1977_v24  ;;  %v2269_v39 = vadd.f32 %v2173_v50, %v1978_v25  ;;  %v1379_v46 = vadd.f32 %v1283_v12, %v1088_v32  ;;  %v1380_v47 = vadd.f32 %v1284_v13, %v1089_v33  ;;  %v943_v52 = vld [vmem:[#allocation6 + $0x780] sm:$0xff]  ;;  %v1817_v10 = vld [vmem:[#allocation6 + $0x1088] sm:$0xff]  ;;  %v248_v33 = vld [vmem:[#allocation15 + $0x100] sm:$0xff] }
  0xfb   :  { %v458_v48 = vmul.f32 %v4928_v6, %v361_v30  ;;  %v459_v51 = vmul.f32 %v4928_v6, %v362_v31  ;;  %v1234_v56 = vld [vmem:[#allocation6 + $0xa80] sm:$0xff]  ;;  %v749_v49 = vmul.f32 %v4932_v11, %v652_v36  ;;  %v750_v50 = vmul.f32 %v4932_v11, %v653_v37  ;;  %v2108_v13 = vld [vmem:[#allocation6 + $0x1388] sm:$0xff] }
  0xfc   :  { %v2559_v57 = vadd.f32 %v2463_v54, %v2268_v38  ;;  %v2560_v58 = vadd.f32 %v2464_v55, %v2269_v39  ;;  %v1670_v59 = vadd.f32 %v1574_v20, %v1379_v46  ;;  %v1671_v60 = vadd.f32 %v1575_v21, %v1380_v47  ;;  %v1525_v0 = vld [vmem:[#allocation6 + $0xd80] sm:$0xff]  ;;  %v346_v25 = vld [vmem:[#allocation6 + $0x108] sm:$0xff] }
  0xfd   :  { %v554_v61 = vadd.f32 %v458_v48, %v264_v41  ;;  %v555_v62 = vadd.f32 %v459_v51, %v265_v45  ;;  %v1040_v3 = vmul.f32 %v4936_v16, %v943_v52  ;;  %v1041_v4 = vmul.f32 %v4936_v16, %v944_v53  ;;  %v1816_v54 = vld [vmem:[#allocation6 + $0x1080] sm:$0xff]  ;;  %v637_v36 = vld [vmem:[#allocation6 + $0x408] sm:$0xff] }
  0xfe   :  { %v4164_v2 = vpack.c.bf16 %v2560_v58, %v2559_v57  ;;  %v1331_v5 = vmul.f32 %v4938_v17, %v1234_v56  ;;  %v1961_v55 = vadd.f32 %v1865_v26, %v1670_v59  ;;  %v1962_v7 = vadd.f32 %v1866_v27, %v1671_v60  ;;  %v2107_v12 = vld [vmem:[#allocation6 + $0x1380] sm:$0xff]  ;;  %v928_v45 = vld [vmem:[#allocation6 + $0x708] sm:$0xff] }
  0xff   :  { %v845_v8 = vadd.f32 %v749_v49, %v554_v61  ;;  %v846_v9 = vadd.f32 %v750_v50, %v555_v62  ;;  %v1332_v14 = vmul.f32 %v4938_v17, %v1235_v63  ;;  %v1622_v15 = vmul.f32 %v4945_v28, %v1525_v0  ;;  %v2398_v19 = vld [vmem:[#allocation6 + $0x1680] sm:$0xff]  ;;  %v2399_v46 = vld [vmem:[#allocation6 + $0x1688] sm:$0xff] }
 0x100   :  { %4165 = vmatprep.subr.bf16.mxu0 %v4164_v2  ;;  %v1623_v18 = vmul.f32 %v4945_v28, %v1526_v1  ;;  %v2252_v20 = vadd.f32 %v2156_v34, %v1961_v55  ;;  %v2253_v21 = vadd.f32 %v2157_v35, %v1962_v7  ;;  %v345_v24 = vld [vmem:[#allocation6 + $0x100] sm:$0xff]  ;;  %v1913_v27 = vmul.f32 %v4947_v29, %v1816_v54  ;;  %v1510_v62 = vld [vmem:[#allocation6 + $0xd08] sm:$0xff] }
 0x101   :  { %v1136_v22 = vadd.f32 %v1040_v3, %v845_v8  ;;  %v1137_v23 = vadd.f32 %v1041_v4, %v846_v9  ;;  %v636_v26 = vld [vmem:[#allocation6 + $0x400] sm:$0xff]  ;;  %v1914_v30 = vmul.f32 %v4947_v29, %v1817_v10  ;;  %v2204_v31 = vmul.f32 %v4954_v42, %v2107_v12  ;;  %v1801_v4 = vld [vmem:[#allocation6 + $0x1008] sm:$0xff] }
 0x102   :  { %v2205_v32 = vmul.f32 %v4954_v42, %v2108_v13  ;;  %v2543_v37 = vadd.f32 %v2447_v44, %v2252_v20  ;;  %v2544_v38 = vadd.f32 %v2448_v40, %v2253_v21  ;;  %v249_v35 = vld [vmem:[#allocation15 + $0x108] sm:$0xff]  ;;  %v2495_v47 = vmul.f32 %v4957_v43, %v2398_v19  ;;  %v1219_v40 = vld [vmem:[#allocation6 + $0xa08] sm:$0xff]  ;;  %v332_v19 = vld [vmem:[#allocation6 + $0x98] sm:$0xff] }
 0x103   :  { %v1427_v39 = vadd.f32 %v1331_v5, %v1136_v22  ;;  %v1428_v34 = vadd.f32 %v1332_v14, %v1137_v23  ;;  %v927_v41 = vld [vmem:[#allocation6 + $0x700] sm:$0xff]  ;;  %v442_v48 = vmul.f32 %v4928_v6, %v345_v24  ;;  %v443_v51 = vmul.f32 %v4928_v6, %v346_v25  ;;  %v2092_v9 = vld [vmem:[#allocation6 + $0x1308] sm:$0xff]  ;;  %v622_v24 = vld [vmem:[#allocation6 + $0x390] sm:$0xff] }
 0x104   :  { %v733_v52 = vmul.f32 %v4932_v11, %v636_v26  ;;  %v1218_v53 = vld [vmem:[#allocation6 + $0xa00] sm:$0xff]  ;;  %v4166_v56 = vpack.c.bf16 %v2544_v38, %v2543_v37  ;;  %v734_v44 = vmul.f32 %v4932_v11, %v637_v36  ;;  %v1024_v60 = vmul.f32 %v4936_v16, %v927_v41  ;;  %v623_v25 = vld [vmem:[#allocation6 + $0x398] sm:$0xff]  ;;  %v913_v26 = vld [vmem:[#allocation6 + $0x690] sm:$0xff] }
 0x105   :  { %v1718_v57 = vadd.f32 %v1622_v15, %v1427_v39  ;;  %v1719_v58 = vadd.f32 %v1623_v18, %v1428_v34  ;;  %v1509_v49 = vld [vmem:[#allocation6 + $0xd00] sm:$0xff]  ;;  %v538_v50 = vadd.f32 %v442_v48, %v248_v33  ;;  %v539_v59 = vadd.f32 %v443_v51, %v249_v35  ;;  %v331_v18 = vld [vmem:[#allocation6 + $0x90] sm:$0xff]  ;;  %v234_v36 = vld [vmem:[#allocation15 + $0x90] sm:$0xff] }
 0x106   :  { %v1025_v61 = vmul.f32 %v4936_v16, %v928_v45  ;;  %v1800_v63 = vld [vmem:[#allocation6 + $0x1000] sm:$0xff]  ;;  %4167 = vmatpush3.bf16.msra.mxu0 %v4166_v56  ;;  %v2496_v2 = vmul.f32 %v4957_v43, %v2399_v46  ;;  %v1315_v3 = vmul.f32 %v4938_v17, %v1218_v53  ;;  %v1316_v7 = vmul.f32 %v4938_v17, %v1219_v40  ;;  %v235_v37 = vld [vmem:[#allocation15 + $0x98] sm:$0xff]  ;;  %v914_v41 = vld [vmem:[#allocation6 + $0x698] sm:$0xff] }
 0x107   :  { %v2009_v0 = vadd.f32 %v1913_v27, %v1718_v57  ;;  %v2010_v1 = vadd.f32 %v1914_v30, %v1719_v58  ;;  %v2091_v5 = vld [vmem:[#allocation6 + $0x1300] sm:$0xff]  ;;  %v829_v54 = vadd.f32 %v733_v52, %v538_v50  ;;  %v830_v55 = vadd.f32 %v734_v44, %v539_v59  ;;  %v1204_v45 = vld [vmem:[#allocation6 + $0x990] sm:$0xff]  ;;  %v1205_v46 = vld [vmem:[#allocation6 + $0x998] sm:$0xff] }
 0x108   :  { %v1606_v8 = vmul.f32 %v4945_v28, %v1509_v49  ;;  %v2382_v10 = vld [vmem:[#allocation6 + $0x1600] sm:$0xff]  ;;  %v1607_v14 = vmul.f32 %v4945_v28, %v1510_v62  ;;  %v1897_v15 = vmul.f32 %v4947_v29, %v1800_v63  ;;  %v1898_v22 = vmul.f32 %v4947_v29, %v1801_v4  ;;  %v1495_v53 = vld [vmem:[#allocation6 + $0xc90] sm:$0xff]  ;;  %v1496_v40 = vld [vmem:[#allocation6 + $0xc98] sm:$0xff] }
 0x109   :  { %v2300_v12 = vadd.f32 %v2204_v31, %v2009_v0  ;;  %v2301_v13 = vadd.f32 %v2205_v32, %v2010_v1  ;;  %v1120_v20 = vadd.f32 %v1024_v60, %v829_v54  ;;  %v1121_v21 = vadd.f32 %v1025_v61, %v830_v55  ;;  %v2383_v32 = vld [vmem:[#allocation6 + $0x1608] sm:$0xff]  ;;  %v1786_v49 = vld [vmem:[#allocation6 + $0xf90] sm:$0xff]  ;;  %v1787_v50 = vld [vmem:[#allocation6 + $0xf98] sm:$0xff] }
 0x10a   :  { %v2188_v23 = vmul.f32 %v4954_v42, %v2091_v5  ;;  %v2189_v31 = vmul.f32 %v4954_v42, %v2092_v9  ;;  %v2479_v33 = vmul.f32 %v4957_v43, %v2382_v10  ;;  %v428_v34 = vmul.f32 %v4928_v6, %v331_v18  ;;  %v2077_v63 = vld [vmem:[#allocation6 + $0x1290] sm:$0xff]  ;;  %v2078_v4 = vld [vmem:[#allocation6 + $0x1298] sm:$0xff]  ;;  %v218_v10 = vld [vmem:[#allocation15 + $0x10] sm:$0xff] }
 0x10b   :  { %v2591_v27 = vadd.f32 %v2495_v47, %v2300_v12  ;;  %v2592_v30 = vadd.f32 %v2496_v2, %v2301_v13  ;;  %v1411_v38 = vadd.f32 %v1315_v3, %v1120_v20  ;;  %v1412_v39 = vadd.f32 %v1316_v7, %v1121_v21  ;;  %v2368_v5 = vld [vmem:[#allocation6 + $0x1590] sm:$0xff]  ;;  %v607_v20 = vld [vmem:[#allocation6 + $0x318] sm:$0xff] }
 0x10c   :  { %v429_v35 = vmul.f32 %v4928_v6, %v332_v19  ;;  %v719_v47 = vmul.f32 %v4932_v11, %v622_v24  ;;  %v720_v51 = vmul.f32 %v4932_v11, %v623_v25  ;;  %v1010_v52 = vmul.f32 %v4936_v16, %v913_v26  ;;  %v315_v54 = vld [vmem:[#allocation6 + $0x10] sm:$0xff] }
 0x10d   :  { %v4196_v48 = vpack.c.bf16 %v2592_v30, %v2591_v27  ;;  %v1702_v56 = vadd.f32 %v1606_v8, %v1411_v38  ;;  %v1703_v57 = vadd.f32 %v1607_v14, %v1412_v39  ;;  %v524_v58 = vadd.f32 %v428_v34, %v234_v36  ;;  %v606_v19 = vld [vmem:[#allocation6 + $0x310] sm:$0xff]  ;;  %v2369_v38 = vld [vmem:[#allocation6 + $0x1598] sm:$0xff] }
 0x10e   :  { %v525_v44 = vadd.f32 %v429_v35, %v235_v37  ;;  %v2480_v59 = vmul.f32 %v4957_v43, %v2383_v32  ;;  %v1011_v60 = vmul.f32 %v4936_v16, %v914_v41  ;;  %v1301_v61 = vmul.f32 %v4938_v17, %v1204_v45  ;;  %v897_v26 = vld [vmem:[#allocation6 + $0x610] sm:$0xff]  ;;  %v1189_v45 = vld [vmem:[#allocation6 + $0x918] sm:$0xff] }
 0x10f   :  { %4197 = vmatprep.subr.bf16.mxu1 %v4196_v48  ;;  %v1302_v62 = vmul.f32 %v4938_v17, %v1205_v46  ;;  %v1993_v0 = vadd.f32 %v1897_v15, %v1702_v56  ;;  %v1994_v1 = vadd.f32 %v1898_v22, %v1703_v57  ;;  %v815_v2 = vadd.f32 %v719_v47, %v524_v58  ;;  %v316_v15 = vld [vmem:[#allocation6 + $0x18] sm:$0xff]  ;;  %v1188_v37 = vld [vmem:[#allocation6 + $0x910] sm:$0xff] }
 0x110   :  { %v816_v3 = vadd.f32 %v720_v51, %v525_v44  ;;  %v1592_v55 = vmul.f32 %v4945_v28, %v1495_v53  ;;  %v1593_v7 = vmul.f32 %v4945_v28, %v1496_v40  ;;  %v1883_v8 = vmul.f32 %v4947_v29, %v1786_v49  ;;  %v1479_v51 = vld [vmem:[#allocation6 + $0xc10] sm:$0xff]  ;;  %v1771_v40 = vld [vmem:[#allocation6 + $0xf18] sm:$0xff] }
 0x111   :  { %v1884_v9 = vmul.f32 %v4947_v29, %v1787_v50  ;;  %v2284_v12 = vadd.f32 %v2188_v23, %v1993_v0  ;;  %v2285_v13 = vadd.f32 %v2189_v31, %v1994_v1  ;;  %v1106_v14 = vadd.f32 %v1010_v52, %v815_v2  ;;  %v219_v23 = vld [vmem:[#allocation15 + $0x18] sm:$0xff]  ;;  %v898_v31 = vld [vmem:[#allocation6 + $0x618] sm:$0xff] }
 0x112   :  { %v1107_v18 = vadd.f32 %v1011_v60, %v816_v3  ;;  %v2174_v21 = vmul.f32 %v4954_v42, %v2077_v63  ;;  %v2175_v22 = vmul.f32 %v4954_v42, %v2078_v4  ;;  %v2465_v24 = vmul.f32 %v4957_v43, %v2368_v5  ;;  %v1480_v52 = vld [vmem:[#allocation6 + $0xc18] sm:$0xff]  ;;  %v1770_v44 = vld [vmem:[#allocation6 + $0xf10] sm:$0xff] }
 0x113   :  { %v412_v25 = vmul.f32 %v4928_v6, %v315_v54  ;;  %v2575_v27 = vadd.f32 %v2479_v33, %v2284_v12  ;;  %v2576_v30 = vadd.f32 %v2480_v59, %v2285_v13  ;;  %v1397_v32 = vadd.f32 %v1301_v61, %v1106_v14  ;;  %v2061_v61 = vld [vmem:[#allocation6 + $0x1210] sm:$0xff] }
 0x114   :  { %v1398_v36 = vadd.f32 %v1302_v62, %v1107_v18  ;;  %v413_v39 = vmul.f32 %v4928_v6, %v316_v15  ;;  %v703_v35 = vmul.f32 %v4932_v11, %v606_v19  ;;  %v704_v41 = vmul.f32 %v4932_v11, %v607_v20  ;;  %v2062_v62 = vld [vmem:[#allocation6 + $0x1218] sm:$0xff]  ;;  %v2352_v3 = vld [vmem:[#allocation6 + $0x1510] sm:$0xff]  ;;  %v266_v18 = vld [vmem:[#allocation15 + $0x190] sm:$0xff] }
 0x115   :  { %v508_v34 = vadd.f32 %v412_v25, %v218_v10  ;;  %v4198_v46 = vpack.c.bf16 %v2576_v30, %v2575_v27  ;;  %v1688_v48 = vadd.f32 %v1592_v55, %v1397_v32  ;;  %v994_v33 = vmul.f32 %v4936_v16, %v897_v26  ;;  %v363_v4 = vld [vmem:[#allocation6 + $0x190] sm:$0xff]  ;;  %v655_v15 = vld [vmem:[#allocation6 + $0x498] sm:$0xff] }
 0x116   :  { %v1689_v47 = vadd.f32 %v1593_v7, %v1398_v36  ;;  %v509_v53 = vadd.f32 %v413_v39, %v219_v23  ;;  %v995_v57 = vmul.f32 %v4936_v16, %v898_v31  ;;  %v1285_v58 = vmul.f32 %v4938_v17, %v1188_v37  ;;  %v945_v19 = vld [vmem:[#allocation6 + $0x790] sm:$0xff]  ;;  %v946_v27 = vld [vmem:[#allocation6 + $0x798] sm:$0xff] }
 0x117   :  { %v799_v56 = vadd.f32 %v703_v35, %v508_v34  ;;  %4199 = vmatpush3.bf16.msra.mxu1 %v4198_v46  ;;  %v1979_v49 = vadd.f32 %v1883_v8, %v1688_v48  ;;  %v2466_v59 = vmul.f32 %v4957_v43, %v2369_v38  ;;  %v1286_v60 = vmul.f32 %v4938_v17, %v1189_v45  ;;  %v364_v8 = vld [vmem:[#allocation6 + $0x198] sm:$0xff]  ;;  %v1236_v37 = vld [vmem:[#allocation6 + $0xa90] sm:$0xff] }
 0x118   :  { %v1980_v50 = vadd.f32 %v1884_v9, %v1689_v47  ;;  %v800_v63 = vadd.f32 %v704_v41, %v509_v53  ;;  %v1576_v1 = vmul.f32 %v4945_v28, %v1479_v51  ;;  %v1577_v2 = vmul.f32 %v4945_v28, %v1480_v52  ;;  %v654_v9 = vld [vmem:[#allocation6 + $0x490] sm:$0xff]  ;;  %v2353_v36 = vld [vmem:[#allocation6 + $0x1518] sm:$0xff] }
 0x119   :  { %v1090_v0 = vadd.f32 %v994_v33, %v799_v56  ;;  %v2270_v5 = vadd.f32 %v2174_v21, %v1979_v49  ;;  %v1867_v55 = vmul.f32 %v4947_v29, %v1770_v44  ;;  %v1868_v7 = vmul.f32 %v4947_v29, %v1771_v40  ;;  %v1237_v38 = vld [vmem:[#allocation6 + $0xa98] sm:$0xff]  ;;  %v1527_v41 = vld [vmem:[#allocation6 + $0xd90] sm:$0xff] }
 0x11a   :  { %v2271_v54 = vadd.f32 %v2175_v22, %v1980_v50  ;;  %v1091_v10 = vadd.f32 %v995_v57, %v800_v63  ;;  %v2158_v13 = vmul.f32 %v4954_v42, %v2061_v61  ;;  %v2159_v14 = vmul.f32 %v4954_v42, %v2062_v62  ;;  %v267_v22 = vld [vmem:[#allocation15 + $0x198] sm:$0xff]  ;;  %v1528_v33 = vld [vmem:[#allocation6 + $0xd98] sm:$0xff] }
 0x11b   :  { %v1381_v12 = vadd.f32 %v1285_v58, %v1090_v0  ;;  %v2561_v20 = vadd.f32 %v2465_v24, %v2270_v5  ;;  %v2449_v21 = vmul.f32 %v4957_v43, %v2352_v3  ;;  %v460_v26 = vmul.f32 %v4928_v6, %v363_v4  ;;  %v1818_v51 = vld [vmem:[#allocation6 + $0x1090] sm:$0xff]  ;;  %v1819_v52 = vld [vmem:[#allocation6 + $0x1098] sm:$0xff] }
 0x11c   :  { %v2562_v25 = vadd.f32 %v2466_v59, %v2271_v54  ;;  %v1382_v30 = vadd.f32 %v1286_v60, %v1091_v10  ;;  %v461_v23 = vmul.f32 %v4928_v6, %v364_v8  ;;  %v751_v31 = vmul.f32 %v4932_v11, %v654_v9  ;;  %v2109_v44 = vld [vmem:[#allocation6 + $0x1390] sm:$0xff]  ;;  %v2110_v60 = vld [vmem:[#allocation6 + $0x1398] sm:$0xff]  ;;  %v250_v8 = vld [vmem:[#allocation15 + $0x110] sm:$0xff] }
 0x11d   :  { %v1672_v32 = vadd.f32 %v1576_v1, %v1381_v12  ;;  %v556_v34 = vadd.f32 %v460_v26, %v266_v18  ;;  %v752_v24 = vmul.f32 %v4932_v11, %v655_v15  ;;  %v1042_v35 = vmul.f32 %v4936_v16, %v945_v19  ;;  %v2400_v61 = vld [vmem:[#allocation6 + $0x1690] sm:$0xff]  ;;  %v348_v3 = vld [vmem:[#allocation6 + $0x118] sm:$0xff] }
 0x11e   :  { %v4168_v39 = vpack.c.bf16 %v2562_v25, %v2561_v20  ;;  %v1673_v45 = vadd.f32 %v1577_v2, %v1382_v30  ;;  %v557_v48 = vadd.f32 %v461_v23, %v267_v22  ;;  %v1043_v47 = vmul.f32 %v4936_v16, %v946_v27  ;;  %v347_v62 = vld [vmem:[#allocation6 + $0x110] sm:$0xff]  ;;  %v639_v9 = vld [vmem:[#allocation6 + $0x418] sm:$0xff] }
 0x11f   :  { %v1963_v46 = vadd.f32 %v1867_v55, %v1672_v32  ;;  %v2450_v53 = vmul.f32 %v4957_v43, %v2353_v36  ;;  %v847_v56 = vadd.f32 %v751_v31, %v556_v34  ;;  %v1333_v57 = vmul.f32 %v4938_v17, %v1236_v37  ;;  %v638_v4 = vld [vmem:[#allocation6 + $0x410] sm:$0xff]  ;;  %v930_v20 = vld [vmem:[#allocation6 + $0x718] sm:$0xff] }
 0x120   :  { %4169 = vmatprep.subr.bf16.mxu0 %v4168_v39  ;;  %v1334_v58 = vmul.f32 %v4938_v17, %v1237_v38  ;;  %v1964_v40 = vadd.f32 %v1868_v7, %v1673_v45  ;;  %v848_v50 = vadd.f32 %v752_v24, %v557_v48  ;;  %v1624_v59 = vmul.f32 %v4945_v28, %v1527_v41  ;;  %v929_v10 = vld [vmem:[#allocation6 + $0x710] sm:$0xff]  ;;  %v2401_v26 = vld [vmem:[#allocation6 + $0x1698] sm:$0xff] }
 0x121   :  { %v2254_v49 = vadd.f32 %v2158_v13, %v1963_v46  ;;  %v1138_v63 = vadd.f32 %v1042_v35, %v847_v56  ;;  %v1625_v0 = vmul.f32 %v4945_v28, %v1528_v33  ;;  %v1915_v1 = vmul.f32 %v4947_v29, %v1818_v51  ;;  %v251_v15 = vld [vmem:[#allocation15 + $0x118] sm:$0xff]  ;;  %v1221_v31 = vld [vmem:[#allocation6 + $0xa18] sm:$0xff] }
 0x122   :  { %v1916_v2 = vmul.f32 %v4947_v29, %v1819_v52  ;;  %v2255_v5 = vadd.f32 %v2159_v14, %v1964_v40  ;;  %v1139_v55 = vadd.f32 %v1043_v47, %v848_v50  ;;  %v2206_v7 = vmul.f32 %v4954_v42, %v2109_v44  ;;  %v1220_v27 = vld [vmem:[#allocation6 + $0xa10] sm:$0xff]  ;;  %v1512_v35 = vld [vmem:[#allocation6 + $0xd18] sm:$0xff] }
 0x123   :  { %v2545_v54 = vadd.f32 %v2449_v21, %v2254_v49  ;;  %v1429_v12 = vadd.f32 %v1333_v57, %v1138_v63  ;;  %v2207_v13 = vmul.f32 %v4954_v42, %v2110_v60  ;;  %v2497_v18 = vmul.f32 %v4957_v43, %v2400_v61  ;;  %v1511_v37 = vld [vmem:[#allocation6 + $0xd10] sm:$0xff]  ;;  %v1803_v33 = vld [vmem:[#allocation6 + $0x1018] sm:$0xff]  ;;  %v333_v60 = vld [vmem:[#allocation6 + $0xa0] sm:$0xff] }
 0x124   :  { %v444_v19 = vmul.f32 %v4928_v6, %v347_v62  ;;  %v2546_v25 = vadd.f32 %v2450_v53, %v2255_v5  ;;  %v1430_v22 = vadd.f32 %v1334_v58, %v1139_v55  ;;  %v445_v14 = vmul.f32 %v4928_v6, %v348_v3  ;;  %v1802_v41 = vld [vmem:[#allocation6 + $0x1010] sm:$0xff]  ;;  %v2094_v58 = vld [vmem:[#allocation6 + $0x1318] sm:$0xff]  ;;  %v334_v61 = vld [vmem:[#allocation6 + $0xa8] sm:$0xff] }
 0x125   :  { %v735_v21 = vmul.f32 %v4932_v11, %v638_v4  ;;  %v1720_v30 = vadd.f32 %v1624_v59, %v1429_v12  ;;  %v736_v36 = vmul.f32 %v4932_v11, %v639_v9  ;;  %v1026_v23 = vmul.f32 %v4936_v16, %v929_v10  ;;  %v2093_v51 = vld [vmem:[#allocation6 + $0x1310] sm:$0xff]  ;;  %v625_v3 = vld [vmem:[#allocation6 + $0x3a8] sm:$0xff]  ;;  %v915_v4 = vld [vmem:[#allocation6 + $0x6a0] sm:$0xff] }
 0x126   :  { %v540_v32 = vadd.f32 %v444_v19, %v250_v8  ;;  %v4170_v38 = vpack.c.bf16 %v2546_v25, %v2545_v54  ;;  %v1721_v39 = vadd.f32 %v1625_v0, %v1430_v22  ;;  %v541_v34 = vadd.f32 %v445_v14, %v251_v15  ;;  %v2384_v44 = vld [vmem:[#allocation6 + $0x1610] sm:$0xff]  ;;  %v236_v8 = vld [vmem:[#allocation15 + $0xa0] sm:$0xff]  ;;  %v237_v9 = vld [vmem:[#allocation15 + $0xa8] sm:$0xff] }
 0x127   :  { %v1027_v24 = vmul.f32 %v4936_v16, %v930_v20  ;;  %v2011_v45 = vadd.f32 %v1915_v1, %v1720_v30  ;;  %v2498_v46 = vmul.f32 %v4957_v43, %v2401_v26  ;;  %v1317_v47 = vmul.f32 %v4938_v17, %v1220_v27  ;;  %v2385_v15 = vld [vmem:[#allocation6 + $0x1618] sm:$0xff]  ;;  %v916_v20 = vld [vmem:[#allocation6 + $0x6a8] sm:$0xff]  ;;  %v1206_v25 = vld [vmem:[#allocation6 + $0x9a0] sm:$0xff] }
 0x128   :  { %v831_v48 = vadd.f32 %v735_v21, %v540_v32  ;;  %4171 = vmatpush3.bf16.msra.mxu0 %v4170_v38  ;;  %v2012_v52 = vadd.f32 %v1916_v2, %v1721_v39  ;;  %v832_v53 = vadd.f32 %v736_v36, %v541_v34  ;;  %v1318_v56 = vmul.f32 %v4938_v17, %v1221_v31  ;;  %v624_v2 = vld [vmem:[#allocation6 + $0x3a0] sm:$0xff]  ;;  %v1207_v21 = vld [vmem:[#allocation6 + $0x9a8] sm:$0xff] }
 0x129   :  { %v1608_v57 = vmul.f32 %v4945_v28, %v1511_v37  ;;  %v2302_v40 = vadd.f32 %v2206_v7, %v2011_v45  ;;  %v1609_v50 = vmul.f32 %v4945_v28, %v1512_v35  ;;  %v1899_v59 = vmul.f32 %v4947_v29, %v1802_v41  ;;  %v1498_v31 = vld [vmem:[#allocation6 + $0xca8] sm:$0xff]  ;;  %v1788_v37 = vld [vmem:[#allocation6 + $0xfa0] sm:$0xff] }
 0x12a   :  { %v1122_v49 = vadd.f32 %v1026_v23, %v831_v48  ;;  %v2303_v62 = vadd.f32 %v2207_v13, %v2012_v52  ;;  %v1123_v63 = vadd.f32 %v1027_v24, %v832_v53  ;;  %v1900_v0 = vmul.f32 %v4947_v29, %v1803_v33  ;;  %v1497_v23 = vld [vmem:[#allocation6 + $0xca0] sm:$0xff]  ;;  %v1789_v35 = vld [vmem:[#allocation6 + $0xfa8] sm:$0xff] }
 0x12b   :  { %v2190_v1 = vmul.f32 %v4954_v42, %v2093_v51  ;;  %v2593_v5 = vadd.f32 %v2497_v18, %v2302_v40  ;;  %v2191_v55 = vmul.f32 %v4954_v42, %v2094_v58  ;;  %v2481_v7 = vmul.f32 %v4957_v43, %v2384_v44  ;;  %v2080_v33 = vld [vmem:[#allocation6 + $0x12a8] sm:$0xff]  ;;  %v2370_v51 = vld [vmem:[#allocation6 + $0x15a0] sm:$0xff] }
 0x12c   :  { %v1413_v54 = vadd.f32 %v1317_v47, %v1122_v49  ;;  %v2594_v10 = vadd.f32 %v2498_v46, %v2303_v62  ;;  %v1414_v12 = vadd.f32 %v1318_v56, %v1123_v63  ;;  %v430_v13 = vmul.f32 %v4928_v6, %v333_v60  ;;  %v2079_v47 = vld [vmem:[#allocation6 + $0x12a0] sm:$0xff]  ;;  %v318_v44 = vld [vmem:[#allocation6 + $0x28] sm:$0xff] }
 0x12d   :  { %v431_v19 = vmul.f32 %v4928_v6, %v334_v61  ;;  %v721_v26 = vmul.f32 %v4932_v11, %v624_v2  ;;  %v722_v18 = vmul.f32 %v4932_v11, %v625_v3  ;;  %v1012_v14 = vmul.f32 %v4936_v16, %v915_v4  ;;  %v317_v58 = vld [vmem:[#allocation6 + $0x20] sm:$0xff]  ;;  %v609_v61 = vld [vmem:[#allocation6 + $0x328] sm:$0xff]  ;;  %v220_v4 = vld [vmem:[#allocation15 + $0x20] sm:$0xff] }
 0x12e   :  { %v1704_v22 = vadd.f32 %v1608_v57, %v1413_v54  ;;  %v4200_v27 = vpack.c.bf16 %v2594_v10, %v2593_v5  ;;  %v1705_v30 = vadd.f32 %v1609_v50, %v1414_v12  ;;  %v526_v32 = vadd.f32 %v430_v13, %v236_v8  ;;  %v608_v60 = vld [vmem:[#allocation6 + $0x320] sm:$0xff]  ;;  %v2371_v2 = vld [vmem:[#allocation6 + $0x15a8] sm:$0xff] }
 0x12f   :  { %v527_v36 = vadd.f32 %v431_v19, %v237_v9  ;;  %v2482_v39 = vmul.f32 %v4957_v43, %v2385_v15  ;;  %v1013_v34 = vmul.f32 %v4936_v16, %v916_v20  ;;  %v1303_v24 = vmul.f32 %v4938_v17, %v1206_v25  ;;  %v899_v62 = vld [vmem:[#allocation6 + $0x620] sm:$0xff]  ;;  %v900_v10 = vld [vmem:[#allocation6 + $0x628] sm:$0xff] }
 0x130   :  { %v1995_v38 = vadd.f32 %v1899_v59, %v1704_v22  ;;  %4201 = vmatprep.subr.bf16.mxu1 %v4200_v27  ;;  %v1996_v41 = vadd.f32 %v1900_v0, %v1705_v30  ;;  %v817_v45 = vadd.f32 %v721_v26, %v526_v32  ;;  %v1304_v48 = vmul.f32 %v4938_v17, %v1207_v21  ;;  %v1190_v12 = vld [vmem:[#allocation6 + $0x920] sm:$0xff]  ;;  %v1191_v20 = vld [vmem:[#allocation6 + $0x928] sm:$0xff] }
 0x131   :  { %v818_v46 = vadd.f32 %v722_v18, %v527_v36  ;;  %v1594_v53 = vmul.f32 %v4945_v28, %v1497_v23  ;;  %v1595_v56 = vmul.f32 %v4945_v28, %v1498_v31  ;;  %v1885_v57 = vmul.f32 %v4947_v29, %v1788_v37  ;;  %v1482_v21 = vld [vmem:[#allocation6 + $0xc28] sm:$0xff]  ;;  %v1772_v27 = vld [vmem:[#allocation6 + $0xf20] sm:$0xff] }
 0x132   :  { %v2286_v52 = vadd.f32 %v2190_v1, %v1995_v38  ;;  %v2287_v40 = vadd.f32 %v2191_v55, %v1996_v41  ;;  %v1108_v49 = vadd.f32 %v1012_v14, %v817_v45  ;;  %v1886_v59 = vmul.f32 %v4947_v29, %v1789_v35  ;;  %v221_v55 = vld [vmem:[#allocation15 + $0x28] sm:$0xff]  ;;  %v1773_v31 = vld [vmem:[#allocation6 + $0xf28] sm:$0xff] }
 0x133   :  { %v1109_v50 = vadd.f32 %v1013_v34, %v818_v46  ;;  %v2176_v0 = vmul.f32 %v4954_v42, %v2079_v47  ;;  %v2177_v1 = vmul.f32 %v4954_v42, %v2080_v33  ;;  %v2467_v3 = vmul.f32 %v4957_v43, %v2370_v51  ;;  %v1481_v14 = vld [vmem:[#allocation6 + $0xc20] sm:$0xff]  ;;  %v2064_v35 = vld [vmem:[#allocation6 + $0x1228] sm:$0xff] }
 0x134   :  { %v2577_v63 = vadd.f32 %v2481_v7, %v2286_v52  ;;  %v2578_v5 = vadd.f32 %v2482_v39, %v2287_v40  ;;  %v1399_v54 = vadd.f32 %v1303_v24, %v1108_v49  ;;  %v414_v9 = vmul.f32 %v4928_v6, %v317_v58  ;;  %v2063_v24 = vld [vmem:[#allocation6 + $0x1220] sm:$0xff] }
 0x135   :  { %v1400_v8 = vadd.f32 %v1304_v48, %v1109_v50  ;;  %v415_v15 = vmul.f32 %v4928_v6, %v318_v44  ;;  %v705_v7 = vmul.f32 %v4932_v11, %v608_v60  ;;  %v706_v13 = vmul.f32 %v4932_v11, %v609_v61  ;;  %v2354_v41 = vld [vmem:[#allocation6 + $0x1520] sm:$0xff]  ;;  %v657_v44 = vld [vmem:[#allocation6 + $0x4a8] sm:$0xff]  ;;  %v268_v60 = vld [vmem:[#allocation15 + $0x1a0] sm:$0xff] }
 0x136   :  { %v996_v19 = vmul.f32 %v4936_v16, %v899_v62  ;;  %v4202_v25 = vpack.c.bf16 %v2578_v5, %v2577_v63  ;;  %v1690_v22 = vadd.f32 %v1594_v53, %v1399_v54  ;;  %v510_v18 = vadd.f32 %v414_v9, %v220_v4  ;;  %v365_v33 = vld [vmem:[#allocation6 + $0x1a0] sm:$0xff]  ;;  %v948_v5 = vld [vmem:[#allocation6 + $0x7a8] sm:$0xff] }
 0x137   :  { %v1691_v26 = vadd.f32 %v1595_v56, %v1400_v8  ;;  %v2468_v30 = vmul.f32 %v4957_v43, %v2371_v2  ;;  %v511_v32 = vadd.f32 %v415_v15, %v221_v55  ;;  %v997_v36 = vmul.f32 %v4936_v16, %v900_v10  ;;  %v656_v58 = vld [vmem:[#allocation6 + $0x4a0] sm:$0xff] }
 0x138   :  { %v1287_v23 = vmul.f32 %v4938_v17, %v1190_v12  ;;  %4203 = vmatpush3.bf16.msra.mxu1 %v4202_v25  ;;  %v1981_v37 = vadd.f32 %v1885_v57, %v1690_v22  ;;  %v801_v39 = vadd.f32 %v705_v7, %v510_v18  ;;  %v1288_v34 = vmul.f32 %v4938_v17, %v1191_v20  ;;  %v366_v57 = vld [vmem:[#allocation6 + $0x1a8] sm:$0xff]  ;;  %v947_v61 = vld [vmem:[#allocation6 + $0x7a0] sm:$0xff] }
 0x139   :  { %v1982_v38 = vadd.f32 %v1886_v59, %v1691_v26  ;;  %v802_v45 = vadd.f32 %v706_v13, %v511_v32  ;;  %v1578_v46 = vmul.f32 %v4945_v28, %v1481_v14  ;;  %v1579_v48 = vmul.f32 %v4945_v28, %v1482_v21  ;;  %v1238_v10 = vld [vmem:[#allocation6 + $0xaa0] sm:$0xff]  ;;  %v1239_v12 = vld [vmem:[#allocation6 + $0xaa8] sm:$0xff] }
 0x13a   :  { %v1869_v47 = vmul.f32 %v4947_v29, %v1772_v27  ;;  %v2272_v51 = vadd.f32 %v2176_v0, %v1981_v37  ;;  %v1092_v53 = vadd.f32 %v996_v19, %v801_v39  ;;  %v1870_v56 = vmul.f32 %v4947_v29, %v1773_v31  ;;  %v2355_v0 = vld [vmem:[#allocation6 + $0x1528] sm:$0xff]  ;;  %v1529_v19 = vld [vmem:[#allocation6 + $0xda0] sm:$0xff] }
 0x13b   :  { %v2273_v52 = vadd.f32 %v2177_v1, %v1982_v38  ;;  %v1093_v40 = vadd.f32 %v997_v36, %v802_v45  ;;  %v2160_v49 = vmul.f32 %v4954_v42, %v2063_v24  ;;  %v2161_v50 = vmul.f32 %v4954_v42, %v2064_v35  ;;  %v269_v1 = vld [vmem:[#allocation15 + $0x1a8] sm:$0xff]  ;;  %v1530_v20 = vld [vmem:[#allocation6 + $0xda8] sm:$0xff] }
 0x13c   :  { %v2451_v59 = vmul.f32 %v4957_v43, %v2354_v41  ;;  %v2563_v62 = vadd.f32 %v2467_v3, %v2272_v51  ;;  %v1383_v2 = vadd.f32 %v1287_v23, %v1092_v53  ;;  %v462_v4 = vmul.f32 %v4928_v6, %v365_v33  ;;  %v1820_v14 = vld [vmem:[#allocation6 + $0x10a0] sm:$0xff]  ;;  %v1821_v21 = vld [vmem:[#allocation6 + $0x10a8] sm:$0xff] }
 0x13d   :  { %v2564_v63 = vadd.f32 %v2468_v30, %v2273_v52  ;;  %v1384_v54 = vadd.f32 %v1288_v34, %v1093_v40  ;;  %v463_v8 = vmul.f32 %v4928_v6, %v366_v57  ;;  %v753_v55 = vmul.f32 %v4932_v11, %v656_v58  ;;  %v2111_v23 = vld [vmem:[#allocation6 + $0x13a0] sm:$0xff]  ;;  %v2112_v31 = vld [vmem:[#allocation6 + $0x13a8] sm:$0xff]  ;;  %v252_v57 = vld [vmem:[#allocation15 + $0x120] sm:$0xff] }
 0x13e   :  { %v754_v9 = vmul.f32 %v4932_v11, %v657_v44  ;;  %v1674_v7 = vadd.f32 %v1578_v46, %v1383_v2  ;;  %v558_v13 = vadd.f32 %v462_v4, %v268_v60  ;;  %v1044_v3 = vmul.f32 %v4936_v16, %v947_v61  ;;  %v2402_v24 = vld [vmem:[#allocation6 + $0x16a0] sm:$0xff]  ;;  %v641_v58 = vld [vmem:[#allocation6 + $0x428] sm:$0xff] }
 0x13f   :  { %v4172_v15 = vpack.c.bf16 %v2564_v63, %v2563_v62  ;;  %v1675_v25 = vadd.f32 %v1579_v48, %v1384_v54  ;;  %v2452_v22 = vmul.f32 %v4957_v43, %v2355_v0  ;;  %v559_v26 = vadd.f32 %v463_v8, %v269_v1  ;;  %v349_v35 = vld [vmem:[#allocation6 + $0x120] sm:$0xff]  ;;  %v932_v63 = vld [vmem:[#allocation6 + $0x728] sm:$0xff] }
 0x140   :  { %v1045_v18 = vmul.f32 %v4936_v16, %v948_v5  ;;  %v1965_v27 = vadd.f32 %v1869_v47, %v1674_v7  ;;  %v849_v30 = vadd.f32 %v753_v55, %v558_v13  ;;  %v1335_v32 = vmul.f32 %v4938_v17, %v1238_v10  ;;  %v350_v47 = vld [vmem:[#allocation6 + $0x128] sm:$0xff]  ;;  %v640_v33 = vld [vmem:[#allocation6 + $0x420] sm:$0xff] }
 0x141   :  { %4173 = vmatprep.subr.bf16.mxu0 %v4172_v15  ;;  %v1336_v36 = vmul.f32 %v4938_v17, %v1239_v12  ;;  %v1966_v37 = vadd.f32 %v1870_v56, %v1675_v25  ;;  %v850_v38 = vadd.f32 %v754_v9, %v559_v26  ;;  %v1626_v39 = vmul.f32 %v4945_v28, %v1529_v19  ;;  %v931_v44 = vld [vmem:[#allocation6 + $0x720] sm:$0xff]  ;;  %v2403_v1 = vld [vmem:[#allocation6 + $0x16a8] sm:$0xff] }
 0x142   :  { %v1627_v34 = vmul.f32 %v4945_v28, %v1530_v20  ;;  %v2256_v41 = vadd.f32 %v2160_v49, %v1965_v27  ;;  %v1140_v45 = vadd.f32 %v1044_v3, %v849_v30  ;;  %v1917_v46 = vmul.f32 %v4947_v29, %v1820_v14  ;;  %v253_v61 = vld [vmem:[#allocation15 + $0x128] sm:$0xff]  ;;  %v1223_v9 = vld [vmem:[#allocation6 + $0xa28] sm:$0xff] }
 0x143   :  { %v1918_v48 = vmul.f32 %v4947_v29, %v1821_v21  ;;  %v2257_v51 = vadd.f32 %v2161_v50, %v1966_v37  ;;  %v1141_v52 = vadd.f32 %v1045_v18, %v850_v38  ;;  %v2208_v53 = vmul.f32 %v4954_v42, %v2111_v23  ;;  %v1222_v5 = vld [vmem:[#allocation6 + $0xa20] sm:$0xff]  ;;  %v1514_v3 = vld [vmem:[#allocation6 + $0xd28] sm:$0xff] }
 0x144   :  { %v2209_v56 = vmul.f32 %v4954_v42, %v2112_v31  ;;  %v2547_v40 = vadd.f32 %v2451_v59, %v2256_v41  ;;  %v1431_v60 = vadd.f32 %v1335_v32, %v1140_v45  ;;  %v2499_v49 = vmul.f32 %v4957_v43, %v2402_v24  ;;  %v1513_v10 = vld [vmem:[#allocation6 + $0xd20] sm:$0xff]  ;;  %v1805_v18 = vld [vmem:[#allocation6 + $0x1028] sm:$0xff]  ;;  %v336_v24 = vld [vmem:[#allocation6 + $0xb8] sm:$0xff] }
 0x145   :  { %v446_v62 = vmul.f32 %v4928_v6, %v349_v35  ;;  %v2548_v2 = vadd.f32 %v2452_v22, %v2257_v51  ;;  %v1432_v0 = vadd.f32 %v1336_v36, %v1141_v52  ;;  %v447_v50 = vmul.f32 %v4928_v6, %v350_v47  ;;  %v1804_v19 = vld [vmem:[#allocation6 + $0x1020] sm:$0xff]  ;;  %v2096_v36 = vld [vmem:[#allocation6 + $0x1328] sm:$0xff]  ;;  %v627_v47 = vld [vmem:[#allocation6 + $0x3b8] sm:$0xff] }
 0x146   :  { %v737_v4 = vmul.f32 %v4932_v11, %v640_v33  ;;  %v1722_v54 = vadd.f32 %v1626_v39, %v1431_v60  ;;  %v738_v55 = vmul.f32 %v4932_v11, %v641_v58  ;;  %v1028_v59 = vmul.f32 %v4936_v16, %v931_v44  ;;  %v2095_v14 = vld [vmem:[#allocation6 + $0x1320] sm:$0xff]  ;;  %v917_v33 = vld [vmem:[#allocation6 + $0x6b0] sm:$0xff]  ;;  %v238_v58 = vld [vmem:[#allocation15 + $0xb0] sm:$0xff] }
 0x147   :  { %v542_v8 = vadd.f32 %v446_v62, %v252_v57  ;;  %v4174_v12 = vpack.c.bf16 %v2548_v2, %v2547_v40  ;;  %v1723_v15 = vadd.f32 %v1627_v34, %v1432_v0  ;;  %v543_v7 = vadd.f32 %v447_v50, %v253_v61  ;;  %v2386_v23 = vld [vmem:[#allocation6 + $0x1620] sm:$0xff]  ;;  %v335_v34 = vld [vmem:[#allocation6 + $0xb0] sm:$0xff]  ;;  %v2387_v61 = vld [vmem:[#allocation6 + $0x1628] sm:$0xff] }
 0x148   :  { %v1029_v13 = vmul.f32 %v4936_v16, %v932_v63  ;;  %v2013_v20 = vadd.f32 %v1917_v46, %v1722_v54  ;;  %v2500_v25 = vmul.f32 %v4957_v43, %v2403_v1  ;;  %v1319_v26 = vmul.f32 %v4938_v17, %v1222_v5  ;;  %v239_v44 = vld [vmem:[#allocation15 + $0xb8] sm:$0xff]  ;;  %v918_v63 = vld [vmem:[#allocation6 + $0x6b8] sm:$0xff] }
 0x149   :  { %v833_v22 = vadd.f32 %v737_v4, %v542_v8  ;;  %4175 = vmatpush3.bf16.msra.mxu0 %v4174_v12  ;;  %v2014_v21 = vadd.f32 %v1918_v48, %v1723_v15  ;;  %v834_v27 = vadd.f32 %v738_v55, %v543_v7  ;;  %v1320_v30 = vmul.f32 %v4938_v17, %v1223_v9  ;;  %v626_v48 = vld [vmem:[#allocation6 + $0x3b0] sm:$0xff]  ;;  %v1209_v4 = vld [vmem:[#allocation6 + $0x9b8] sm:$0xff] }
 0x14a   :  { %v1610_v32 = vmul.f32 %v4945_v28, %v1513_v10  ;;  %v2304_v31 = vadd.f32 %v2208_v53, %v2013_v20  ;;  %v1611_v38 = vmul.f32 %v4945_v28, %v1514_v3  ;;  %v1901_v39 = vmul.f32 %v4947_v29, %v1804_v19  ;;  %v1208_v2 = vld [vmem:[#allocation6 + $0x9b0] sm:$0xff]  ;;  %v1500_v9 = vld [vmem:[#allocation6 + $0xcb8] sm:$0xff] }
 0x14b   :  { %v1124_v37 = vadd.f32 %v1028_v59, %v833_v22  ;;  %v2305_v35 = vadd.f32 %v2209_v56, %v2014_v21  ;;  %v1125_v41 = vadd.f32 %v1029_v13, %v834_v27  ;;  %v1902_v45 = vmul.f32 %v4947_v29, %v1805_v18  ;;  %v1499_v59 = vld [vmem:[#allocation6 + $0xcb0] sm:$0xff]  ;;  %v1791_v3 = vld [vmem:[#allocation6 + $0xfb8] sm:$0xff] }
 0x14c   :  { %v2192_v46 = vmul.f32 %v4954_v42, %v2095_v14  ;;  %v2595_v51 = vadd.f32 %v2499_v49, %v2304_v31  ;;  %v2193_v53 = vmul.f32 %v4954_v42, %v2096_v36  ;;  %v2483_v57 = vmul.f32 %v4957_v43, %v2386_v23  ;;  %v1790_v10 = vld [vmem:[#allocation6 + $0xfb0] sm:$0xff]  ;;  %v2082_v18 = vld [vmem:[#allocation6 + $0x12b8] sm:$0xff] }
 0x14d   :  { %v1415_v52 = vadd.f32 %v1319_v26, %v1124_v37  ;;  %v2596_v40 = vadd.f32 %v2500_v25, %v2305_v35  ;;  %v1416_v60 = vadd.f32 %v1320_v30, %v1125_v41  ;;  %v432_v56 = vmul.f32 %v4928_v6, %v335_v34  ;;  %v2081_v26 = vld [vmem:[#allocation6 + $0x12b0] sm:$0xff]  ;;  %v320_v23 = vld [vmem:[#allocation6 + $0x38] sm:$0xff] }
 0x14e   :  { %v433_v62 = vmul.f32 %v4928_v6, %v336_v24  ;;  %v723_v1 = vmul.f32 %v4932_v11, %v626_v48  ;;  %v724_v49 = vmul.f32 %v4932_v11, %v627_v47  ;;  %v1014_v50 = vmul.f32 %v4936_v16, %v917_v33  ;;  %v2372_v14 = vld [vmem:[#allocation6 + $0x15b0] sm:$0xff]  ;;  %v611_v24 = vld [vmem:[#allocation6 + $0x338] sm:$0xff]  ;;  %v222_v33 = vld [vmem:[#allocation15 + $0x30] sm:$0xff] }
 0x14f   :  { %v1706_v0 = vadd.f32 %v1610_v32, %v1415_v52  ;;  %v4204_v5 = vpack.c.bf16 %v2596_v40, %v2595_v51  ;;  %v1707_v54 = vadd.f32 %v1611_v38, %v1416_v60  ;;  %v528_v8 = vadd.f32 %v432_v56, %v238_v58  ;;  %v319_v36 = vld [vmem:[#allocation6 + $0x30] sm:$0xff]  ;;  %v2373_v48 = vld [vmem:[#allocation6 + $0x15b8] sm:$0xff] }
 0x150   :  { %v529_v55 = vadd.f32 %v433_v62, %v239_v44  ;;  %v2484_v15 = vmul.f32 %v4957_v43, %v2387_v61  ;;  %v1015_v7 = vmul.f32 %v4936_v16, %v918_v63  ;;  %v1305_v13 = vmul.f32 %v4938_v17, %v1208_v2  ;;  %v610_v34 = vld [vmem:[#allocation6 + $0x330] sm:$0xff]  ;;  %v902_v40 = vld [vmem:[#allocation6 + $0x638] sm:$0xff] }
 0x151   :  { %v1997_v12 = vadd.f32 %v1901_v39, %v1706_v0  ;;  %4205 = vmatprep.subr.bf16.mxu1 %v4204_v5  ;;  %v1998_v19 = vadd.f32 %v1902_v45, %v1707_v54  ;;  %v819_v20 = vadd.f32 %v723_v1, %v528_v8  ;;  %v1306_v22 = vmul.f32 %v4938_v17, %v1209_v4  ;;  %v901_v35 = vld [vmem:[#allocation6 + $0x630] sm:$0xff]  ;;  %v1193_v63 = vld [vmem:[#allocation6 + $0x938] sm:$0xff] }
 0x152   :  { %v820_v25 = vadd.f32 %v724_v49, %v529_v55  ;;  %v1596_v27 = vmul.f32 %v4945_v28, %v1499_v59  ;;  %v1597_v30 = vmul.f32 %v4945_v28, %v1500_v9  ;;  %v1887_v32 = vmul.f32 %v4947_v29, %v1790_v10  ;;  %v1192_v60 = vld [vmem:[#allocation6 + $0x930] sm:$0xff]  ;;  %v1484_v4 = vld [vmem:[#allocation6 + $0xc38] sm:$0xff] }
 0x153   :  { %v2288_v21 = vadd.f32 %v2192_v46, %v1997_v12  ;;  %v2289_v31 = vadd.f32 %v2193_v53, %v1998_v19  ;;  %v1110_v37 = vadd.f32 %v1014_v50, %v819_v20  ;;  %v1888_v39 = vmul.f32 %v4947_v29, %v1791_v3  ;;  %v223_v53 = vld [vmem:[#allocation15 + $0x38] sm:$0xff]  ;;  %v1775_v9 = vld [vmem:[#allocation6 + $0xf38] sm:$0xff] }
 0x154   :  { %v1111_v38 = vadd.f32 %v1015_v7, %v820_v25  ;;  %v2178_v45 = vmul.f32 %v4954_v42, %v2081_v26  ;;  %v2179_v46 = vmul.f32 %v4954_v42, %v2082_v18  ;;  %v2469_v47 = vmul.f32 %v4957_v43, %v2372_v14  ;;  %v1483_v50 = vld [vmem:[#allocation6 + $0xc30] sm:$0xff]  ;;  %v2066_v3 = vld [vmem:[#allocation6 + $0x1238] sm:$0xff] }
 0x155   :  { %v2579_v41 = vadd.f32 %v2483_v57, %v2288_v21  ;;  %v2580_v51 = vadd.f32 %v2484_v15, %v2289_v31  ;;  %v1401_v52 = vadd.f32 %v1305_v13, %v1110_v37  ;;  %v416_v44 = vmul.f32 %v4928_v6, %v319_v36  ;;  %v1774_v5 = vld [vmem:[#allocation6 + $0xf30] sm:$0xff] }
 0x156   :  { %v1402_v58 = vadd.f32 %v1306_v22, %v1111_v38  ;;  %v417_v61 = vmul.f32 %v4928_v6, %v320_v23  ;;  %v707_v57 = vmul.f32 %v4932_v11, %v610_v34  ;;  %v708_v56 = vmul.f32 %v4932_v11, %v611_v24  ;;  %v2065_v13 = vld [vmem:[#allocation6 + $0x1230] sm:$0xff]  ;;  %v659_v23 = vld [vmem:[#allocation6 + $0x4b8] sm:$0xff]  ;;  %v270_v34 = vld [vmem:[#allocation15 + $0x1b0] sm:$0xff] }
 0x157   :  { %v998_v62 = vmul.f32 %v4936_v16, %v901_v35  ;;  %v4206_v2 = vpack.c.bf16 %v2580_v51, %v2579_v41  ;;  %v1692_v0 = vadd.f32 %v1596_v27, %v1401_v52  ;;  %v512_v49 = vadd.f32 %v416_v44, %v222_v33  ;;  %v2356_v19 = vld [vmem:[#allocation6 + $0x1530] sm:$0xff]  ;;  %v950_v51 = vld [vmem:[#allocation6 + $0x7b8] sm:$0xff] }
 0x158   :  { %v1693_v1 = vadd.f32 %v1597_v30, %v1402_v58  ;;  %v2470_v54 = vmul.f32 %v4957_v43, %v2373_v48  ;;  %v513_v8 = vadd.f32 %v417_v61, %v223_v53  ;;  %v999_v55 = vmul.f32 %v4936_v16, %v902_v40  ;;  %v367_v18 = vld [vmem:[#allocation6 + $0x1b0] sm:$0xff] }
 0x159   :  { %v1289_v59 = vmul.f32 %v4938_v17, %v1192_v60  ;;  %4207 = vmatpush3.bf16.msra.mxu1 %v4206_v2  ;;  %v1983_v10 = vadd.f32 %v1887_v32, %v1692_v0  ;;  %v803_v15 = vadd.f32 %v707_v57, %v512_v49  ;;  %v1290_v7 = vmul.f32 %v4938_v17, %v1193_v63  ;;  %v368_v32 = vld [vmem:[#allocation6 + $0x1b8] sm:$0xff]  ;;  %v658_v36 = vld [vmem:[#allocation6 + $0x4b0] sm:$0xff] }
 0x15a   :  { %v1984_v12 = vadd.f32 %v1888_v39, %v1693_v1  ;;  %v804_v20 = vadd.f32 %v708_v56, %v513_v8  ;;  %v1580_v25 = vmul.f32 %v4945_v28, %v1483_v50  ;;  %v1581_v22 = vmul.f32 %v4945_v28, %v1484_v4  ;;  %v949_v24 = vld [vmem:[#allocation6 + $0x7b0] sm:$0xff]  ;;  %v1241_v60 = vld [vmem:[#allocation6 + $0xab8] sm:$0xff] }
 0x15b   :  { %v1871_v26 = vmul.f32 %v4947_v29, %v1774_v5  ;;  %v2274_v14 = vadd.f32 %v2178_v45, %v1983_v10  ;;  %v1094_v27 = vadd.f32 %v998_v62, %v803_v15  ;;  %v1872_v30 = vmul.f32 %v4947_v29, %v1775_v9  ;;  %v2357_v45 = vld [vmem:[#allocation6 + $0x1538] sm:$0xff]  ;;  %v1240_v40 = vld [vmem:[#allocation6 + $0xab0] sm:$0xff] }
 0x15c   :  { %v2275_v21 = vadd.f32 %v2179_v46, %v1984_v12  ;;  %v1095_v31 = vadd.f32 %v999_v55, %v804_v20  ;;  %v2162_v37 = vmul.f32 %v4954_v42, %v2065_v13  ;;  %v2163_v38 = vmul.f32 %v4954_v42, %v2066_v3  ;;  %v271_v46 = vld [vmem:[#allocation15 + $0x1b8] sm:$0xff]  ;;  %v1532_v63 = vld [vmem:[#allocation6 + $0xdb8] sm:$0xff] }
 0x15d   :  { %v2453_v39 = vmul.f32 %v4957_v43, %v2356_v19  ;;  %v2565_v35 = vadd.f32 %v2469_v47, %v2274_v14  ;;  %v1385_v48 = vadd.f32 %v1289_v59, %v1094_v27  ;;  %v464_v33 = vmul.f32 %v4928_v6, %v367_v18  ;;  %v1531_v62 = vld [vmem:[#allocation6 + $0xdb0] sm:$0xff]  ;;  %v1823_v4 = vld [vmem:[#allocation6 + $0x10b8] sm:$0xff] }
 0x15e   :  { %v2566_v41 = vadd.f32 %v2470_v54, %v2275_v21  ;;  %v1386_v52 = vadd.f32 %v1290_v7, %v1095_v31  ;;  %v465_v58 = vmul.f32 %v4928_v6, %v368_v32  ;;  %v755_v53 = vmul.f32 %v4932_v11, %v658_v36  ;;  %v1822_v50 = vld [vmem:[#allocation6 + $0x10b0] sm:$0xff]  ;;  %v2114_v9 = vld [vmem:[#allocation6 + $0x13b8] sm:$0xff]  ;;  %v254_v32 = vld [vmem:[#allocation15 + $0x130] sm:$0xff] }
 0x15f   :  { %v756_v44 = vmul.f32 %v4932_v11, %v659_v23  ;;  %v1676_v57 = vadd.f32 %v1580_v25, %v1385_v48  ;;  %v560_v56 = vadd.f32 %v464_v33, %v270_v34  ;;  %v1046_v47 = vmul.f32 %v4936_v16, %v949_v24  ;;  %v2113_v59 = vld [vmem:[#allocation6 + $0x13b0] sm:$0xff]  ;;  %v643_v36 = vld [vmem:[#allocation6 + $0x438] sm:$0xff] }
 0x160   :  { %v4176_v61 = vpack.c.bf16 %v2566_v41, %v2565_v35  ;;  %v1677_v2 = vadd.f32 %v1581_v22, %v1386_v52  ;;  %v2454_v0 = vmul.f32 %v4957_v43, %v2357_v45  ;;  %v561_v1 = vadd.f32 %v465_v58, %v271_v46  ;;  %v2404_v13 = vld [vmem:[#allocation6 + $0x16b0] sm:$0xff]  ;;  %v934_v41 = vld [vmem:[#allocation6 + $0x738] sm:$0xff] }
 0x161   :  { %v1047_v49 = vmul.f32 %v4936_v16, %v950_v51  ;;  %v1967_v5 = vadd.f32 %v1871_v26, %v1676_v57  ;;  %v851_v54 = vadd.f32 %v755_v53, %v560_v56  ;;  %v1337_v8 = vmul.f32 %v4938_v17, %v1240_v40  ;;  %v351_v3 = vld [vmem:[#allocation6 + $0x130] sm:$0xff]  ;;  %v352_v26 = vld [vmem:[#allocation6 + $0x138] sm:$0xff] }
 0x162   :  { %4177 = vmatprep.subr.bf16.mxu0 %v4176_v61  ;;  %v1338_v55 = vmul.f32 %v4938_v17, %v1241_v60  ;;  %v1968_v10 = vadd.f32 %v1872_v30, %v1677_v2  ;;  %v852_v12 = vadd.f32 %v756_v44, %v561_v1  ;;  %v1628_v15 = vmul.f32 %v4945_v28, %v1531_v62  ;;  %v642_v18 = vld [vmem:[#allocation6 + $0x430] sm:$0xff]  ;;  %v2405_v46 = vld [vmem:[#allocation6 + $0x16b8] sm:$0xff] }
 0x163   :  { %v1629_v7 = vmul.f32 %v4945_v28, %v1532_v63  ;;  %v2258_v19 = vadd.f32 %v2162_v37, %v1967_v5  ;;  %v1142_v20 = vadd.f32 %v1046_v47, %v851_v54  ;;  %v1919_v25 = vmul.f32 %v4947_v29, %v1822_v50  ;;  %v933_v23 = vld [vmem:[#allocation6 + $0x730] sm:$0xff]  ;;  %v1225_v44 = vld [vmem:[#allocation6 + $0xa38] sm:$0xff] }
 0x164   :  { %v1920_v22 = vmul.f32 %v4947_v29, %v1823_v4  ;;  %v2259_v14 = vadd.f32 %v2163_v38, %v1968_v10  ;;  %v1143_v21 = vadd.f32 %v1047_v49, %v852_v12  ;;  %v2210_v27 = vmul.f32 %v4954_v42, %v2113_v59  ;;  %v255_v24 = vld [vmem:[#allocation15 + $0x138] sm:$0xff]  ;;  %v1516_v47 = vld [vmem:[#allocation6 + $0xd38] sm:$0xff] }
 0x165   :  { %v2211_v30 = vmul.f32 %v4954_v42, %v2114_v9  ;;  %v2549_v31 = vadd.f32 %v2453_v39, %v2258_v19  ;;  %v1433_v34 = vadd.f32 %v1337_v8, %v1142_v20  ;;  %v2501_v37 = vmul.f32 %v4957_v43, %v2404_v13  ;;  %v1224_v51 = vld [vmem:[#allocation6 + $0xa30] sm:$0xff]  ;;  %v1807_v49 = vld [vmem:[#allocation6 + $0x1038] sm:$0xff]  ;;  %v338_v13 = vld [vmem:[#allocation6 + $0xc8] sm:$0xff] }
 0x166   :  { %v448_v35 = vmul.f32 %v4928_v6, %v351_v3  ;;  %v2550_v48 = vadd.f32 %v2454_v0, %v2259_v14  ;;  %v1434_v45 = vadd.f32 %v1338_v55, %v1143_v21  ;;  %v449_v38 = vmul.f32 %v4928_v6, %v352_v26  ;;  %v1515_v40 = vld [vmem:[#allocation6 + $0xd30] sm:$0xff]  ;;  %v2098_v55 = vld [vmem:[#allocation6 + $0x1338] sm:$0xff]  ;;  %v629_v26 = vld [vmem:[#allocation6 + $0x3c8] sm:$0xff] }
 0x167   :  { %v739_v33 = vmul.f32 %v4932_v11, %v642_v18  ;;  %v1724_v52 = vadd.f32 %v1628_v15, %v1433_v34  ;;  %v740_v53 = vmul.f32 %v4932_v11, %v643_v36  ;;  %v1030_v39 = vmul.f32 %v4936_v16, %v933_v23  ;;  %v1806_v62 = vld [vmem:[#allocation6 + $0x1030] sm:$0xff]  ;;  %v919_v18 = vld [vmem:[#allocation6 + $0x6c0] sm:$0xff]  ;;  %v240_v36 = vld [vmem:[#allocation15 + $0xc0] sm:$0xff] }
 0x168   :  { %v544_v58 = vadd.f32 %v448_v35, %v254_v32  ;;  %v4178_v60 = vpack.c.bf16 %v2550_v48, %v2549_v31  ;;  %v1725_v61 = vadd.f32 %v1629_v7, %v1434_v45  ;;  %v545_v57 = vadd.f32 %v449_v38, %v255_v24  ;;  %v2097_v50 = vld [vmem:[#allocation6 + $0x1330] sm:$0xff]  ;;  %v337_v7 = vld [vmem:[#allocation6 + $0xc0] sm:$0xff]  ;;  %v2389_v24 = vld [vmem:[#allocation6 + $0x1638] sm:$0xff] }
 0x169   :  { %v1031_v56 = vmul.f32 %v4936_v16, %v934_v41  ;;  %v2015_v63 = vadd.f32 %v1919_v25, %v1724_v52  ;;  %v2502_v2 = vmul.f32 %v4957_v43, %v2405_v46  ;;  %v1321_v1 = vmul.f32 %v4938_v17, %v1224_v51  ;;  %v2388_v59 = vld [vmem:[#allocation6 + $0x1630] sm:$0xff]  ;;  %v241_v23 = vld [vmem:[#allocation15 + $0xc8] sm:$0xff]  ;;  %v920_v41 = vld [vmem:[#allocation6 + $0x6c8] sm:$0xff] }
 0x16a   :  { %v835_v0 = vadd.f32 %v739_v33, %v544_v58  ;;  %4179 = vmatpush3.bf16.msra.mxu0 %v4178_v60  ;;  %v2016_v4 = vadd.f32 %v1920_v22, %v1725_v61  ;;  %v836_v5 = vadd.f32 %v740_v53, %v545_v57  ;;  %v1322_v54 = vmul.f32 %v4938_v17, %v1225_v44  ;;  %v628_v22 = vld [vmem:[#allocation6 + $0x3c0] sm:$0xff]  ;;  %v1211_v33 = vld [vmem:[#allocation6 + $0x9c8] sm:$0xff] }
 0x16b   :  { %v1612_v8 = vmul.f32 %v4945_v28, %v1515_v40  ;;  %v2306_v9 = vadd.f32 %v2210_v27, %v2015_v63  ;;  %v1613_v12 = vmul.f32 %v4945_v28, %v1516_v47  ;;  %v1903_v15 = vmul.f32 %v4947_v29, %v1806_v62  ;;  %v1210_v48 = vld [vmem:[#allocation6 + $0x9c0] sm:$0xff]  ;;  %v1502_v44 = vld [vmem:[#allocation6 + $0xcc8] sm:$0xff] }
 0x16c   :  { %v1126_v10 = vadd.f32 %v1030_v39, %v835_v0  ;;  %v2307_v3 = vadd.f32 %v2211_v30, %v2016_v4  ;;  %v1127_v19 = vadd.f32 %v1031_v56, %v836_v5  ;;  %v1904_v20 = vmul.f32 %v4947_v29, %v1807_v49  ;;  %v1501_v39 = vld [vmem:[#allocation6 + $0xcc0] sm:$0xff]  ;;  %v1793_v47 = vld [vmem:[#allocation6 + $0xfc8] sm:$0xff] }
 0x16d   :  { %v2194_v25 = vmul.f32 %v4954_v42, %v2097_v50  ;;  %v2597_v14 = vadd.f32 %v2501_v37, %v2306_v9  ;;  %v2195_v27 = vmul.f32 %v4954_v42, %v2098_v55  ;;  %v2485_v32 = vmul.f32 %v4957_v43, %v2388_v59  ;;  %v1792_v40 = vld [vmem:[#allocation6 + $0xfc0] sm:$0xff]  ;;  %v2084_v49 = vld [vmem:[#allocation6 + $0x12c8] sm:$0xff] }
 0x16e   :  { %v1417_v21 = vadd.f32 %v1321_v1, %v1126_v10  ;;  %v2598_v31 = vadd.f32 %v2502_v2, %v2307_v3  ;;  %v1418_v34 = vadd.f32 %v1322_v54, %v1127_v19  ;;  %v434_v30 = vmul.f32 %v4928_v6, %v337_v7  ;;  %v2083_v1 = vld [vmem:[#allocation6 + $0x12c0] sm:$0xff]  ;;  %v322_v59 = vld [vmem:[#allocation6 + $0x48] sm:$0xff] }
 0x16f   :  { %v435_v35 = vmul.f32 %v4928_v6, %v338_v13  ;;  %v725_v46 = vmul.f32 %v4932_v11, %v628_v22  ;;  %v726_v37 = vmul.f32 %v4932_v11, %v629_v26  ;;  %v1016_v38 = vmul.f32 %v4936_v16, %v919_v18  ;;  %v2374_v50 = vld [vmem:[#allocation6 + $0x15c0] sm:$0xff]  ;;  %v613_v13 = vld [vmem:[#allocation6 + $0x348] sm:$0xff]  ;;  %v224_v18 = vld [vmem:[#allocation15 + $0x40] sm:$0xff] }
 0x170   :  { %v1708_v45 = vadd.f32 %v1612_v8, %v1417_v21  ;;  %v4208_v51 = vpack.c.bf16 %v2598_v31, %v2597_v14  ;;  %v1709_v52 = vadd.f32 %v1613_v12, %v1418_v34  ;;  %v530_v58 = vadd.f32 %v434_v30, %v240_v36  ;;  %v321_v55 = vld [vmem:[#allocation6 + $0x40] sm:$0xff]  ;;  %v2375_v22 = vld [vmem:[#allocation6 + $0x15c8] sm:$0xff] }
 0x171   :  { %v531_v53 = vadd.f32 %v435_v35, %v241_v23  ;;  %v2486_v61 = vmul.f32 %v4957_v43, %v2389_v24  ;;  %v1017_v57 = vmul.f32 %v4936_v16, %v920_v41  ;;  %v1307_v56 = vmul.f32 %v4938_v17, %v1210_v48  ;;  %v612_v7 = vld [vmem:[#allocation6 + $0x340] sm:$0xff]  ;;  %v904_v31 = vld [vmem:[#allocation6 + $0x648] sm:$0xff] }
 0x172   :  { %v1999_v60 = vadd.f32 %v1903_v15, %v1708_v45  ;;  %4209 = vmatprep.subr.bf16.mxu1 %v4208_v51  ;;  %v2000_v62 = vadd.f32 %v1904_v20, %v1709_v52  ;;  %v821_v63 = vadd.f32 %v725_v46, %v530_v58  ;;  %v1308_v0 = vmul.f32 %v4938_v17, %v1211_v33  ;;  %v903_v3 = vld [vmem:[#allocation6 + $0x640] sm:$0xff]  ;;  %v1195_v41 = vld [vmem:[#allocation6 + $0x948] sm:$0xff] }
 0x173   :  { %v822_v2 = vadd.f32 %v726_v37, %v531_v53  ;;  %v1598_v5 = vmul.f32 %v4945_v28, %v1501_v39  ;;  %v1599_v54 = vmul.f32 %v4945_v28, %v1502_v44  ;;  %v1889_v8 = vmul.f32 %v4947_v29, %v1792_v40  ;;  %v1194_v34 = vld [vmem:[#allocation6 + $0x940] sm:$0xff]  ;;  %v1486_v33 = vld [vmem:[#allocation6 + $0xc48] sm:$0xff] }
 0x174   :  { %v2290_v4 = vadd.f32 %v2194_v25, %v1999_v60  ;;  %v2291_v9 = vadd.f32 %v2195_v27, %v2000_v62  ;;  %v1112_v10 = vadd.f32 %v1016_v38, %v821_v63  ;;  %v1890_v15 = vmul.f32 %v4947_v29, %v1793_v47  ;;  %v225_v27 = vld [vmem:[#allocation15 + $0x48] sm:$0xff]  ;;  %v1777_v44 = vld [vmem:[#allocation6 + $0xf48] sm:$0xff] }
 0x175   :  { %v1113_v12 = vadd.f32 %v1017_v57, %v822_v2  ;;  %v2180_v20 = vmul.f32 %v4954_v42, %v2083_v1  ;;  %v2181_v25 = vmul.f32 %v4954_v42, %v2084_v49  ;;  %v2471_v26 = vmul.f32 %v4957_v43, %v2374_v50  ;;  %v1485_v38 = vld [vmem:[#allocation6 + $0xc40] sm:$0xff]  ;;  %v2068_v47 = vld [vmem:[#allocation6 + $0x1248] sm:$0xff] }
 0x176   :  { %v2581_v19 = vadd.f32 %v2485_v32, %v2290_v4  ;;  %v2582_v14 = vadd.f32 %v2486_v61, %v2291_v9  ;;  %v1403_v21 = vadd.f32 %v1307_v56, %v1112_v10  ;;  %v418_v23 = vmul.f32 %v4928_v6, %v321_v55  ;;  %v1776_v51 = vld [vmem:[#allocation6 + $0xf40] sm:$0xff] }
 0x177   :  { %v1404_v36 = vadd.f32 %v1308_v0, %v1113_v12  ;;  %v419_v24 = vmul.f32 %v4928_v6, %v322_v59  ;;  %v709_v32 = vmul.f32 %v4932_v11, %v612_v7  ;;  %v710_v30 = vmul.f32 %v4932_v11, %v613_v13  ;;  %v2067_v56 = vld [vmem:[#allocation6 + $0x1240] sm:$0xff]  ;;  %v661_v59 = vld [vmem:[#allocation6 + $0x4c8] sm:$0xff]  ;;  %v272_v7 = vld [vmem:[#allocation15 + $0x1c0] sm:$0xff] }
 0x178   :  { %v1000_v35 = vmul.f32 %v4936_v16, %v903_v3  ;;  %v4210_v48 = vpack.c.bf16 %v2582_v14, %v2581_v19  ;;  %v1694_v45 = vadd.f32 %v1598_v5, %v1403_v21  ;;  %v514_v37 = vadd.f32 %v418_v23, %v224_v18  ;;  %v2358_v62 = vld [vmem:[#allocation6 + $0x1540] sm:$0xff]  ;;  %v952_v14 = vld [vmem:[#allocation6 + $0x7c8] sm:$0xff] }
 0x179   :  { %v1695_v46 = vadd.f32 %v1599_v54, %v1404_v36  ;;  %v2472_v52 = vmul.f32 %v4957_v43, %v2375_v22  ;;  %v515_v58 = vadd.f32 %v419_v24, %v225_v27  ;;  %v1001_v53 = vmul.f32 %v4936_v16, %v904_v31  ;;  %v369_v49 = vld [vmem:[#allocation6 + $0x1c0] sm:$0xff] }
 0x17a   :  { %v1291_v39 = vmul.f32 %v4938_v17, %v1194_v34  ;;  %4211 = vmatpush3.bf16.msra.mxu1 %v4210_v48  ;;  %v1985_v40 = vadd.f32 %v1889_v8, %v1694_v45  ;;  %v805_v61 = vadd.f32 %v709_v32, %v514_v37  ;;  %v1292_v57 = vmul.f32 %v4938_v17, %v1195_v41  ;;  %v370_v8 = vld [vmem:[#allocation6 + $0x1c8] sm:$0xff]  ;;  %v660_v55 = vld [vmem:[#allocation6 + $0x4c0] sm:$0xff] }
 0x17b   :  { %v1986_v60 = vadd.f32 %v1890_v15, %v1695_v46  ;;  %v806_v63 = vadd.f32 %v710_v30, %v515_v58  ;;  %v1582_v2 = vmul.f32 %v4945_v28, %v1485_v38  ;;  %v1583_v0 = vmul.f32 %v4945_v28, %v1486_v33  ;;  %v951_v13 = vld [vmem:[#allocation6 + $0x7c0] sm:$0xff]  ;;  %v1243_v34 = vld [vmem:[#allocation6 + $0xac8] sm:$0xff] }
 0x17c   :  { %v1873_v1 = vmul.f32 %v4947_v29, %v1776_v51  ;;  %v2276_v50 = vadd.f32 %v2180_v20, %v1985_v40  ;;  %v1096_v5 = vadd.f32 %v1000_v35, %v805_v61  ;;  %v1874_v54 = vmul.f32 %v4947_v29, %v1777_v44  ;;  %v2359_v20 = vld [vmem:[#allocation6 + $0x1548] sm:$0xff]  ;;  %v1242_v31 = vld [vmem:[#allocation6 + $0xac0] sm:$0xff] }
 0x17d   :  { %v2277_v4 = vadd.f32 %v2181_v25, %v1986_v60  ;;  %v1097_v9 = vadd.f32 %v1001_v53, %v806_v63  ;;  %v2164_v10 = vmul.f32 %v4954_v42, %v2067_v56  ;;  %v2165_v12 = vmul.f32 %v4954_v42, %v2068_v47  ;;  %v273_v25 = vld [vmem:[#allocation15 + $0x1c8] sm:$0xff]  ;;  %v1534_v41 = vld [vmem:[#allocation6 + $0xdc8] sm:$0xff] }
 0x17e   :  { %v2455_v15 = vmul.f32 %v4957_v43, %v2358_v62  ;;  %v2567_v3 = vadd.f32 %v2471_v26, %v2276_v50  ;;  %v1387_v22 = vadd.f32 %v1291_v39, %v1096_v5  ;;  %v466_v18 = vmul.f32 %v4928_v6, %v369_v49  ;;  %v1533_v35 = vld [vmem:[#allocation6 + $0xdc0] sm:$0xff]  ;;  %v1825_v33 = vld [vmem:[#allocation6 + $0x10c8] sm:$0xff] }
 0x17f   :  { %v2568_v19 = vadd.f32 %v2472_v52, %v2277_v4  ;;  %v1388_v21 = vadd.f32 %v1292_v57, %v1097_v9  ;;  %v467_v36 = vmul.f32 %v4928_v6, %v370_v8  ;;  %v757_v27 = vmul.f32 %v4932_v11, %v660_v55  ;;  %v1824_v38 = vld [vmem:[#allocation6 + $0x10c0] sm:$0xff]  ;;  %v2116_v44 = vld [vmem:[#allocation6 + $0x13c8] sm:$0xff]  ;;  %v256_v8 = vld [vmem:[#allocation15 + $0x140] sm:$0xff] }
 0x180   :  { %v758_v23 = vmul.f32 %v4932_v11, %v661_v59  ;;  %v1678_v32 = vadd.f32 %v1582_v2, %v1387_v22  ;;  %v562_v30 = vadd.f32 %v466_v18, %v272_v7  ;;  %v1048_v26 = vmul.f32 %v4936_v16, %v951_v13  ;;  %v2115_v39 = vld [vmem:[#allocation6 + $0x13c0] sm:$0xff]  ;;  %v645_v55 = vld [vmem:[#allocation6 + $0x448] sm:$0xff] }
 0x181   :  { %v4180_v24 = vpack.c.bf16 %v2568_v19, %v2567_v3  ;;  %v1679_v48 = vadd.f32 %v1583_v0, %v1388_v21  ;;  %v2456_v45 = vmul.f32 %v4957_v43, %v2359_v20  ;;  %v563_v46 = vadd.f32 %v467_v36, %v273_v25  ;;  %v2406_v56 = vld [vmem:[#allocation6 + $0x16c0] sm:$0xff]  ;;  %v936_v19 = vld [vmem:[#allocation6 + $0x748] sm:$0xff] }
 0x182   :  { %v1049_v37 = vmul.f32 %v4936_v16, %v952_v14  ;;  %v1969_v51 = vadd.f32 %v1873_v1, %v1678_v32  ;;  %v853_v52 = vadd.f32 %v757_v27, %v562_v30  ;;  %v1339_v58 = vmul.f32 %v4938_v17, %v1242_v31  ;;  %v353_v47 = vld [vmem:[#allocation6 + $0x140] sm:$0xff]  ;;  %v354_v1 = vld [vmem:[#allocation6 + $0x148] sm:$0xff] }
 0x183   :  { %4181 = vmatprep.subr.bf16.mxu0 %v4180_v24  ;;  %v1340_v53 = vmul.f32 %v4938_v17, %v1243_v34  ;;  %v1970_v40 = vadd.f32 %v1874_v54, %v1679_v48  ;;  %v854_v60 = vadd.f32 %v758_v23, %v563_v46  ;;  %v1630_v61 = vmul.f32 %v4945_v28, %v1533_v35  ;;  %v644_v49 = vld [vmem:[#allocation6 + $0x440] sm:$0xff]  ;;  %v2407_v25 = vld [vmem:[#allocation6 + $0x16c8] sm:$0xff] }
 0x184   :  { %v1631_v57 = vmul.f32 %v4945_v28, %v1534_v41  ;;  %v2260_v62 = vadd.f32 %v2164_v10, %v1969_v51  ;;  %v1144_v63 = vadd.f32 %v1048_v26, %v853_v52  ;;  %v1921_v2 = vmul.f32 %v4947_v29, %v1824_v38  ;;  %v935_v59 = vld [vmem:[#allocation6 + $0x740] sm:$0xff]  ;;  %v1227_v23 = vld [vmem:[#allocation6 + $0xa48] sm:$0xff] }
 0x185   :  { %v1922_v0 = vmul.f32 %v4947_v29, %v1825_v33  ;;  %v2261_v50 = vadd.f32 %v2165_v12, %v1970_v40  ;;  %v1145_v4 = vadd.f32 %v1049_v37, %v854_v60  ;;  %v2212_v5 = vmul.f32 %v4954_v42, %v2115_v39  ;;  %v257_v13 = vld [vmem:[#allocation15 + $0x148] sm:$0xff]  ;;  %v1518_v26 = vld [vmem:[#allocation6 + $0xd48] sm:$0xff] }
 0x186   :  { %v2213_v54 = vmul.f32 %v4954_v42, %v2116_v44  ;;  %v2551_v9 = vadd.f32 %v2455_v15, %v2260_v62  ;;  %v1435_v7 = vadd.f32 %v1339_v58, %v1144_v63  ;;  %v2503_v10 = vmul.f32 %v4957_v43, %v2406_v56  ;;  %v1226_v14 = vld [vmem:[#allocation6 + $0xa40] sm:$0xff]  ;;  %v1809_v37 = vld [vmem:[#allocation6 + $0x1048] sm:$0xff]  ;;  %v340_v56 = vld [vmem:[#allocation6 + $0xd8] sm:$0xff] }
 0x187   :  { %v450_v3 = vmul.f32 %v4928_v6, %v353_v47  ;;  %v2552_v22 = vadd.f32 %v2456_v45, %v2261_v50  ;;  %v1436_v20 = vadd.f32 %v1340_v53, %v1145_v4  ;;  %v451_v12 = vmul.f32 %v4928_v6, %v354_v1  ;;  %v1517_v31 = vld [vmem:[#allocation6 + $0xd40] sm:$0xff]  ;;  %v2100_v53 = vld [vmem:[#allocation6 + $0x1348] sm:$0xff]  ;;  %v631_v1 = vld [vmem:[#allocation6 + $0x3d8] sm:$0xff] }
 0x188   :  { %v741_v18 = vmul.f32 %v4932_v11, %v644_v49  ;;  %v1726_v21 = vadd.f32 %v1630_v61, %v1435_v7  ;;  %v742_v27 = vmul.f32 %v4932_v11, %v645_v55  ;;  %v1032_v15 = vmul.f32 %v4936_v16, %v935_v59  ;;  %v1808_v35 = vld [vmem:[#allocation6 + $0x1040] sm:$0xff]  ;;  %v921_v49 = vld [vmem:[#allocation6 + $0x6d0] sm:$0xff]  ;;  %v242_v55 = vld [vmem:[#allocation15 + $0xd0] sm:$0xff] }
 0x189   :  { %v546_v36 = vadd.f32 %v450_v3, %v256_v8  ;;  %v4182_v34 = vpack.c.bf16 %v2552_v22, %v2551_v9  ;;  %v1727_v24 = vadd.f32 %v1631_v57, %v1436_v20  ;;  %v547_v32 = vadd.f32 %v451_v12, %v257_v13  ;;  %v2099_v38 = vld [vmem:[#allocation6 + $0x1340] sm:$0xff]  ;;  %v339_v57 = vld [vmem:[#allocation6 + $0xd0] sm:$0xff]  ;;  %v2391_v13 = vld [vmem:[#allocation6 + $0x1648] sm:$0xff] }
 0x18a   :  { %v1033_v30 = vmul.f32 %v4936_v16, %v936_v19  ;;  %v2017_v41 = vadd.f32 %v1921_v2, %v1726_v21  ;;  %v2504_v48 = vmul.f32 %v4957_v43, %v2407_v25  ;;  %v1323_v46 = vmul.f32 %v4938_v17, %v1226_v14  ;;  %v2390_v39 = vld [vmem:[#allocation6 + $0x1640] sm:$0xff]  ;;  %v243_v59 = vld [vmem:[#allocation15 + $0xd8] sm:$0xff]  ;;  %v922_v19 = vld [vmem:[#allocation6 + $0x6d8] sm:$0xff] }
 0x18b   :  { %v837_v45 = vadd.f32 %v741_v18, %v546_v36  ;;  %4183 = vmatpush3.bf16.msra.mxu0 %v4182_v34  ;;  %v2018_v33 = vadd.f32 %v1922_v0, %v1727_v24  ;;  %v838_v51 = vadd.f32 %v742_v27, %v547_v32  ;;  %v1324_v52 = vmul.f32 %v4938_v17, %v1227_v23  ;;  %v630_v0 = vld [vmem:[#allocation6 + $0x3d0] sm:$0xff]  ;;  %v1213_v18 = vld [vmem:[#allocation6 + $0x9d8] sm:$0xff] }
 0x18c   :  { %v1614_v58 = vmul.f32 %v4945_v28, %v1517_v31  ;;  %v2308_v44 = vadd.f32 %v2212_v5, %v2017_v41  ;;  %v1615_v60 = vmul.f32 %v4945_v28, %v1518_v26  ;;  %v1905_v61 = vmul.f32 %v4947_v29, %v1808_v35  ;;  %v1212_v22 = vld [vmem:[#allocation6 + $0x9d0] sm:$0xff]  ;;  %v1504_v23 = vld [vmem:[#allocation6 + $0xcd8] sm:$0xff] }
 0x18d   :  { %v1128_v40 = vadd.f32 %v1032_v15, %v837_v45  ;;  %v2309_v47 = vadd.f32 %v2213_v54, %v2018_v33  ;;  %v1129_v62 = vadd.f32 %v1033_v30, %v838_v51  ;;  %v1906_v63 = vmul.f32 %v4947_v29, %v1809_v37  ;;  %v1503_v15 = vld [vmem:[#allocation6 + $0xcd0] sm:$0xff]  ;;  %v1795_v26 = vld [vmem:[#allocation6 + $0xfd8] sm:$0xff] }
 0x18e   :  { %v2196_v2 = vmul.f32 %v4954_v42, %v2099_v38  ;;  %v2599_v50 = vadd.f32 %v2503_v10, %v2308_v44  ;;  %v2197_v5 = vmul.f32 %v4954_v42, %v2100_v53  ;;  %v2487_v8 = vmul.f32 %v4957_v43, %v2390_v39  ;;  %v1794_v31 = vld [vmem:[#allocation6 + $0xfd0] sm:$0xff]  ;;  %v2086_v37 = vld [vmem:[#allocation6 + $0x12d8] sm:$0xff] }
 0x18f   :  { %v1419_v4 = vadd.f32 %v1323_v46, %v1128_v40  ;;  %v2600_v9 = vadd.f32 %v2504_v48, %v2309_v47  ;;  %v1420_v7 = vadd.f32 %v1324_v52, %v1129_v62  ;;  %v436_v54 = vmul.f32 %v4928_v6, %v339_v57  ;;  %v2085_v46 = vld [vmem:[#allocation6 + $0x12d0] sm:$0xff]  ;;  %v324_v39 = vld [vmem:[#allocation6 + $0x58] sm:$0xff] }
 0x190   :  { %v437_v3 = vmul.f32 %v4928_v6, %v340_v56  ;;  %v727_v25 = vmul.f32 %v4932_v11, %v630_v0  ;;  %v728_v10 = vmul.f32 %v4932_v11, %v631_v1  ;;  %v1018_v12 = vmul.f32 %v4936_v16, %v921_v49  ;;  %v2376_v38 = vld [vmem:[#allocation6 + $0x15d0] sm:$0xff]  ;;  %v615_v56 = vld [vmem:[#allocation6 + $0x358] sm:$0xff]  ;;  %v226_v49 = vld [vmem:[#allocation15 + $0x50] sm:$0xff] }
 0x191   :  { %v1710_v20 = vadd.f32 %v1614_v58, %v1419_v4  ;;  %v4212_v14 = vpack.c.bf16 %v2600_v9, %v2599_v50  ;;  %v1711_v21 = vadd.f32 %v1615_v60, %v1420_v7  ;;  %v532_v36 = vadd.f32 %v436_v54, %v242_v55  ;;  %v323_v53 = vld [vmem:[#allocation6 + $0x50] sm:$0xff]  ;;  %v2377_v0 = vld [vmem:[#allocation6 + $0x15d8] sm:$0xff] }
 0x192   :  { %v533_v27 = vadd.f32 %v437_v3, %v243_v59  ;;  %v2488_v24 = vmul.f32 %v4957_v43, %v2391_v13  ;;  %v1019_v32 = vmul.f32 %v4936_v16, %v922_v19  ;;  %v1309_v30 = vmul.f32 %v4938_v17, %v1212_v22  ;;  %v614_v57 = vld [vmem:[#allocation6 + $0x350] sm:$0xff]  ;;  %v906_v9 = vld [vmem:[#allocation6 + $0x658] sm:$0xff] }
 0x193   :  { %v2001_v34 = vadd.f32 %v1905_v61, %v1710_v20  ;;  %4213 = vmatprep.subr.bf16.mxu1 %v4212_v14  ;;  %v2002_v35 = vadd.f32 %v1906_v63, %v1711_v21  ;;  %v823_v41 = vadd.f32 %v727_v25, %v532_v36  ;;  %v1310_v45 = vmul.f32 %v4938_v17, %v1213_v18  ;;  %v905_v47 = vld [vmem:[#allocation6 + $0x650] sm:$0xff]  ;;  %v1197_v19 = vld [vmem:[#allocation6 + $0x958] sm:$0xff] }
 0x194   :  { %v824_v48 = vadd.f32 %v728_v10, %v533_v27  ;;  %v1600_v51 = vmul.f32 %v4945_v28, %v1503_v15  ;;  %v1601_v52 = vmul.f32 %v4945_v28, %v1504_v23  ;;  %v1891_v58 = vmul.f32 %v4947_v29, %v1794_v31  ;;  %v1196_v7 = vld [vmem:[#allocation6 + $0x950] sm:$0xff]  ;;  %v1488_v18 = vld [vmem:[#allocation6 + $0xc58] sm:$0xff] }
 0x195   :  { %v2292_v33 = vadd.f32 %v2196_v2, %v2001_v34  ;;  %v2293_v44 = vadd.f32 %v2197_v5, %v2002_v35  ;;  %v1114_v40 = vadd.f32 %v1018_v12, %v823_v41  ;;  %v1892_v61 = vmul.f32 %v4947_v29, %v1795_v26  ;;  %v227_v5 = vld [vmem:[#allocation15 + $0x58] sm:$0xff]  ;;  %v1779_v23 = vld [vmem:[#allocation6 + $0xf58] sm:$0xff] }
 0x196   :  { %v1115_v60 = vadd.f32 %v1019_v32, %v824_v48  ;;  %v2182_v63 = vmul.f32 %v4954_v42, %v2085_v46  ;;  %v2183_v2 = vmul.f32 %v4954_v42, %v2086_v37  ;;  %v2473_v1 = vmul.f32 %v4957_v43, %v2376_v38  ;;  %v1487_v12 = vld [vmem:[#allocation6 + $0xc50] sm:$0xff]  ;;  %v2070_v26 = vld [vmem:[#allocation6 + $0x1258] sm:$0xff] }
 0x197   :  { %v2583_v62 = vadd.f32 %v2487_v8, %v2292_v33  ;;  %v2584_v50 = vadd.f32 %v2488_v24, %v2293_v44  ;;  %v1405_v4 = vadd.f32 %v1309_v30, %v1114_v40  ;;  %v420_v59 = vmul.f32 %v4928_v6, %v323_v53  ;;  %v1778_v14 = vld [vmem:[#allocation6 + $0xf50] sm:$0xff] }
 0x198   :  { %v1406_v55 = vadd.f32 %v1310_v45, %v1115_v60  ;;  %v421_v13 = vmul.f32 %v4928_v6, %v324_v39  ;;  %v711_v8 = vmul.f32 %v4932_v11, %v614_v57  ;;  %v712_v54 = vmul.f32 %v4932_v11, %v615_v56  ;;  %v2069_v30 = vld [vmem:[#allocation6 + $0x1250] sm:$0xff]  ;;  %v663_v39 = vld [vmem:[#allocation6 + $0x4d8] sm:$0xff]  ;;  %v274_v57 = vld [vmem:[#allocation15 + $0x1d0] sm:$0xff] }
 0x199   :  { %v1002_v3 = vmul.f32 %v4936_v16, %v905_v47  ;;  %v4214_v22 = vpack.c.bf16 %v2584_v50, %v2583_v62  ;;  %v1696_v20 = vadd.f32 %v1600_v51, %v1405_v4  ;;  %v516_v10 = vadd.f32 %v420_v59, %v226_v49  ;;  %v2360_v35 = vld [vmem:[#allocation6 + $0x1550] sm:$0xff]  ;;  %v3550_v47 = vld [vmem:[%s6080_s13 + $0x8] sm:$0xff]  ;;  %v954_v4 = vld [vmem:[#allocation6 + $0x7d8] sm:$0xff] }
 0x19a   :  { %v1697_v25 = vadd.f32 %v1601_v52, %v1406_v55  ;;  %v2474_v21 = vmul.f32 %v4957_v43, %v2377_v0  ;;  %v517_v36 = vadd.f32 %v421_v13, %v227_v5  ;;  %v1003_v27 = vmul.f32 %v4936_v16, %v906_v9  ;;  %v371_v37 = vld [vmem:[#allocation6 + $0x1d0] sm:$0xff]  ;;  %v2361_v0 = vld [vmem:[#allocation6 + $0x1558] sm:$0xff]  ;;  %3625 = vmatprep.mubr.f32.mxu0 %v3550_v47 }
 0x19b   :  { %v1293_v15 = vmul.f32 %v4938_v17, %v1196_v7  ;;  %4215 = vmatpush3.bf16.msra.mxu1 %v4214_v22  ;;  %v1987_v31 = vadd.f32 %v1891_v58, %v1696_v20  ;;  %v807_v24 = vadd.f32 %v711_v8, %v516_v10  ;;  %v1294_v32 = vmul.f32 %v4938_v17, %v1197_v19  ;;  %v372_v58 = vld [vmem:[#allocation6 + $0x1d8] sm:$0xff]  ;;  %v662_v53 = vld [vmem:[#allocation6 + $0x4d0] sm:$0xff] }
 0x19c   :  { %v1988_v34 = vadd.f32 %v1892_v61, %v1697_v25  ;;  %v808_v41 = vadd.f32 %v712_v54, %v517_v36  ;;  %v1584_v48 = vmul.f32 %v4945_v28, %v1487_v12  ;;  %v1585_v45 = vmul.f32 %v4945_v28, %v1488_v18  ;;  %v953_v56 = vld [vmem:[#allocation6 + $0x7d0] sm:$0xff]  ;;  %v1245_v13 = vld [vmem:[#allocation6 + $0xad8] sm:$0xff] }
 0x19d   :  { %v1875_v46 = vmul.f32 %v4947_v29, %v1778_v14  ;;  %v2278_v38 = vadd.f32 %v2182_v63, %v1987_v31  ;;  %v1098_v51 = vadd.f32 %v1002_v3, %v807_v24  ;;  %v1876_v52 = vmul.f32 %v4947_v29, %v1779_v23  ;;  %v275_v49 = vld [vmem:[#allocation15 + $0x1d8] sm:$0xff]  ;;  %v1536_v22 = vld [vmem:[#allocation6 + $0xdd8] sm:$0xff] }
 0x19e   :  { %v2279_v33 = vadd.f32 %v2183_v2, %v1988_v34  ;;  %v1099_v44 = vadd.f32 %v1003_v27, %v808_v41  ;;  %v2166_v40 = vmul.f32 %v4954_v42, %v2069_v30  ;;  %v2167_v60 = vmul.f32 %v4954_v42, %v2070_v26  ;;  %v1244_v7 = vld [vmem:[#allocation6 + $0xad0] sm:$0xff]  ;;  %v1827_v14 = vld [vmem:[#allocation6 + $0x10d8] sm:$0xff] }
 0x19f   :  { %v2457_v61 = vmul.f32 %v4957_v43, %v2360_v35  ;;  %v2569_v62 = vadd.f32 %v2473_v1, %v2278_v38  ;;  %v1389_v2 = vadd.f32 %v1293_v15, %v1098_v51  ;;  %v468_v50 = vmul.f32 %v4928_v6, %v371_v37  ;;  %v1535_v19 = vld [vmem:[#allocation6 + $0xdd0] sm:$0xff]  ;;  %v2118_v31 = vld [vmem:[#allocation6 + $0x13d8] sm:$0xff] }
 0x1a0   :  { %v2570_v63 = vadd.f32 %v2474_v21, %v2279_v33  ;;  %v1390_v55 = vadd.f32 %v1294_v32, %v1099_v44  ;;  %v469_v5 = vmul.f32 %v4928_v6, %v372_v58  ;;  %v759_v59 = vmul.f32 %v4932_v11, %v662_v53  ;;  %v1826_v18 = vld [vmem:[#allocation6 + $0x10d0] sm:$0xff]  ;;  %v356_v37 = vld [vmem:[#allocation6 + $0x158] sm:$0xff]  ;;  %v258_v53 = vld [vmem:[#allocation15 + $0x150] sm:$0xff] }
 0x1a1   :  { %v760_v9 = vmul.f32 %v4932_v11, %v663_v39  ;;  %v1680_v54 = vadd.f32 %v1584_v48, %v1389_v2  ;;  %v564_v1 = vadd.f32 %v468_v50, %v274_v57  ;;  %v1050_v3 = vmul.f32 %v4936_v16, %v953_v56  ;;  %v2117_v23 = vld [vmem:[#allocation6 + $0x13d0] sm:$0xff]  ;;  %v647_v39 = vld [vmem:[#allocation6 + $0x458] sm:$0xff] }
 0x1a2   :  { %v4184_v8 = vpack.c.bf16 %v2570_v63, %v2569_v62  ;;  %v1681_v20 = vadd.f32 %v1585_v45, %v1390_v55  ;;  %v2458_v25 = vmul.f32 %v4957_v43, %v2361_v0  ;;  %v565_v10 = vadd.f32 %v469_v5, %v275_v49  ;;  %v2408_v26 = vld [vmem:[#allocation6 + $0x16d0] sm:$0xff]  ;;  %v938_v63 = vld [vmem:[#allocation6 + $0x758] sm:$0xff] }
 0x1a3   :  { %v1051_v12 = vmul.f32 %v4936_v16, %v954_v4  ;;  %v1971_v21 = vadd.f32 %v1875_v46, %v1680_v54  ;;  %v855_v36 = vadd.f32 %v759_v59, %v564_v1  ;;  %v1341_v27 = vmul.f32 %v4938_v17, %v1244_v7  ;;  %v355_v35 = vld [vmem:[#allocation6 + $0x150] sm:$0xff]  ;;  %v2409_v49 = vld [vmem:[#allocation6 + $0x16d8] sm:$0xff] }
 0x1a4   :  { %4185 = vmatprep.subr.bf16.mxu0 %v4184_v8  ;;  %v1342_v15 = vmul.f32 %v4938_v17, %v1245_v13  ;;  %v1972_v34 = vadd.f32 %v1876_v52, %v1681_v20  ;;  %v856_v24 = vadd.f32 %v760_v9, %v565_v10  ;;  %v1632_v32 = vmul.f32 %v4945_v28, %v1535_v19  ;;  %v646_v38 = vld [vmem:[#allocation6 + $0x450] sm:$0xff]  ;;  %v1229_v9 = vld [vmem:[#allocation6 + $0xa58] sm:$0xff] }
 0x1a5   :  { %v1633_v30 = vmul.f32 %v4945_v28, %v1536_v22  ;;  %v2262_v41 = vadd.f32 %v2166_v40, %v1971_v21  ;;  %v1146_v48 = vadd.f32 %v1050_v3, %v855_v36  ;;  %v1923_v45 = vmul.f32 %v4947_v29, %v1826_v18  ;;  %v937_v44 = vld [vmem:[#allocation6 + $0x750] sm:$0xff]  ;;  %v1520_v3 = vld [vmem:[#allocation6 + $0xd58] sm:$0xff] }
 0x1a6   :  { %v1924_v46 = vmul.f32 %v4947_v29, %v1827_v14  ;;  %v2263_v33 = vadd.f32 %v2167_v60, %v1972_v34  ;;  %v1147_v51 = vadd.f32 %v1051_v12, %v856_v24  ;;  %v2214_v58 = vmul.f32 %v4954_v42, %v2117_v23  ;;  %v259_v47 = vld [vmem:[#allocation15 + $0x158] sm:$0xff]  ;;  %v1811_v12 = vld [vmem:[#allocation6 + $0x1058] sm:$0xff] }
 0x1a7   :  { %v2215_v52 = vmul.f32 %v4954_v42, %v2118_v31  ;;  %v2553_v57 = vadd.f32 %v2457_v61, %v2262_v41  ;;  %v1437_v56 = vadd.f32 %v1341_v27, %v1146_v48  ;;  %v2505_v40 = vmul.f32 %v4957_v43, %v2408_v26  ;;  %v1228_v4 = vld [vmem:[#allocation6 + $0xa50] sm:$0xff]  ;;  %v3552_v14 = vld [vmem:[%s6080_s13 + $0x18] sm:$0xff]  ;;  %v341_v26 = vld [vmem:[#allocation6 + $0xe0] sm:$0xff] }
 0x1a8   :  { %v452_v62 = vmul.f32 %v4928_v6, %v355_v35  ;;  %v2554_v2 = vadd.f32 %v2458_v25, %v2263_v33  ;;  %v1438_v0 = vadd.f32 %v1342_v15, %v1147_v51  ;;  %v453_v60 = vmul.f32 %v4928_v6, %v356_v37  ;;  %v1519_v7 = vld [vmem:[#allocation6 + $0xd50] sm:$0xff]  ;;  %v2102_v23 = vld [vmem:[#allocation6 + $0x1358] sm:$0xff]  ;;  %v342_v35 = vld [vmem:[#allocation6 + $0xe8] sm:$0xff]  ;;  %3695 = vmatprep.mubr.f32.mxu1 %v3552_v14 }
 0x1a9   :  { %v743_v50 = vmul.f32 %v4932_v11, %v646_v38  ;;  %v1728_v55 = vadd.f32 %v1632_v32, %v1437_v56  ;;  %v744_v59 = vmul.f32 %v4932_v11, %v647_v39  ;;  %v1034_v61 = vmul.f32 %v4936_v16, %v937_v44  ;;  %v1810_v19 = vld [vmem:[#allocation6 + $0x1050] sm:$0xff]  ;;  %v632_v37 = vld [vmem:[#allocation6 + $0x3e0] sm:$0xff]  ;;  %v633_v38 = vld [vmem:[#allocation6 + $0x3e8] sm:$0xff] }
 0x1aa   :  { %v548_v5 = vadd.f32 %v452_v62, %v258_v53  ;;  %v4186_v13 = vpack.c.bf16 %v2554_v2, %v2553_v57  ;;  %v1729_v8 = vadd.f32 %v1633_v30, %v1438_v0  ;;  %v549_v54 = vadd.f32 %v453_v60, %v259_v47  ;;  %v2101_v18 = vld [vmem:[#allocation6 + $0x1350] sm:$0xff]  ;;  %v923_v33 = vld [vmem:[#allocation6 + $0x6e0] sm:$0xff]  ;;  %v244_v44 = vld [vmem:[#allocation15 + $0xe0] sm:$0xff] }
 0x1ab   :  { %v1035_v1 = vmul.f32 %v4936_v16, %v938_v63  ;;  %v2019_v22 = vadd.f32 %v1923_v45, %v1728_v55  ;;  %v2506_v20 = vmul.f32 %v4957_v43, %v2409_v49  ;;  %v1325_v10 = vmul.f32 %v4938_v17, %v1228_v4  ;;  %v2392_v31 = vld [vmem:[#allocation6 + $0x1650] sm:$0xff]  ;;  %v245_v57 = vld [vmem:[#allocation15 + $0xe8] sm:$0xff]  ;;  %v2393_v62 = vld [vmem:[#allocation6 + $0x1658] sm:$0xff] }
 0x1ac   :  { %v839_v25 = vadd.f32 %v743_v50, %v548_v5  ;;  %4187 = vmatpush3.bf16.msra.mxu0 %v4186_v13  ;;  %v2020_v21 = vadd.f32 %v1924_v46, %v1729_v8  ;;  %v840_v36 = vadd.f32 %v744_v59, %v549_v54  ;;  %v1326_v27 = vmul.f32 %v4938_v17, %v1229_v9  ;;  %v924_v2 = vld [vmem:[#allocation6 + $0x6e8] sm:$0xff]  ;;  %v1214_v0 = vld [vmem:[#allocation6 + $0x9e0] sm:$0xff] }
 0x1ad   :  { %v1616_v15 = vmul.f32 %v4945_v28, %v1519_v7  ;;  %v2310_v34 = vadd.f32 %v2214_v58, %v2019_v22  ;;  %v1617_v32 = vmul.f32 %v4945_v28, %v1520_v3  ;;  %v1907_v30 = vmul.f32 %v4947_v29, %v1810_v19  ;;  %v1215_v4 = vld [vmem:[#allocation6 + $0x9e8] sm:$0xff]  ;;  %v1505_v9 = vld [vmem:[#allocation6 + $0xce0] sm:$0xff] }
 0x1ae   :  { %v1130_v24 = vadd.f32 %v1034_v61, %v839_v25  ;;  %v2311_v41 = vadd.f32 %v2215_v52, %v2020_v21  ;;  %v1131_v48 = vadd.f32 %v1035_v1, %v840_v36  ;;  %v1908_v45 = vmul.f32 %v4947_v29, %v1811_v12  ;;  %v1506_v7 = vld [vmem:[#allocation6 + $0xce8] sm:$0xff]  ;;  %v1796_v13 = vld [vmem:[#allocation6 + $0xfe0] sm:$0xff] }
 0x1af   :  { %v2198_v46 = vmul.f32 %v4954_v42, %v2101_v18  ;;  %v2601_v51 = vadd.f32 %v2505_v40, %v2310_v34  ;;  %v2199_v58 = vmul.f32 %v4954_v42, %v2102_v23  ;;  %v2489_v39 = vmul.f32 %v4957_v43, %v2392_v31  ;;  %v1797_v19 = vld [vmem:[#allocation6 + $0xfe8] sm:$0xff]  ;;  %v2087_v12 = vld [vmem:[#allocation6 + $0x12e0] sm:$0xff] }
 0x1b0   :  { %v1421_v53 = vadd.f32 %v1325_v10, %v1130_v24  ;;  %v2602_v56 = vadd.f32 %v2506_v20, %v2311_v41  ;;  %v1422_v47 = vadd.f32 %v1326_v27, %v1131_v48  ;;  %v438_v52 = vmul.f32 %v4928_v6, %v341_v26  ;;  %v2088_v18 = vld [vmem:[#allocation6 + $0x12e8] sm:$0xff]  ;;  %v2378_v14 = vld [vmem:[#allocation6 + $0x15e0] sm:$0xff] }
 0x1b1   :  { %v439_v63 = vmul.f32 %v4928_v6, %v342_v35  ;;  %v729_v60 = vmul.f32 %v4932_v11, %v632_v37  ;;  %v730_v40 = vmul.f32 %v4932_v11, %v633_v38  ;;  %v1020_v50 = vmul.f32 %v4936_v16, %v923_v33  ;;  %v325_v23 = vld [vmem:[#allocation6 + $0x60] sm:$0xff]  ;;  %v326_v31 = vld [vmem:[#allocation6 + $0x68] sm:$0xff]  ;;  %v228_v33 = vld [vmem:[#allocation15 + $0x60] sm:$0xff] }
 0x1b2   :  { %v1712_v49 = vadd.f32 %v1616_v15, %v1421_v53  ;;  %v4216_v55 = vpack.c.bf16 %v2602_v56, %v2601_v51  ;;  %v1713_v5 = vadd.f32 %v1617_v32, %v1422_v47  ;;  %v534_v59 = vadd.f32 %v438_v52, %v244_v44  ;;  %v616_v26 = vld [vmem:[#allocation6 + $0x360] sm:$0xff]  ;;  %v617_v35 = vld [vmem:[#allocation6 + $0x368] sm:$0xff] }
 0x1b3   :  { %v535_v61 = vadd.f32 %v439_v63, %v245_v57  ;;  %v2490_v54 = vmul.f32 %v4957_v43, %v2393_v62  ;;  %v1021_v1 = vmul.f32 %v4936_v16, %v924_v2  ;;  %v1311_v3 = vmul.f32 %v4938_v17, %v1214_v0  ;;  %v907_v41 = vld [vmem:[#allocation6 + $0x660] sm:$0xff]  ;;  %v2379_v37 = vld [vmem:[#allocation6 + $0x15e8] sm:$0xff] }
 0x1b4   :  { %v2003_v8 = vadd.f32 %v1907_v30, %v1712_v49  ;;  %4217 = vmatprep.subr.bf16.mxu1 %v4216_v55  ;;  %v2004_v22 = vadd.f32 %v1908_v45, %v1713_v5  ;;  %v825_v20 = vadd.f32 %v729_v60, %v534_v59  ;;  %v1312_v10 = vmul.f32 %v4938_v17, %v1215_v4  ;;  %v908_v56 = vld [vmem:[#allocation6 + $0x668] sm:$0xff]  ;;  %v1198_v47 = vld [vmem:[#allocation6 + $0x960] sm:$0xff] }
 0x1b5   :  { %v826_v25 = vadd.f32 %v730_v40, %v535_v61  ;;  %v1602_v36 = vmul.f32 %v4945_v28, %v1505_v9  ;;  %v1603_v27 = vmul.f32 %v4945_v28, %v1506_v7  ;;  %v1893_v15 = vmul.f32 %v4947_v29, %v1796_v13  ;;  %v1199_v2 = vld [vmem:[#allocation6 + $0x968] sm:$0xff]  ;;  %v1780_v55 = vld [vmem:[#allocation6 + $0xf60] sm:$0xff] }
 0x1b6   :  { %v2294_v21 = vadd.f32 %v2198_v46, %v2003_v8  ;;  %v2295_v34 = vadd.f32 %v2199_v58, %v2004_v22  ;;  %v1116_v24 = vadd.f32 %v1020_v50, %v825_v20  ;;  %v1894_v30 = vmul.f32 %v4947_v29, %v1797_v19  ;;  %v229_v58 = vld [vmem:[#allocation15 + $0x68] sm:$0xff]  ;;  %v1490_v4 = vld [vmem:[#allocation6 + $0xc68] sm:$0xff] }
 0x1b7   :  { %v1117_v32 = vadd.f32 %v1021_v1, %v826_v25  ;;  %v2184_v45 = vmul.f32 %v4954_v42, %v2087_v12  ;;  %v2185_v46 = vmul.f32 %v4954_v42, %v2088_v18  ;;  %v2475_v38 = vmul.f32 %v4957_v43, %v2378_v14  ;;  %v1489_v50 = vld [vmem:[#allocation6 + $0xc60] sm:$0xff]  ;;  %v1781_v7 = vld [vmem:[#allocation6 + $0xf68] sm:$0xff] }
 0x1b8   :  { %v2585_v48 = vadd.f32 %v2489_v39, %v2294_v21  ;;  %v2586_v51 = vadd.f32 %v2490_v54, %v2295_v34  ;;  %v1407_v53 = vadd.f32 %v1311_v3, %v1116_v24  ;;  %v422_v57 = vmul.f32 %v4928_v6, %v325_v23  ;;  %v2071_v3 = vld [vmem:[#allocation6 + $0x1260] sm:$0xff]  ;;  %v2072_v19 = vld [vmem:[#allocation6 + $0x1268] sm:$0xff] }
 0x1b9   :  { %v1408_v44 = vadd.f32 %v1312_v10, %v1117_v32  ;;  %v423_v62 = vmul.f32 %v4928_v6, %v326_v31  ;;  %v713_v39 = vmul.f32 %v4932_v11, %v616_v26  ;;  %v714_v52 = vmul.f32 %v4932_v11, %v617_v35  ;;  %v2362_v22 = vld [vmem:[#allocation6 + $0x1560] sm:$0xff]  ;;  %v665_v31 = vld [vmem:[#allocation6 + $0x4e8] sm:$0xff]  ;;  %v276_v26 = vld [vmem:[#allocation15 + $0x1e0] sm:$0xff] }
 0x1ba   :  { %v1004_v63 = vmul.f32 %v4936_v16, %v907_v41  ;;  %v4218_v0 = vpack.c.bf16 %v2586_v51, %v2585_v48  ;;  %v1698_v49 = vadd.f32 %v1602_v36, %v1407_v53  ;;  %v518_v40 = vadd.f32 %v422_v57, %v228_v33  ;;  %v373_v18 = vld [vmem:[#allocation6 + $0x1e0] sm:$0xff]  ;;  %v956_v51 = vld [vmem:[#allocation6 + $0x7e8] sm:$0xff] }
 0x1bb   :  { %v1699_v60 = vadd.f32 %v1603_v27, %v1408_v44  ;;  %v2476_v5 = vmul.f32 %v4957_v43, %v2379_v37  ;;  %v519_v59 = vadd.f32 %v423_v62, %v229_v58  ;;  %v1005_v61 = vmul.f32 %v4936_v16, %v908_v56  ;;  %v664_v23 = vld [vmem:[#allocation6 + $0x4e0] sm:$0xff] }
 0x1bc   :  { %v1295_v9 = vmul.f32 %v4938_v17, %v1198_v47  ;;  %4219 = vmatpush3.bf16.msra.mxu1 %v4218_v0  ;;  %v1989_v13 = vadd.f32 %v1893_v15, %v1698_v49  ;;  %v809_v54 = vadd.f32 %v713_v39, %v518_v40  ;;  %v1296_v1 = vmul.f32 %v4938_v17, %v1199_v2  ;;  %v374_v15 = vld [vmem:[#allocation6 + $0x1e8] sm:$0xff]  ;;  %v955_v35 = vld [vmem:[#allocation6 + $0x7e0] sm:$0xff] }
 0x1bd   :  { %v1990_v8 = vadd.f32 %v1894_v30, %v1699_v60  ;;  %v810_v20 = vadd.f32 %v714_v52, %v519_v59  ;;  %v1586_v25 = vmul.f32 %v4945_v28, %v1489_v50  ;;  %v1587_v10 = vmul.f32 %v4945_v28, %v1490_v4  ;;  %v1246_v56 = vld [vmem:[#allocation6 + $0xae0] sm:$0xff]  ;;  %v1247_v47 = vld [vmem:[#allocation6 + $0xae8] sm:$0xff] }
 0x1be   :  { %v1877_v12 = vmul.f32 %v4947_v29, %v1780_v55  ;;  %v2280_v14 = vadd.f32 %v2184_v45, %v1989_v13  ;;  %v1100_v36 = vadd.f32 %v1004_v63, %v809_v54  ;;  %v1878_v27 = vmul.f32 %v4947_v29, %v1781_v7  ;;  %v2363_v45 = vld [vmem:[#allocation6 + $0x1568] sm:$0xff]  ;;  %v1537_v63 = vld [vmem:[#allocation6 + $0xde0] sm:$0xff] }
 0x1bf   :  { %v2281_v21 = vadd.f32 %v2185_v46, %v1990_v8  ;;  %v1101_v34 = vadd.f32 %v1005_v61, %v810_v20  ;;  %v2168_v24 = vmul.f32 %v4954_v42, %v2071_v3  ;;  %v2169_v32 = vmul.f32 %v4954_v42, %v2072_v19  ;;  %v277_v46 = vld [vmem:[#allocation15 + $0x1e8] sm:$0xff]  ;;  %v1538_v2 = vld [vmem:[#allocation6 + $0xde8] sm:$0xff] }
 0x1c0   :  { %v2459_v30 = vmul.f32 %v4957_v43, %v2362_v22  ;;  %v2571_v41 = vadd.f32 %v2475_v38, %v2280_v14  ;;  %v1391_v37 = vadd.f32 %v1295_v9, %v1100_v36  ;;  %v470_v33 = vmul.f32 %v4928_v6, %v373_v18  ;;  %v1828_v50 = vld [vmem:[#allocation6 + $0x10e0] sm:$0xff]  ;;  %v1829_v4 = vld [vmem:[#allocation6 + $0x10e8] sm:$0xff] }
 0x1c1   :  { %v2572_v48 = vadd.f32 %v2476_v5, %v2281_v21  ;;  %v1392_v53 = vadd.f32 %v1296_v1, %v1101_v34  ;;  %v471_v44 = vmul.f32 %v4928_v6, %v374_v15  ;;  %v761_v58 = vmul.f32 %v4932_v11, %v664_v23  ;;  %v2119_v9 = vld [vmem:[#allocation6 + $0x13e0] sm:$0xff]  ;;  %v2120_v7 = vld [vmem:[#allocation6 + $0x13e8] sm:$0xff]  ;;  %v260_v15 = vld [vmem:[#allocation15 + $0x160] sm:$0xff] }
 0x1c2   :  { %v762_v57 = vmul.f32 %v4932_v11, %v665_v31  ;;  %v1682_v39 = vadd.f32 %v1586_v25, %v1391_v37  ;;  %v566_v52 = vadd.f32 %v470_v33, %v276_v26  ;;  %v1052_v38 = vmul.f32 %v4936_v16, %v955_v35  ;;  %v2410_v3 = vld [vmem:[#allocation6 + $0x16e0] sm:$0xff]  ;;  %v649_v23 = vld [vmem:[#allocation6 + $0x468] sm:$0xff] }
 0x1c3   :  { %v4188_v62 = vpack.c.bf16 %v2572_v48, %v2571_v41  ;;  %v1683_v0 = vadd.f32 %v1587_v10, %v1392_v53  ;;  %v2460_v49 = vmul.f32 %v4957_v43, %v2363_v45  ;;  %v567_v60 = vadd.f32 %v471_v44, %v277_v46  ;;  %v357_v19 = vld [vmem:[#allocation6 + $0x160] sm:$0xff]  ;;  %v940_v48 = vld [vmem:[#allocation6 + $0x768] sm:$0xff] }
 0x1c4   :  { %v1053_v40 = vmul.f32 %v4936_v16, %v956_v51  ;;  %v1973_v55 = vadd.f32 %v1877_v12, %v1682_v39  ;;  %v857_v5 = vadd.f32 %v761_v58, %v566_v52  ;;  %v1343_v59 = vmul.f32 %v4938_v17, %v1246_v56  ;;  %v358_v12 = vld [vmem:[#allocation6 + $0x168] sm:$0xff]  ;;  %v648_v18 = vld [vmem:[#allocation6 + $0x460] sm:$0xff] }
 0x1c5   :  { %4189 = vmatprep.subr.bf16.mxu0 %v4188_v62  ;;  %v1344_v61 = vmul.f32 %v4938_v17, %v1247_v47  ;;  %v1974_v13 = vadd.f32 %v1878_v27, %v1683_v0  ;;  %v858_v8 = vadd.f32 %v762_v57, %v567_v60  ;;  %v1634_v54 = vmul.f32 %v4945_v28, %v1537_v63  ;;  %v939_v31 = vld [vmem:[#allocation6 + $0x760] sm:$0xff]  ;;  %v2411_v46 = vld [vmem:[#allocation6 + $0x16e8] sm:$0xff] }
 0x1c6   :  { %v1635_v1 = vmul.f32 %v4945_v28, %v1538_v2  ;;  %v2264_v22 = vadd.f32 %v2168_v24, %v1973_v55  ;;  %v1148_v20 = vadd.f32 %v1052_v38, %v857_v5  ;;  %v1925_v25 = vmul.f32 %v4947_v29, %v1828_v50  ;;  %v261_v35 = vld [vmem:[#allocation15 + $0x168] sm:$0xff]  ;;  %v1231_v57 = vld [vmem:[#allocation6 + $0xa68] sm:$0xff] }
 0x1c7   :  { %v1926_v10 = vmul.f32 %v4947_v29, %v1829_v4  ;;  %v2265_v14 = vadd.f32 %v2169_v32, %v1974_v13  ;;  %v1149_v21 = vadd.f32 %v1053_v40, %v858_v8  ;;  %v2216_v36 = vmul.f32 %v4954_v42, %v2119_v9  ;;  %v1230_v51 = vld [vmem:[#allocation6 + $0xa60] sm:$0xff]  ;;  %v1522_v38 = vld [vmem:[#allocation6 + $0xd68] sm:$0xff] }
 0x1c8   :  { %v2217_v27 = vmul.f32 %v4954_v42, %v2120_v7  ;;  %v2555_v34 = vadd.f32 %v2459_v30, %v2264_v22  ;;  %v1439_v26 = vadd.f32 %v1343_v59, %v1148_v20  ;;  %v2507_v24 = vmul.f32 %v4957_v43, %v2410_v3  ;;  %v1521_v56 = vld [vmem:[#allocation6 + $0xd60] sm:$0xff]  ;;  %v1813_v40 = vld [vmem:[#allocation6 + $0x1068] sm:$0xff]  ;;  %v344_v3 = vld [vmem:[#allocation6 + $0xf8] sm:$0xff] }
 0x1c9   :  { %v454_v41 = vmul.f32 %v4928_v6, %v357_v19  ;;  %v2556_v37 = vadd.f32 %v2460_v49, %v2265_v14  ;;  %v1440_v45 = vadd.f32 %v1344_v61, %v1149_v21  ;;  %v455_v32 = vmul.f32 %v4928_v6, %v358_v12  ;;  %v1812_v63 = vld [vmem:[#allocation6 + $0x1060] sm:$0xff]  ;;  %v2104_v61 = vld [vmem:[#allocation6 + $0x1368] sm:$0xff]  ;;  %v635_v12 = vld [vmem:[#allocation6 + $0x3f8] sm:$0xff] }
 0x1ca   :  { %v745_v33 = vmul.f32 %v4932_v11, %v648_v18  ;;  %v1730_v53 = vadd.f32 %v1634_v54, %v1439_v26  ;;  %v746_v58 = vmul.f32 %v4932_v11, %v649_v23  ;;  %v1036_v30 = vmul.f32 %v4936_v16, %v939_v31  ;;  %v2103_v50 = vld [vmem:[#allocation6 + $0x1360] sm:$0xff]  ;;  %v925_v18 = vld [vmem:[#allocation6 + $0x6f0] sm:$0xff]  ;;  %v246_v23 = vld [vmem:[#allocation15 + $0xf0] sm:$0xff] }
 0x1cb   :  { %v550_v44 = vadd.f32 %v454_v41, %v260_v15  ;;  %v4190_v47 = vpack.c.bf16 %v2556_v37, %v2555_v34  ;;  %v1731_v62 = vadd.f32 %v1635_v1, %v1440_v45  ;;  %v551_v39 = vadd.f32 %v455_v32, %v261_v35  ;;  %v2394_v9 = vld [vmem:[#allocation6 + $0x1660] sm:$0xff]  ;;  %v343_v1 = vld [vmem:[#allocation6 + $0xf0] sm:$0xff]  ;;  %v2395_v35 = vld [vmem:[#allocation6 + $0x1668] sm:$0xff] }
 0x1cc   :  { %v1037_v52 = vmul.f32 %v4936_v16, %v940_v48  ;;  %v2021_v2 = vadd.f32 %v1925_v25, %v1730_v53  ;;  %v2508_v0 = vmul.f32 %v4957_v43, %v2411_v46  ;;  %v1327_v60 = vmul.f32 %v4938_v17, %v1230_v51  ;;  %v247_v31 = vld [vmem:[#allocation15 + $0xf8] sm:$0xff]  ;;  %v926_v48 = vld [vmem:[#allocation6 + $0x6f8] sm:$0xff] }
 0x1cd   :  { %v841_v49 = vadd.f32 %v745_v33, %v550_v44  ;;  %4191 = vmatpush3.bf16.msra.mxu0 %v4190_v47  ;;  %v2022_v4 = vadd.f32 %v1926_v10, %v1731_v62  ;;  %v842_v55 = vadd.f32 %v746_v58, %v551_v39  ;;  %v1328_v5 = vmul.f32 %v4938_v17, %v1231_v57  ;;  %v634_v10 = vld [vmem:[#allocation6 + $0x3f0] sm:$0xff]  ;;  %v1217_v33 = vld [vmem:[#allocation6 + $0x9f8] sm:$0xff] }
 0x1ce   :  { %v1618_v59 = vmul.f32 %v4945_v28, %v1521_v56  ;;  %v2312_v7 = vadd.f32 %v2216_v36, %v2021_v2  ;;  %v1619_v8 = vmul.f32 %v4945_v28, %v1522_v38  ;;  %v1909_v54 = vmul.f32 %v4947_v29, %v1812_v63  ;;  %v1216_v37 = vld [vmem:[#allocation6 + $0x9f0] sm:$0xff]  ;;  %v1508_v57 = vld [vmem:[#allocation6 + $0xcf8] sm:$0xff] }
 0x1cf   :  { %v1132_v13 = vadd.f32 %v1036_v30, %v841_v49  ;;  %v2313_v19 = vadd.f32 %v2217_v27, %v2022_v4  ;;  %v1133_v22 = vadd.f32 %v1037_v52, %v842_v55  ;;  %v1910_v20 = vmul.f32 %v4947_v29, %v1813_v40  ;;  %v1507_v30 = vld [vmem:[#allocation6 + $0xcf0] sm:$0xff]  ;;  %v1799_v38 = vld [vmem:[#allocation6 + $0xff8] sm:$0xff] }
 0x1d0   :  { %v2200_v25 = vmul.f32 %v4954_v42, %v2103_v50  ;;  %v2603_v14 = vadd.f32 %v2507_v24, %v2312_v7  ;;  %v2201_v36 = vmul.f32 %v4954_v42, %v2104_v61  ;;  %v2491_v15 = vmul.f32 %v4957_v43, %v2394_v9  ;;  %v1798_v56 = vld [vmem:[#allocation6 + $0xff0] sm:$0xff]  ;;  %v2090_v40 = vld [vmem:[#allocation6 + $0x12f8] sm:$0xff] }
 0x1d1   :  { %v1423_v21 = vadd.f32 %v1327_v60, %v1132_v13  ;;  %v2604_v34 = vadd.f32 %v2508_v0, %v2313_v19  ;;  %v1424_v26 = vadd.f32 %v1328_v5, %v1133_v22  ;;  %v440_v27 = vmul.f32 %v4928_v6, %v343_v1  ;;  %v2089_v60 = vld [vmem:[#allocation6 + $0x12f0] sm:$0xff]  ;;  %v328_v9 = vld [vmem:[#allocation6 + $0x78] sm:$0xff] }
 0x1d2   :  { %v441_v41 = vmul.f32 %v4928_v6, %v344_v3  ;;  %v731_v46 = vmul.f32 %v4932_v11, %v634_v10  ;;  %v732_v24 = vmul.f32 %v4932_v11, %v635_v12  ;;  %v1022_v32 = vmul.f32 %v4936_v16, %v925_v18  ;;  %v2380_v50 = vld [vmem:[#allocation6 + $0x15f0] sm:$0xff]  ;;  %v619_v3 = vld [vmem:[#allocation6 + $0x378] sm:$0xff]  ;;  %v230_v18 = vld [vmem:[#allocation15 + $0x70] sm:$0xff] }
 0x1d3   :  { %v1714_v45 = vadd.f32 %v1618_v59, %v1423_v21  ;;  %v4220_v51 = vpack.c.bf16 %v2604_v34, %v2603_v14  ;;  %v1715_v53 = vadd.f32 %v1619_v8, %v1424_v26  ;;  %v536_v44 = vadd.f32 %v440_v27, %v246_v23  ;;  %v327_v61 = vld [vmem:[#allocation6 + $0x70] sm:$0xff]  ;;  %v2381_v10 = vld [vmem:[#allocation6 + $0x15f8] sm:$0xff] }
 0x1d4   :  { %v537_v58 = vadd.f32 %v441_v41, %v247_v31  ;;  %v2492_v62 = vmul.f32 %v4957_v43, %v2395_v35  ;;  %v1023_v39 = vmul.f32 %v4936_v16, %v926_v48  ;;  %v1313_v52 = vmul.f32 %v4938_v17, %v1216_v37  ;;  %v618_v1 = vld [vmem:[#allocation6 + $0x370] sm:$0xff]  ;;  %v910_v34 = vld [vmem:[#allocation6 + $0x678] sm:$0xff] }
 0x1d5   :  { %v2005_v47 = vadd.f32 %v1909_v54, %v1714_v45  ;;  %4221 = vmatprep.subr.bf16.mxu1 %v4220_v51  ;;  %v2006_v63 = vadd.f32 %v1910_v20, %v1715_v53  ;;  %v827_v2 = vadd.f32 %v731_v46, %v536_v44  ;;  %v1314_v49 = vmul.f32 %v4938_v17, %v1217_v33  ;;  %v909_v19 = vld [vmem:[#allocation6 + $0x670] sm:$0xff]  ;;  %v1201_v48 = vld [vmem:[#allocation6 + $0x978] sm:$0xff] }
 0x1d6   :  { %v828_v0 = vadd.f32 %v732_v24, %v537_v58  ;;  %v1604_v55 = vmul.f32 %v4945_v28, %v1507_v30  ;;  %v1605_v5 = vmul.f32 %v4945_v28, %v1508_v57  ;;  %v1895_v59 = vmul.f32 %v4947_v29, %v1798_v56  ;;  %v1200_v26 = vld [vmem:[#allocation6 + $0x970] sm:$0xff]  ;;  %v1492_v33 = vld [vmem:[#allocation6 + $0xc78] sm:$0xff] }
 0x1d7   :  { %v2296_v4 = vadd.f32 %v2200_v25, %v2005_v47  ;;  %v2297_v7 = vadd.f32 %v2201_v36, %v2006_v63  ;;  %v1118_v13 = vadd.f32 %v1022_v32, %v827_v2  ;;  %v1896_v54 = vmul.f32 %v4947_v29, %v1799_v38  ;;  %v231_v36 = vld [vmem:[#allocation15 + $0x78] sm:$0xff]  ;;  %v1783_v57 = vld [vmem:[#allocation6 + $0xf78] sm:$0xff] }
 0x1d8   :  { %v1119_v8 = vadd.f32 %v1023_v39, %v828_v0  ;;  %v2186_v20 = vmul.f32 %v4954_v42, %v2089_v60  ;;  %v2187_v25 = vmul.f32 %v4954_v42, %v2090_v40  ;;  %v2477_v12 = vmul.f32 %v4957_v43, %v2380_v50  ;;  %v1491_v32 = vld [vmem:[#allocation6 + $0xc70] sm:$0xff]  ;;  %v2074_v38 = vld [vmem:[#allocation6 + $0x1278] sm:$0xff] }
 0x1d9   :  { %v2587_v22 = vadd.f32 %v2491_v15, %v2296_v4  ;;  %v2588_v14 = vadd.f32 %v2492_v62, %v2297_v7  ;;  %v1409_v21 = vadd.f32 %v1313_v52, %v1118_v13  ;;  %v424_v31 = vmul.f32 %v4928_v6, %v327_v61  ;;  %v1782_v51 = vld [vmem:[#allocation6 + $0xf70] sm:$0xff] }
 0x1da   :  { %v1410_v23 = vadd.f32 %v1314_v49, %v1119_v8  ;;  %v425_v35 = vmul.f32 %v4928_v6, %v328_v9  ;;  %v715_v15 = vmul.f32 %v4932_v11, %v618_v1  ;;  %v716_v27 = vmul.f32 %v4932_v11, %v619_v3  ;;  %v2073_v52 = vld [vmem:[#allocation6 + $0x1270] sm:$0xff]  ;;  %v667_v9 = vld [vmem:[#allocation6 + $0x4f8] sm:$0xff]  ;;  %v278_v1 = vld [vmem:[#allocation15 + $0x1f0] sm:$0xff] }
 0x1db   :  { %v1006_v41 = vmul.f32 %v4936_v16, %v909_v19  ;;  %v4222_v37 = vpack.c.bf16 %v2588_v14, %v2587_v22  ;;  %v1700_v45 = vadd.f32 %v1604_v55, %v1409_v21  ;;  %v520_v24 = vadd.f32 %v424_v31, %v230_v18  ;;  %v2364_v63 = vld [vmem:[#allocation6 + $0x1570] sm:$0xff]  ;;  %v958_v14 = vld [vmem:[#allocation6 + $0x7f8] sm:$0xff] }
 0x1dc   :  { %v1701_v46 = vadd.f32 %v1605_v5, %v1410_v23  ;;  %v2478_v53 = vmul.f32 %v4957_v43, %v2381_v10  ;;  %v521_v44 = vadd.f32 %v425_v35, %v231_v36  ;;  %v1007_v58 = vmul.f32 %v4936_v16, %v910_v34  ;;  %v375_v40 = vld [vmem:[#allocation6 + $0x1f0] sm:$0xff] }
 0x1dd   :  { %v1297_v30 = vmul.f32 %v4938_v17, %v1200_v26  ;;  %4223 = vmatpush3.bf16.msra.mxu1 %v4222_v37  ;;  %v1991_v56 = vadd.f32 %v1895_v59, %v1700_v45  ;;  %v811_v62 = vadd.f32 %v715_v15, %v520_v24  ;;  %v1298_v39 = vmul.f32 %v4938_v17, %v1201_v48  ;;  %v376_v59 = vld [vmem:[#allocation6 + $0x1f8] sm:$0xff]  ;;  %v666_v61 = vld [vmem:[#allocation6 + $0x4f0] sm:$0xff] }
 0x1de   :  { %v1992_v47 = vadd.f32 %v1896_v54, %v1701_v46  ;;  %v812_v2 = vadd.f32 %v716_v27, %v521_v44  ;;  %v1588_v0 = vmul.f32 %v4945_v28, %v1491_v32  ;;  %v1589_v49 = vmul.f32 %v4945_v28, %v1492_v33  ;;  %v957_v3 = vld [vmem:[#allocation6 + $0x7f0] sm:$0xff]  ;;  %v1249_v26 = vld [vmem:[#allocation6 + $0xaf8] sm:$0xff] }
 0x1df   :  { %v1879_v60 = vmul.f32 %v4947_v29, %v1782_v51  ;;  %v2282_v50 = vadd.f32 %v2186_v20, %v1991_v56  ;;  %v1102_v55 = vadd.f32 %v1006_v41, %v811_v62  ;;  %v1880_v5 = vmul.f32 %v4947_v29, %v1783_v57  ;;  %v2365_v20 = vld [vmem:[#allocation6 + $0x1578] sm:$0xff]  ;;  %v1248_v34 = vld [vmem:[#allocation6 + $0xaf0] sm:$0xff] }
 0x1e0   :  { %v2283_v4 = vadd.f32 %v2187_v25, %v1992_v47  ;;  %v1103_v7 = vadd.f32 %v1007_v58, %v812_v2  ;;  %v2170_v13 = vmul.f32 %v4954_v42, %v2073_v52  ;;  %v2171_v8 = vmul.f32 %v4954_v42, %v2074_v38  ;;  %v279_v25 = vld [vmem:[#allocation15 + $0x1f8] sm:$0xff]  ;;  %v1540_v48 = vld [vmem:[#allocation6 + $0xdf8] sm:$0xff] }
 0x1e1   :  { %v2461_v54 = vmul.f32 %v4957_v43, %v2364_v63  ;;  %v2573_v19 = vadd.f32 %v2477_v12, %v2282_v50  ;;  %v1393_v10 = vadd.f32 %v1297_v30, %v1102_v55  ;;  %v472_v18 = vmul.f32 %v4928_v6, %v375_v40  ;;  %v1539_v41 = vld [vmem:[#allocation6 + $0xdf0] sm:$0xff]  ;;  %v1831_v33 = vld [vmem:[#allocation6 + $0x10f8] sm:$0xff] }
 0x1e2   :  { %v2574_v22 = vadd.f32 %v2478_v53, %v2283_v4  ;;  %v1394_v21 = vadd.f32 %v1298_v39, %v1103_v7  ;;  %v473_v23 = vmul.f32 %v4928_v6, %v376_v59  ;;  %v763_v36 = vmul.f32 %v4932_v11, %v666_v61  ;;  %v1830_v32 = vld [vmem:[#allocation6 + $0x10f0] sm:$0xff]  ;;  %v2122_v57 = vld [vmem:[#allocation6 + $0x13f8] sm:$0xff]  ;;  %v262_v59 = vld [vmem:[#allocation15 + $0x170] sm:$0xff] }
 0x1e3   :  { %v764_v31 = vmul.f32 %v4932_v11, %v667_v9  ;;  %v1684_v15 = vadd.f32 %v1588_v0, %v1393_v10  ;;  %v568_v27 = vadd.f32 %v472_v18, %v278_v1  ;;  %v1054_v12 = vmul.f32 %v4936_v16, %v957_v3  ;;  %v2121_v30 = vld [vmem:[#allocation6 + $0x13f0] sm:$0xff]  ;;  %v651_v61 = vld [vmem:[#allocation6 + $0x478] sm:$0xff] }
 0x1e4   :  { %v4192_v35 = vpack.c.bf16 %v2574_v22, %v2573_v19  ;;  %v1685_v37 = vadd.f32 %v1589_v49, %v1394_v21  ;;  %v2462_v45 = vmul.f32 %v4957_v43, %v2365_v20  ;;  %v569_v46 = vadd.f32 %v473_v23, %v279_v25  ;;  %v2412_v52 = vld [vmem:[#allocation6 + $0x16f0] sm:$0xff]  ;;  %v942_v22 = vld [vmem:[#allocation6 + $0x778] sm:$0xff] }
 0x1e5   :  { %v1055_v24 = vmul.f32 %v4936_v16, %v958_v14  ;;  %v1975_v51 = vadd.f32 %v1879_v60, %v1684_v15  ;;  %v859_v53 = vadd.f32 %v763_v36, %v568_v27  ;;  %v1345_v44 = vmul.f32 %v4938_v17, %v1248_v34  ;;  %v359_v38 = vld [vmem:[#allocation6 + $0x170] sm:$0xff]  ;;  %v360_v60 = vld [vmem:[#allocation6 + $0x178] sm:$0xff] }
 0x1e6   :  { %4193 = vmatprep.subr.bf16.mxu0 %v4192_v35  ;;  %v1346_v58 = vmul.f32 %v4938_v17, %v1249_v26  ;;  %v1976_v56 = vadd.f32 %v1880_v5, %v1685_v37  ;;  %v860_v47 = vadd.f32 %v764_v31, %v569_v46  ;;  %v1636_v62 = vmul.f32 %v4945_v28, %v1539_v41  ;;  %v650_v40 = vld [vmem:[#allocation6 + $0x470] sm:$0xff]  ;;  %v2413_v25 = vld [vmem:[#allocation6 + $0x16f8] sm:$0xff] }
 0x1e7   :  { %v1637_v39 = vmul.f32 %v4945_v28, %v1540_v48  ;;  %v2266_v63 = vadd.f32 %v2170_v13, %v1975_v51  ;;  %v1150_v2 = vadd.f32 %v1054_v12, %v859_v53  ;;  %v1927_v0 = vmul.f32 %v4947_v29, %v1830_v32  ;;  %v941_v9 = vld [vmem:[#allocation6 + $0x770] sm:$0xff]  ;;  %v1233_v31 = vld [vmem:[#allocation6 + $0xa78] sm:$0xff] }
 0x1e8   :  { %v1928_v49 = vmul.f32 %v4947_v29, %v1831_v33  ;;  %v2267_v50 = vadd.f32 %v2171_v8, %v1976_v56  ;;  %v1151_v4 = vadd.f32 %v1055_v24, %v860_v47  ;;  %v2218_v55 = vmul.f32 %v4954_v42, %v2121_v30  ;;  %v263_v3 = vld [vmem:[#allocation15 + $0x178] sm:$0xff]  ;;  %v1524_v12 = vld [vmem:[#allocation6 + $0xd78] sm:$0xff] }
 0x1e9   :  { %v2219_v5 = vmul.f32 %v4954_v42, %v2122_v57  ;;  %v2557_v7 = vadd.f32 %v2461_v54, %v2266_v63  ;;  %v1441_v1 = vadd.f32 %v1345_v44, %v1150_v2  ;;  %v2509_v13 = vmul.f32 %v4957_v43, %v2412_v52  ;;  %v1232_v14 = vld [vmem:[#allocation6 + $0xa70] sm:$0xff]  ;;  %v1815_v24 = vld [vmem:[#allocation6 + $0x1078] sm:$0xff]  ;;  %v3549_v57 = vld [vmem:[%s6080_s13] sm:$0xff] }
 0x1ea   :  { %v456_v19 = vmul.f32 %v4928_v6, %v359_v38  ;;  %v2558_v10 = vadd.f32 %v2462_v45, %v2267_v50  ;;  %v1442_v20 = vadd.f32 %v1346_v58, %v1151_v4  ;;  %v457_v8 = vmul.f32 %v4928_v6, %v360_v60  ;;  %v1523_v34 = vld [vmem:[#allocation6 + $0xd70] sm:$0xff]  ;;  %v2106_v58 = vld [vmem:[#allocation6 + $0x1378] sm:$0xff]  ;;  %v393_v52 = vld [vmem:[#allocation6 + $0x280] sm:$0xff] }
 0x1eb   :  { %v747_v18 = vmul.f32 %v4932_v11, %v650_v40  ;;  %v1732_v21 = vadd.f32 %v1636_v62, %v1441_v1  ;;  %v748_v36 = vmul.f32 %v4932_v11, %v651_v61  ;;  %v1038_v54 = vmul.f32 %v4936_v16, %v941_v9  ;;  %v1814_v41 = vld [vmem:[#allocation6 + $0x1070] sm:$0xff]  ;;  %v394_v38 = vld [vmem:[#allocation6 + $0x288] sm:$0xff]  ;;  %v684_v60 = vld [vmem:[#allocation6 + $0x580] sm:$0xff] }
 0x1ec   :  { %v552_v23 = vadd.f32 %v456_v19, %v262_v59  ;;  %v4194_v26 = vpack.c.bf16 %v2558_v10, %v2557_v7  ;;  %v1733_v35 = vadd.f32 %v1637_v39, %v1442_v20  ;;  %v553_v15 = vadd.f32 %v457_v8, %v263_v3  ;;  %v2105_v32 = vld [vmem:[#allocation6 + $0x1370] sm:$0xff]  ;;  %v685_v40 = vld [vmem:[#allocation6 + $0x588] sm:$0xff]  ;;  %v975_v50 = vld [vmem:[#allocation6 + $0x880] sm:$0xff] }
 0x1ed   :  { %v1039_v27 = vmul.f32 %v4936_v16, %v942_v22  ;;  %v2023_v48 = vadd.f32 %v1927_v0, %v1732_v21  ;;  %v2510_v37 = vmul.f32 %v4957_v43, %v2413_v25  ;;  %v1329_v46 = vmul.f32 %v4938_v17, %v1232_v14  ;;  %v2396_v30 = vld [vmem:[#allocation6 + $0x1670] sm:$0xff]  ;;  %v296_v9 = vld [vmem:[#allocation15 + $0x280] sm:$0xff]  ;;  %v297_v7 = vld [vmem:[#allocation15 + $0x288] sm:$0xff] }
 0x1ee   :  { %v843_v45 = vadd.f32 %v747_v18, %v552_v23  ;;  %4195 = vmatpush3.bf16.msra.mxu0 %v4194_v26  ;;  %v2024_v33 = vadd.f32 %v1928_v49, %v1733_v35  ;;  %v844_v51 = vadd.f32 %v748_v36, %v553_v15  ;;  %v1330_v53 = vmul.f32 %v4938_v17, %v1233_v31  ;;  %v976_v10 = vld [vmem:[#allocation6 + $0x888] sm:$0xff]  ;;  %v1266_v20 = vld [vmem:[#allocation6 + $0xb80] sm:$0xff] }
 0x1ef   :  { %v1620_v44 = vmul.f32 %v4945_v28, %v1523_v34  ;;  %v2314_v56 = vadd.f32 %v2218_v55, %v2023_v48  ;;  %v1621_v62 = vmul.f32 %v4945_v28, %v1524_v12  ;;  %v1911_v39 = vmul.f32 %v4947_v29, %v1814_v41  ;;  %v1267_v14 = vld [vmem:[#allocation6 + $0xb88] sm:$0xff]  ;;  %v1557_v31 = vld [vmem:[#allocation6 + $0xe80] sm:$0xff] }
 0x1f0   :  { %v1134_v47 = vadd.f32 %v1038_v54, %v843_v45  ;;  %v2315_v63 = vadd.f32 %v2219_v5, %v2024_v33  ;;  %v1135_v2 = vadd.f32 %v1039_v27, %v844_v51  ;;  %v1912_v0 = vmul.f32 %v4947_v29, %v1815_v24  ;;  %v2397_v5 = vld [vmem:[#allocation6 + $0x1678] sm:$0xff]  ;;  %v1558_v34 = vld [vmem:[#allocation6 + $0xe88] sm:$0xff]  ;;  %v1848_v26 = vld [vmem:[#allocation6 + $0x1180] sm:$0xff] }
 0x1f1   :  { %v2202_v49 = vmul.f32 %v4954_v42, %v2105_v32  ;;  %v2605_v4 = vadd.f32 %v2509_v13, %v2314_v56  ;;  %v2203_v55 = vmul.f32 %v4954_v42, %v2106_v58  ;;  %v2493_v61 = vmul.f32 %v4957_v43, %v2396_v30  ;;  %3626 = vmatmul.mubr.f32.vlgmr.msra.gmra.mrb[0].mxu0 %v3549_v57  ;;  %v1849_v41 = vld [vmem:[#allocation6 + $0x1188] sm:$0xff]  ;;  %v2139_v24 = vld [vmem:[#allocation6 + $0x1480] sm:$0xff] }
 0x1f2   :  { %v1425_v59 = vadd.f32 %v1329_v46, %v1134_v47  ;;  %v2606_v1 = vadd.f32 %v2510_v37, %v2315_v63  ;;  %v1426_v3 = vadd.f32 %v1330_v53, %v1135_v2  ;;  %v490_v19 = vmul.f32 %v4928_v6, %v393_v52  ;;  %v2140_v32 = vld [vmem:[#allocation6 + $0x1488] sm:$0xff]  ;;  %v2430_v33 = vld [vmem:[#allocation6 + $0x1780] sm:$0xff] }
 0x1f3   :  { %v491_v22 = vmul.f32 %v4928_v6, %v394_v38  ;;  %v781_v13 = vmul.f32 %v4932_v11, %v684_v60  ;;  %v782_v8 = vmul.f32 %v4932_v11, %v685_v40  ;;  %v1072_v18 = vmul.f32 %v4936_v16, %v975_v50  ;;  %v377_v30 = vld [vmem:[#allocation6 + $0x200] sm:$0xff]  ;;  %v378_v57 = vld [vmem:[#allocation6 + $0x208] sm:$0xff]  ;;  %v280_v50 = vld [vmem:[#allocation15 + $0x200] sm:$0xff] }
 0x1f4   :  { %v1716_v25 = vadd.f32 %v1620_v44, %v1425_v59  ;;  %v4224_v21 = vpack.c.bf16 %v2606_v1, %v2605_v4  ;;  %v1717_v23 = vadd.f32 %v1621_v62, %v1426_v3  ;;  %v586_v36 = vadd.f32 %v490_v19, %v296_v9  ;;  %v668_v52 = vld [vmem:[#allocation6 + $0x500] sm:$0xff]  ;;  %v669_v38 = vld [vmem:[#allocation6 + $0x508] sm:$0xff] }
 0x1f5   :  { %v587_v54 = vadd.f32 %v491_v22, %v297_v7  ;;  %v2494_v15 = vmul.f32 %v4957_v43, %v2397_v5  ;;  %v1073_v27 = vmul.f32 %v4936_v16, %v976_v10  ;;  %v1363_v12 = vmul.f32 %v4938_v17, %v1266_v20  ;;  %v959_v63 = vld [vmem:[#allocation6 + $0x800] sm:$0xff]  ;;  %v2431_v60 = vld [vmem:[#allocation6 + $0x1788] sm:$0xff] }
 0x1f6   :  { %v2007_v35 = vadd.f32 %v1911_v39, %v1716_v25  ;;  %4225 = vmatprep.subr.bf16.mxu1 %v4224_v21  ;;  %v2008_v48 = vadd.f32 %v1912_v0, %v1717_v23  ;;  %v877_v37 = vadd.f32 %v781_v13, %v586_v36  ;;  %v1364_v46 = vmul.f32 %v4938_v17, %v1267_v14  ;;  %v960_v1 = vld [vmem:[#allocation6 + $0x808] sm:$0xff]  ;;  %v1250_v3 = vld [vmem:[#allocation6 + $0xb00] sm:$0xff] }
 0x1f7   :  { %v878_v45 = vadd.f32 %v782_v8, %v587_v54  ;;  %v1654_v53 = vmul.f32 %v4945_v28, %v1557_v31  ;;  %v1655_v44 = vmul.f32 %v4945_v28, %v1558_v34  ;;  %v1945_v58 = vmul.f32 %v4947_v29, %v1848_v26  ;;  %v1251_v10 = vld [vmem:[#allocation6 + $0xb08] sm:$0xff]  ;;  %v1832_v21 = vld [vmem:[#allocation6 + $0x1100] sm:$0xff] }
 0x1f8   :  { %v2298_v51 = vadd.f32 %v2202_v49, %v2007_v35  ;;  %v2299_v56 = vadd.f32 %v2203_v55, %v2008_v48  ;;  %v1168_v47 = vadd.f32 %v1072_v18, %v877_v37  ;;  %v1946_v39 = vmul.f32 %v4947_v29, %v1849_v41  ;;  %v281_v55 = vld [vmem:[#allocation15 + $0x208] sm:$0xff]  ;;  %v1542_v14 = vld [vmem:[#allocation6 + $0xe08] sm:$0xff]  ;;  %v3551_v37 = vld [vmem:[%s6080_s13 + $0x10] sm:$0xff] }
 0x1f9   :  { %v1169_v62 = vadd.f32 %v1073_v27, %v878_v45  ;;  %v2236_v0 = vmul.f32 %v4954_v42, %v2139_v24  ;;  %v2237_v49 = vmul.f32 %v4954_v42, %v2140_v32  ;;  %v2527_v40 = vmul.f32 %v4957_v43, %v2430_v33  ;;  %v1541_v18 = vld [vmem:[#allocation6 + $0xe00] sm:$0xff]  ;;  %v1833_v34 = vld [vmem:[#allocation6 + $0x1108] sm:$0xff]  ;;  %v395_v33 = vld [vmem:[#allocation6 + $0x290] sm:$0xff] }
 0x1fa   :  { %v2589_v2 = vadd.f32 %v2493_v61, %v2298_v51  ;;  %v2590_v4 = vadd.f32 %v2494_v15, %v2299_v56  ;;  %v1459_v59 = vadd.f32 %v1363_v12, %v1168_v47  ;;  %v474_v7 = vmul.f32 %v4928_v6, %v377_v30  ;;  %v2123_v26 = vld [vmem:[#allocation6 + $0x1400] sm:$0xff]  ;;  %v2124_v41 = vld [vmem:[#allocation6 + $0x1408] sm:$0xff]  ;;  %v396_v30 = vld [vmem:[#allocation6 + $0x298] sm:$0xff] }
 0x1fb   :  { %v1460_v9 = vadd.f32 %v1364_v46, %v1169_v62  ;;  %v475_v5 = vmul.f32 %v4928_v6, %v378_v57  ;;  %v765_v61 = vmul.f32 %v4932_v11, %v668_v52  ;;  %v766_v19 = vmul.f32 %v4932_v11, %v669_v38  ;;  %v2414_v48 = vld [vmem:[#allocation6 + $0x1700] sm:$0xff]  ;;  %v686_v57 = vld [vmem:[#allocation6 + $0x590] sm:$0xff]  ;;  %v687_v56 = vld [vmem:[#allocation6 + $0x598] sm:$0xff] }
 0x1fc   :  { %v1056_v22 = vmul.f32 %v4936_v16, %v959_v63  ;;  %v4226_v20 = vpack.c.bf16 %v2590_v4, %v2589_v2  ;;  %v1750_v25 = vadd.f32 %v1654_v53, %v1459_v59  ;;  %v570_v8 = vadd.f32 %v474_v7, %v280_v50  ;;  %v298_v38 = vld [vmem:[#allocation15 + $0x290] sm:$0xff]  ;;  %v977_v63 = vld [vmem:[#allocation6 + $0x890] sm:$0xff]  ;;  %v978_v59 = vld [vmem:[#allocation6 + $0x898] sm:$0xff] }
 0x1fd   :  { %v1751_v13 = vadd.f32 %v1655_v44, %v1460_v9  ;;  %v2528_v23 = vmul.f32 %v4957_v43, %v2431_v60  ;;  %v571_v36 = vadd.f32 %v475_v5, %v281_v55  ;;  %v1057_v54 = vmul.f32 %v4936_v16, %v960_v1  ;;  %v299_v50 = vld [vmem:[#allocation15 + $0x298] sm:$0xff]  ;;  %v1269_v5 = vld [vmem:[#allocation6 + $0xb98] sm:$0xff] }
 0x1fe   :  { %v1347_v31 = vmul.f32 %v4938_v17, %v1250_v3  ;;  %4227 = vmatpush3.bf16.msra.mxu1 %v4226_v20  ;;  %v2041_v35 = vadd.f32 %v1945_v58, %v1750_v25  ;;  %v861_v27 = vadd.f32 %v765_v61, %v570_v8  ;;  %v1348_v12 = vmul.f32 %v4938_v17, %v1251_v10  ;;  %v1268_v3 = vld [vmem:[#allocation6 + $0xb90] sm:$0xff]  ;;  %v1560_v20 = vld [vmem:[#allocation6 + $0xe98] sm:$0xff] }
 0x1ff   :  { %v2042_v15 = vadd.f32 %v1946_v39, %v1751_v13  ;;  %v862_v45 = vadd.f32 %v766_v19, %v571_v36  ;;  %v1638_v46 = vmul.f32 %v4945_v28, %v1541_v18  ;;  %v1639_v24 = vmul.f32 %v4945_v28, %v1542_v14  ;;  %v1559_v10 = vld [vmem:[#allocation6 + $0xe90] sm:$0xff] }
 0x200   :  { %v1929_v32 = vmul.f32 %v4947_v29, %v1832_v21  ;;  %v2332_v51 = vadd.f32 %v2236_v0, %v2041_v35  ;;  %v1152_v44 = vadd.f32 %v1056_v22, %v861_v27  ;;  %v1930_v58 = vmul.f32 %v4947_v29, %v1833_v34  ;;  %v1850_v14 = vld [vmem:[#allocation6 + $0x1190] sm:$0xff]  ;;  %v1851_v21 = vld [vmem:[#allocation6 + $0x1198] sm:$0xff]  ;;  %v3554_v35 = vld [vmem:[%s6080_s13 + $0x28] sm:$0xff] }
 0x201   :  { %v2333_v53 = vadd.f32 %v2237_v49, %v2042_v15  ;;  %v1153_v47 = vadd.f32 %v1057_v54, %v862_v45  ;;  %v2220_v62 = vmul.f32 %v4954_v42, %v2123_v26  ;;  %v2221_v39 = vmul.f32 %v4954_v42, %v2124_v41  ;;  %3696 = vmatmul.mubr.f32.vlgmr.msra.gmra.mrb[0].mxu1 %v3551_v37  ;;  %v2415_v49 = vld [vmem:[#allocation6 + $0x1708] sm:$0xff]  ;;  %v2141_v34 = vld [vmem:[#allocation6 + $0x1490] sm:$0xff]  ;;  %v2142_v26 = vld [vmem:[#allocation6 + $0x1498] sm:$0xff] }
 0x202   :  { %v2511_v52 = vmul.f32 %v4957_v43, %v2414_v48  ;;  %v2623_v2 = vadd.f32 %v2527_v40, %v2332_v51  ;;  %v1443_v0 = vadd.f32 %v1347_v31, %v1152_v44  ;;  %v492_v4 = vmul.f32 %v4928_v6, %v395_v33  ;;  %v2432_v48 = vld [vmem:[#allocation6 + $0x1790] sm:$0xff]  ;;  %3765 = vmatprep.mubr.f32.mxu0 %v3554_v35  ;;  %v380_v33 = vld [vmem:[#allocation6 + $0x218] sm:$0xff] }
 0x203   :  { %v2624_v60 = vadd.f32 %v2528_v23, %v2333_v53  ;;  %v1444_v9 = vadd.f32 %v1348_v12, %v1153_v47  ;;  %v493_v55 = vmul.f32 %v4928_v6, %v396_v30  ;;  %v783_v7 = vmul.f32 %v4932_v11, %v686_v57  ;;  %v379_v37 = vld [vmem:[#allocation6 + $0x210] sm:$0xff]  ;;  %v282_v57 = vld [vmem:[#allocation15 + $0x210] sm:$0xff] }
 0x204   :  { %v784_v1 = vmul.f32 %v4932_v11, %v687_v56  ;;  %v1734_v19 = vadd.f32 %v1638_v46, %v1443_v0  ;;  %v588_v22 = vadd.f32 %v492_v4, %v298_v38  ;;  %v1074_v40 = vmul.f32 %v4936_v16, %v977_v63  ;;  %v670_v51 = vld [vmem:[#allocation6 + $0x510] sm:$0xff]  ;;  %v671_v56 = vld [vmem:[#allocation6 + $0x518] sm:$0xff] }
 0x205   :  { %v4228_v61 = vpack.c.bf16 %v2624_v60, %v2623_v2  ;;  %v1735_v25 = vadd.f32 %v1639_v24, %v1444_v9  ;;  %v2512_v13 = vmul.f32 %v4957_v43, %v2415_v49  ;;  %v589_v8 = vadd.f32 %v493_v55, %v299_v50  ;;  %v961_v47 = vld [vmem:[#allocation6 + $0x810] sm:$0xff]  ;;  %v962_v0 = vld [vmem:[#allocation6 + $0x818] sm:$0xff] }
 0x206   :  { %v1075_v18 = vmul.f32 %v4936_v16, %v978_v59  ;;  %v2025_v23 = vadd.f32 %v1929_v32, %v1734_v19  ;;  %v879_v36 = vadd.f32 %v783_v7, %v588_v22  ;;  %v1365_v54 = vmul.f32 %v4938_v17, %v1268_v3  ;;  %v283_v2 = vld [vmem:[#allocation15 + $0x218] sm:$0xff]  ;;  %v2433_v4 = vld [vmem:[#allocation6 + $0x1798] sm:$0xff] }
 0x207   :  { %4229 = vmatprep.subr.bf16.mxu0 %v4228_v61  ;;  %v1366_v31 = vmul.f32 %v4938_v17, %v1269_v5  ;;  %v2026_v15 = vadd.f32 %v1930_v58, %v1735_v25  ;;  %v880_v27 = vadd.f32 %v784_v1, %v589_v8  ;;  %v1656_v12 = vmul.f32 %v4945_v28, %v1559_v10  ;;  %v1252_v9 = vld [vmem:[#allocation6 + $0xb10] sm:$0xff]  ;;  %v1253_v3 = vld [vmem:[#allocation6 + $0xb18] sm:$0xff] }
 0x208   :  { %v1657_v41 = vmul.f32 %v4945_v28, %v1560_v20  ;;  %v2316_v45 = vadd.f32 %v2220_v62, %v2025_v23  ;;  %v1170_v46 = vadd.f32 %v1074_v40, %v879_v36  ;;  %v1947_v24 = vmul.f32 %v4947_v29, %v1850_v14  ;;  %v1543_v5 = vld [vmem:[#allocation6 + $0xe10] sm:$0xff]  ;;  %v1544_v10 = vld [vmem:[#allocation6 + $0xe18] sm:$0xff] }
 0x209   :  { %v1948_v32 = vmul.f32 %v4947_v29, %v1851_v21  ;;  %v2317_v53 = vadd.f32 %v2221_v39, %v2026_v15  ;;  %v1171_v44 = vadd.f32 %v1075_v18, %v880_v27  ;;  %v2238_v58 = vmul.f32 %v4954_v42, %v2141_v34  ;;  %v1834_v20 = vld [vmem:[#allocation6 + $0x1110] sm:$0xff]  ;;  %v1835_v14 = vld [vmem:[#allocation6 + $0x1118] sm:$0xff] }
 0x20a   :  { %v2239_v30 = vmul.f32 %v4954_v42, %v2142_v26  ;;  %v2607_v38 = vadd.f32 %v2511_v52, %v2316_v45  ;;  %v1461_v63 = vadd.f32 %v1365_v54, %v1170_v46  ;;  %v2529_v62 = vmul.f32 %v4957_v43, %v2432_v48  ;;  %v2125_v21 = vld [vmem:[#allocation6 + $0x1410] sm:$0xff]  ;;  %v2126_v34 = vld [vmem:[#allocation6 + $0x1418] sm:$0xff]  ;;  %v398_v48 = vld [vmem:[#allocation6 + $0x2a8] sm:$0xff] }
 0x20b   :  { %v476_v60 = vmul.f32 %v4928_v6, %v379_v37  ;;  %v2608_v49 = vadd.f32 %v2512_v13, %v2317_v53  ;;  %v1462_v50 = vadd.f32 %v1366_v31, %v1171_v44  ;;  %v477_v39 = vmul.f32 %v4928_v6, %v380_v33  ;;  %v2416_v26 = vld [vmem:[#allocation6 + $0x1710] sm:$0xff]  ;;  %v689_v33 = vld [vmem:[#allocation6 + $0x5a8] sm:$0xff] }
 0x20c   :  { %v767_v59 = vmul.f32 %v4932_v11, %v670_v51  ;;  %v1752_v55 = vadd.f32 %v1656_v12, %v1461_v63  ;;  %v768_v1 = vmul.f32 %v4932_v11, %v671_v56  ;;  %v1058_v52 = vmul.f32 %v4936_v16, %v961_v47  ;;  %v979_v51 = vld [vmem:[#allocation6 + $0x8a0] sm:$0xff]  ;;  %v300_v56 = vld [vmem:[#allocation15 + $0x2a0] sm:$0xff] }
 0x20d   :  { %v572_v7 = vadd.f32 %v476_v60, %v282_v57  ;;  %v4230_v61 = vpack.c.bf16 %v2608_v49, %v2607_v38  ;;  %v1753_v19 = vadd.f32 %v1657_v41, %v1462_v50  ;;  %v573_v22 = vadd.f32 %v477_v39, %v283_v2  ;;  %v397_v41 = vld [vmem:[#allocation6 + $0x2a0] sm:$0xff]  ;;  %v2417_v2 = vld [vmem:[#allocation6 + $0x1718] sm:$0xff] }
 0x20e   :  { %v1059_v40 = vmul.f32 %v4936_v16, %v962_v0  ;;  %v2043_v25 = vadd.f32 %v1947_v24, %v1752_v55  ;;  %v2530_v13 = vmul.f32 %v4957_v43, %v2433_v4  ;;  %v1349_v18 = vmul.f32 %v4938_v17, %v1252_v9  ;;  %v301_v47 = vld [vmem:[#allocation15 + $0x2a8] sm:$0xff]  ;;  %v980_v0 = vld [vmem:[#allocation6 + $0x8a8] sm:$0xff] }
 0x20f   :  { %v863_v8 = vadd.f32 %v767_v59, %v572_v7  ;;  %4231 = vmatpush3.bf16.msra.mxu0 %v4230_v61  ;;  %v2044_v23 = vadd.f32 %v1948_v32, %v1753_v19  ;;  %v864_v36 = vadd.f32 %v768_v1, %v573_v22  ;;  %v1350_v54 = vmul.f32 %v4938_v17, %v1253_v3  ;;  %v688_v32 = vld [vmem:[#allocation6 + $0x5a0] sm:$0xff]  ;;  %v1271_v59 = vld [vmem:[#allocation6 + $0xba8] sm:$0xff] }
 0x210   :  { %v1640_v31 = vmul.f32 %v4945_v28, %v1543_v5  ;;  %v2334_v35 = vadd.f32 %v2238_v58, %v2043_v25  ;;  %v1641_v27 = vmul.f32 %v4945_v28, %v1544_v10  ;;  %v1931_v12 = vmul.f32 %v4947_v29, %v1834_v20  ;;  %v1270_v49 = vld [vmem:[#allocation6 + $0xba0] sm:$0xff]  ;;  %v1562_v3 = vld [vmem:[#allocation6 + $0xea8] sm:$0xff] }
 0x211   :  { %v1154_v15 = vadd.f32 %v1058_v52, %v863_v8  ;;  %v2335_v37 = vadd.f32 %v2239_v30, %v2044_v23  ;;  %v1155_v45 = vadd.f32 %v1059_v40, %v864_v36  ;;  %v1932_v46 = vmul.f32 %v4947_v29, %v1835_v14  ;;  %v1561_v52 = vld [vmem:[#allocation6 + $0xea0] sm:$0xff]  ;;  %v1853_v10 = vld [vmem:[#allocation6 + $0x11a8] sm:$0xff] }
 0x212   :  { %v2222_v24 = vmul.f32 %v4954_v42, %v2125_v21  ;;  %v2625_v53 = vadd.f32 %v2529_v62, %v2334_v35  ;;  %v2223_v58 = vmul.f32 %v4954_v42, %v2126_v34  ;;  %v2513_v57 = vmul.f32 %v4957_v43, %v2416_v26  ;;  %v1852_v5 = vld [vmem:[#allocation6 + $0x11a0] sm:$0xff]  ;;  %v2144_v14 = vld [vmem:[#allocation6 + $0x14a8] sm:$0xff] }
 0x213   :  { %v1445_v44 = vadd.f32 %v1349_v18, %v1154_v15  ;;  %v2626_v38 = vadd.f32 %v2530_v13, %v2335_v37  ;;  %v1446_v63 = vadd.f32 %v1350_v54, %v1155_v45  ;;  %v494_v30 = vmul.f32 %v4928_v6, %v397_v41  ;;  %v2143_v18 = vld [vmem:[#allocation6 + $0x14a0] sm:$0xff]  ;;  %v382_v26 = vld [vmem:[#allocation6 + $0x228] sm:$0xff] }
 0x214   :  { %v495_v60 = vmul.f32 %v4928_v6, %v398_v48  ;;  %v785_v4 = vmul.f32 %v4932_v11, %v688_v32  ;;  %v786_v62 = vmul.f32 %v4932_v11, %v689_v33  ;;  %v1076_v39 = vmul.f32 %v4936_v16, %v979_v51  ;;  %v2434_v21 = vld [vmem:[#allocation6 + $0x17a0] sm:$0xff]  ;;  %v673_v48 = vld [vmem:[#allocation6 + $0x528] sm:$0xff]  ;;  %v284_v51 = vld [vmem:[#allocation15 + $0x220] sm:$0xff] }
 0x215   :  { %v1736_v50 = vadd.f32 %v1640_v31, %v1445_v44  ;;  %v4232_v9 = vpack.c.bf16 %v2626_v38, %v2625_v53  ;;  %v1737_v55 = vadd.f32 %v1641_v27, %v1446_v63  ;;  %v590_v7 = vadd.f32 %v494_v30, %v300_v56  ;;  %v381_v34 = vld [vmem:[#allocation6 + $0x220] sm:$0xff]  ;;  %v2435_v32 = vld [vmem:[#allocation6 + $0x17a8] sm:$0xff] }
 0x216   :  { %v591_v1 = vadd.f32 %v495_v60, %v301_v47  ;;  %v2514_v19 = vmul.f32 %v4957_v43, %v2417_v2  ;;  %v1077_v22 = vmul.f32 %v4936_v16, %v980_v0  ;;  %v1367_v40 = vmul.f32 %v4938_v17, %v1270_v49  ;;  %v672_v41 = vld [vmem:[#allocation6 + $0x520] sm:$0xff]  ;;  %v964_v38 = vld [vmem:[#allocation6 + $0x828] sm:$0xff] }
 0x217   :  { %v2027_v61 = vadd.f32 %v1931_v12, %v1736_v50  ;;  %4233 = vmatprep.subr.bf16.mxu0 %v4232_v9  ;;  %v2028_v20 = vadd.f32 %v1932_v46, %v1737_v55  ;;  %v881_v25 = vadd.f32 %v785_v4, %v590_v7  ;;  %v1368_v8 = vmul.f32 %v4938_v17, %v1271_v59  ;;  %v963_v37 = vld [vmem:[#allocation6 + $0x820] sm:$0xff]  ;;  %v1255_v0 = vld [vmem:[#allocation6 + $0xb28] sm:$0xff] }
 0x218   :  { %v882_v13 = vadd.f32 %v786_v62, %v591_v1  ;;  %v1658_v36 = vmul.f32 %v4945_v28, %v1561_v52  ;;  %v1659_v54 = vmul.f32 %v4945_v28, %v1562_v3  ;;  %v1949_v31 = vmul.f32 %v4947_v29, %v1852_v5  ;;  %v1254_v63 = vld [vmem:[#allocation6 + $0xb20] sm:$0xff]  ;;  %v1546_v59 = vld [vmem:[#allocation6 + $0xe28] sm:$0xff] }
 0x219   :  { %v2318_v23 = vadd.f32 %v2222_v24, %v2027_v61  ;;  %v2319_v35 = vadd.f32 %v2223_v58, %v2028_v20  ;;  %v1172_v15 = vadd.f32 %v1076_v39, %v881_v25  ;;  %v1950_v12 = vmul.f32 %v4947_v29, %v1853_v10  ;;  %v285_v58 = vld [vmem:[#allocation15 + $0x228] sm:$0xff]  ;;  %v1837_v3 = vld [vmem:[#allocation6 + $0x1128] sm:$0xff] }
 0x21a   :  { %v1173_v27 = vadd.f32 %v1077_v22, %v882_v13  ;;  %v2240_v46 = vmul.f32 %v4954_v42, %v2143_v18  ;;  %v2241_v24 = vmul.f32 %v4954_v42, %v2144_v14  ;;  %v2531_v33 = vmul.f32 %v4957_v43, %v2434_v21  ;;  %v1545_v39 = vld [vmem:[#allocation6 + $0xe20] sm:$0xff]  ;;  %v2128_v10 = vld [vmem:[#allocation6 + $0x1428] sm:$0xff]  ;;  %v399_v14 = vld [vmem:[#allocation6 + $0x2b0] sm:$0xff] }
 0x21b   :  { %v2609_v45 = vadd.f32 %v2513_v57, %v2318_v23  ;;  %v2610_v53 = vadd.f32 %v2514_v19, %v2319_v35  ;;  %v1463_v44 = vadd.f32 %v1367_v40, %v1172_v15  ;;  %v478_v47 = vmul.f32 %v4928_v6, %v381_v34  ;;  %v1836_v9 = vld [vmem:[#allocation6 + $0x1120] sm:$0xff]  ;;  %v690_v34 = vld [vmem:[#allocation6 + $0x5b0] sm:$0xff] }
 0x21c   :  { %v1464_v56 = vadd.f32 %v1368_v8, %v1173_v27  ;;  %v479_v2 = vmul.f32 %v4928_v6, %v382_v26  ;;  %v769_v57 = vmul.f32 %v4932_v11, %v672_v41  ;;  %v770_v30 = vmul.f32 %v4932_v11, %v673_v48  ;;  %v2127_v40 = vld [vmem:[#allocation6 + $0x1420] sm:$0xff]  ;;  %v691_v26 = vld [vmem:[#allocation6 + $0x5b8] sm:$0xff]  ;;  %v302_v41 = vld [vmem:[#allocation15 + $0x2b0] sm:$0xff] }
 0x21d   :  { %v1060_v60 = vmul.f32 %v4936_v16, %v963_v37  ;;  %v4234_v49 = vpack.c.bf16 %v2610_v53, %v2609_v45  ;;  %v1754_v50 = vadd.f32 %v1658_v36, %v1463_v44  ;;  %v574_v62 = vadd.f32 %v478_v47, %v284_v51  ;;  %v2418_v20 = vld [vmem:[#allocation6 + $0x1720] sm:$0xff]  ;;  %v981_v48 = vld [vmem:[#allocation6 + $0x8b0] sm:$0xff]  ;;  %v982_v53 = vld [vmem:[#allocation6 + $0x8b8] sm:$0xff] }
 0x21e   :  { %v1755_v4 = vadd.f32 %v1659_v54, %v1464_v56  ;;  %v2532_v55 = vmul.f32 %v4957_v43, %v2435_v32  ;;  %v575_v7 = vadd.f32 %v479_v2, %v285_v58  ;;  %v1061_v1 = vmul.f32 %v4936_v16, %v964_v38  ;;  %v1272_v38 = vld [vmem:[#allocation6 + $0xbb0] sm:$0xff] }
 0x21f   :  { %v1351_v52 = vmul.f32 %v4938_v17, %v1254_v63  ;;  %4235 = vmatpush3.bf16.msra.mxu0 %v4234_v49  ;;  %v2045_v5 = vadd.f32 %v1949_v31, %v1754_v50  ;;  %v865_v19 = vadd.f32 %v769_v57, %v574_v62  ;;  %v1352_v22 = vmul.f32 %v4938_v17, %v1255_v0  ;;  %v400_v31 = vld [vmem:[#allocation6 + $0x2b8] sm:$0xff] }
 0x220   :  { %v2046_v61 = vadd.f32 %v1950_v12, %v1755_v4  ;;  %v866_v25 = vadd.f32 %v770_v30, %v575_v7  ;;  %v1642_v13 = vmul.f32 %v4945_v28, %v1545_v39  ;;  %v1643_v8 = vmul.f32 %v4945_v28, %v1546_v59  ;;  %v1273_v63 = vld [vmem:[#allocation6 + $0xbb8] sm:$0xff]  ;;  %v1854_v39 = vld [vmem:[#allocation6 + $0x11b0] sm:$0xff] }
 0x221   :  { %v1933_v18 = vmul.f32 %v4947_v29, %v1836_v9  ;;  %v2336_v21 = vadd.f32 %v2240_v46, %v2045_v5  ;;  %v1156_v36 = vadd.f32 %v1060_v60, %v865_v19  ;;  %v1934_v54 = vmul.f32 %v4947_v29, %v1837_v3  ;;  %v2419_v46 = vld [vmem:[#allocation6 + $0x1728] sm:$0xff]  ;;  %v1563_v60 = vld [vmem:[#allocation6 + $0xeb0] sm:$0xff]  ;;  %v1564_v0 = vld [vmem:[#allocation6 + $0xeb8] sm:$0xff] }
 0x222   :  { %v2337_v23 = vadd.f32 %v2241_v24, %v2046_v61  ;;  %v1157_v35 = vadd.f32 %v1061_v1, %v866_v25  ;;  %v2224_v15 = vmul.f32 %v4954_v42, %v2127_v40  ;;  %v2225_v27 = vmul.f32 %v4954_v42, %v2128_v10  ;;  %v303_v24 = vld [vmem:[#allocation15 + $0x2b8] sm:$0xff]  ;;  %v1855_v59 = vld [vmem:[#allocation6 + $0x11b8] sm:$0xff] }
 0x223   :  { %v2515_v12 = vmul.f32 %v4957_v43, %v2418_v20  ;;  %v2627_v37 = vadd.f32 %v2531_v33, %v2336_v21  ;;  %v1447_v32 = vadd.f32 %v1351_v52, %v1156_v36  ;;  %v496_v51 = vmul.f32 %v4928_v6, %v399_v14  ;;  %v2145_v52 = vld [vmem:[#allocation6 + $0x14b0] sm:$0xff]  ;;  %v2146_v3 = vld [vmem:[#allocation6 + $0x14b8] sm:$0xff] }
 0x224   :  { %v2628_v45 = vadd.f32 %v2532_v55, %v2337_v23  ;;  %v1448_v44 = vadd.f32 %v1352_v22, %v1157_v35  ;;  %v497_v56 = vmul.f32 %v4928_v6, %v400_v31  ;;  %v787_v58 = vmul.f32 %v4932_v11, %v690_v34  ;;  %v2436_v40 = vld [vmem:[#allocation6 + $0x17b0] sm:$0xff]  ;;  %v286_v31 = vld [vmem:[#allocation15 + $0x230] sm:$0xff]  ;;  %v675_v34 = vld [vmem:[#allocation6 + $0x538] sm:$0xff] }
 0x225   :  { %v788_v47 = vmul.f32 %v4932_v11, %v691_v26  ;;  %v1738_v57 = vadd.f32 %v1642_v13, %v1447_v32  ;;  %v592_v30 = vadd.f32 %v496_v51, %v302_v41  ;;  %v1078_v33 = vmul.f32 %v4936_v16, %v981_v48  ;;  %v383_v10 = vld [vmem:[#allocation6 + $0x230] sm:$0xff] }
 0x226   :  { %v4236_v2 = vpack.c.bf16 %v2628_v45, %v2627_v37  ;;  %v1739_v49 = vadd.f32 %v1643_v8, %v1448_v44  ;;  %v2516_v50 = vmul.f32 %v4957_v43, %v2419_v46  ;;  %v593_v4 = vadd.f32 %v497_v56, %v303_v24  ;;  %v674_v14 = vld [vmem:[#allocation6 + $0x530] sm:$0xff]  ;;  %v966_v45 = vld [vmem:[#allocation6 + $0x838] sm:$0xff] }
 0x227   :  { %v1079_v62 = vmul.f32 %v4936_v16, %v982_v53  ;;  %v2029_v9 = vadd.f32 %v1933_v18, %v1738_v57  ;;  %v883_v55 = vadd.f32 %v787_v58, %v592_v30  ;;  %v1369_v7 = vmul.f32 %v4938_v17, %v1272_v38  ;;  %v384_v18 = vld [vmem:[#allocation6 + $0x238] sm:$0xff]  ;;  %v965_v26 = vld [vmem:[#allocation6 + $0x830] sm:$0xff] }
 0x228   :  { %4237 = vmatprep.subr.bf16.mxu0 %v4236_v2  ;;  %v1370_v1 = vmul.f32 %v4938_v17, %v1273_v63  ;;  %v2030_v5 = vadd.f32 %v1934_v54, %v1739_v49  ;;  %v884_v61 = vadd.f32 %v788_v47, %v593_v4  ;;  %v1660_v19 = vmul.f32 %v4945_v28, %v1563_v60  ;;  %v287_v48 = vld [vmem:[#allocation15 + $0x238] sm:$0xff]  ;;  %v2437_v24 = vld [vmem:[#allocation6 + $0x17b8] sm:$0xff] }
 0x229   :  { %v1661_v22 = vmul.f32 %v4945_v28, %v1564_v0  ;;  %v2320_v20 = vadd.f32 %v2224_v15, %v2029_v9  ;;  %v1174_v25 = vadd.f32 %v1078_v33, %v883_v55  ;;  %v1951_v13 = vmul.f32 %v4947_v29, %v1854_v39  ;;  %v1256_v53 = vld [vmem:[#allocation6 + $0xb30] sm:$0xff]  ;;  %v1257_v47 = vld [vmem:[#allocation6 + $0xb38] sm:$0xff] }
 0x22a   :  { %v1952_v8 = vmul.f32 %v4947_v29, %v1855_v59  ;;  %v2321_v21 = vadd.f32 %v2225_v27, %v2030_v5  ;;  %v1175_v23 = vadd.f32 %v1079_v62, %v884_v61  ;;  %v2242_v36 = vmul.f32 %v4954_v42, %v2145_v52  ;;  %v1547_v38 = vld [vmem:[#allocation6 + $0xe30] sm:$0xff]  ;;  %v1548_v33 = vld [vmem:[#allocation6 + $0xe38] sm:$0xff] }
 0x22b   :  { %v2243_v54 = vmul.f32 %v4954_v42, %v2146_v3  ;;  %v2611_v35 = vadd.f32 %v2515_v12, %v2320_v20  ;;  %v1465_v41 = vadd.f32 %v1369_v7, %v1174_v25  ;;  %v2533_v15 = vmul.f32 %v4957_v43, %v2436_v40  ;;  %v1838_v60 = vld [vmem:[#allocation6 + $0x1130] sm:$0xff]  ;;  %v1839_v62 = vld [vmem:[#allocation6 + $0x1138] sm:$0xff]  ;;  %v402_v40 = vld [vmem:[#allocation6 + $0x2c8] sm:$0xff] }
 0x22c   :  { %v480_v37 = vmul.f32 %v4928_v6, %v383_v10  ;;  %v2612_v32 = vadd.f32 %v2516_v50, %v2321_v21  ;;  %v1466_v46 = vadd.f32 %v1370_v1, %v1175_v23  ;;  %v481_v27 = vmul.f32 %v4928_v6, %v384_v18  ;;  %v2129_v39 = vld [vmem:[#allocation6 + $0x1430] sm:$0xff]  ;;  %v2130_v1 = vld [vmem:[#allocation6 + $0x1438] sm:$0xff]  ;;  %v693_v18 = vld [vmem:[#allocation6 + $0x5c8] sm:$0xff] }
 0x22d   :  { %v771_v51 = vmul.f32 %v4932_v11, %v674_v14  ;;  %v1756_v44 = vadd.f32 %v1660_v19, %v1465_v41  ;;  %v772_v58 = vmul.f32 %v4932_v11, %v675_v34  ;;  %v1062_v12 = vmul.f32 %v4936_v16, %v965_v26  ;;  %v2420_v52 = vld [vmem:[#allocation6 + $0x1730] sm:$0xff]  ;;  %v983_v14 = vld [vmem:[#allocation6 + $0x8c0] sm:$0xff]  ;;  %v304_v34 = vld [vmem:[#allocation15 + $0x2c0] sm:$0xff] }
 0x22e   :  { %v576_v56 = vadd.f32 %v480_v37, %v286_v31  ;;  %v4238_v63 = vpack.c.bf16 %v2612_v32, %v2611_v35  ;;  %v1757_v2 = vadd.f32 %v1661_v22, %v1466_v46  ;;  %v577_v57 = vadd.f32 %v481_v27, %v287_v48  ;;  %v401_v22 = vld [vmem:[#allocation6 + $0x2c0] sm:$0xff]  ;;  %v2421_v48 = vld [vmem:[#allocation6 + $0x1738] sm:$0xff] }
 0x22f   :  { %v1063_v30 = vmul.f32 %v4936_v16, %v966_v45  ;;  %v2047_v0 = vadd.f32 %v1951_v13, %v1756_v44  ;;  %v2534_v49 = vmul.f32 %v4957_v43, %v2437_v24  ;;  %v1353_v4 = vmul.f32 %v4938_v17, %v1256_v53  ;;  %v305_v26 = vld [vmem:[#allocation15 + $0x2c8] sm:$0xff]  ;;  %v984_v45 = vld [vmem:[#allocation6 + $0x8c8] sm:$0xff] }
 0x230   :  { %v867_v50 = vadd.f32 %v771_v51, %v576_v56  ;;  %4239 = vmatpush3.bf16.msra.mxu0 %v4238_v63  ;;  %v2048_v59 = vadd.f32 %v1952_v8, %v1757_v2  ;;  %v868_v9 = vadd.f32 %v772_v58, %v577_v57  ;;  %v1354_v55 = vmul.f32 %v4938_v17, %v1257_v47  ;;  %v692_v8 = vld [vmem:[#allocation6 + $0x5c0] sm:$0xff]  ;;  %v1275_v51 = vld [vmem:[#allocation6 + $0xbc8] sm:$0xff] }
 0x231   :  { %v1644_v7 = vmul.f32 %v4945_v28, %v1547_v38  ;;  %v2338_v3 = vadd.f32 %v2242_v36, %v2047_v0  ;;  %v1645_v61 = vmul.f32 %v4945_v28, %v1548_v33  ;;  %v1935_v19 = vmul.f32 %v4947_v29, %v1838_v60  ;;  %v1274_v32 = vld [vmem:[#allocation6 + $0xbc0] sm:$0xff]  ;;  %v1566_v47 = vld [vmem:[#allocation6 + $0xec8] sm:$0xff] }
 0x232   :  { %v1158_v5 = vadd.f32 %v1062_v12, %v867_v50  ;;  %v2339_v10 = vadd.f32 %v2243_v54, %v2048_v59  ;;  %v1159_v20 = vadd.f32 %v1063_v30, %v868_v9  ;;  %v1936_v25 = vmul.f32 %v4947_v29, %v1839_v62  ;;  %v1565_v12 = vld [vmem:[#allocation6 + $0xec0] sm:$0xff]  ;;  %v1857_v33 = vld [vmem:[#allocation6 + $0x11c8] sm:$0xff] }
 0x233   :  { %v2226_v13 = vmul.f32 %v4954_v42, %v2129_v39  ;;  %v2629_v21 = vadd.f32 %v2533_v15, %v2338_v3  ;;  %v2227_v36 = vmul.f32 %v4954_v42, %v2130_v1  ;;  %v2517_v31 = vmul.f32 %v4957_v43, %v2420_v52  ;;  %v1856_v38 = vld [vmem:[#allocation6 + $0x11c0] sm:$0xff]  ;;  %v2148_v62 = vld [vmem:[#allocation6 + $0x14c8] sm:$0xff] }
 0x234   :  { %v1449_v23 = vadd.f32 %v1353_v4, %v1158_v5  ;;  %v2630_v35 = vadd.f32 %v2534_v49, %v2339_v10  ;;  %v1450_v41 = vadd.f32 %v1354_v55, %v1159_v20  ;;  %v498_v54 = vmul.f32 %v4928_v6, %v401_v22  ;;  %v2147_v4 = vld [vmem:[#allocation6 + $0x14c0] sm:$0xff]  ;;  %v386_v52 = vld [vmem:[#allocation6 + $0x248] sm:$0xff] }
 0x235   :  { %v499_v37 = vmul.f32 %v4928_v6, %v402_v40  ;;  %v789_v24 = vmul.f32 %v4932_v11, %v692_v8  ;;  %v790_v15 = vmul.f32 %v4932_v11, %v693_v18  ;;  %v1080_v27 = vmul.f32 %v4936_v16, %v983_v14  ;;  %v2438_v39 = vld [vmem:[#allocation6 + $0x17c0] sm:$0xff]  ;;  %v677_v40 = vld [vmem:[#allocation6 + $0x548] sm:$0xff]  ;;  %v288_v14 = vld [vmem:[#allocation15 + $0x240] sm:$0xff] }
 0x236   :  { %v1740_v46 = vadd.f32 %v1644_v7, %v1449_v23  ;;  %v4240_v53 = vpack.c.bf16 %v2630_v35, %v2629_v21  ;;  %v1741_v44 = vadd.f32 %v1645_v61, %v1450_v41  ;;  %v594_v56 = vadd.f32 %v498_v54, %v304_v34  ;;  %v385_v1 = vld [vmem:[#allocation6 + $0x240] sm:$0xff]  ;;  %v2439_v8 = vld [vmem:[#allocation6 + $0x17c8] sm:$0xff] }
 0x237   :  { %v595_v58 = vadd.f32 %v499_v37, %v305_v26  ;;  %v2518_v2 = vmul.f32 %v4957_v43, %v2421_v48  ;;  %v1081_v57 = vmul.f32 %v4936_v16, %v984_v45  ;;  %v1371_v30 = vmul.f32 %v4938_v17, %v1274_v32  ;;  %v676_v22 = vld [vmem:[#allocation6 + $0x540] sm:$0xff]  ;;  %v968_v35 = vld [vmem:[#allocation6 + $0x848] sm:$0xff] }
 0x238   :  { %v2031_v63 = vadd.f32 %v1935_v19, %v1740_v46  ;;  %4241 = vmatprep.subr.bf16.mxu0 %v4240_v53  ;;  %v2032_v60 = vadd.f32 %v1936_v25, %v1741_v44  ;;  %v885_v0 = vadd.f32 %v789_v24, %v594_v56  ;;  %v1372_v50 = vmul.f32 %v4938_v17, %v1275_v51  ;;  %v967_v10 = vld [vmem:[#allocation6 + $0x840] sm:$0xff]  ;;  %v1259_v45 = vld [vmem:[#allocation6 + $0xb48] sm:$0xff] }
 0x239   :  { %v886_v49 = vadd.f32 %v790_v15, %v595_v58  ;;  %v1662_v9 = vmul.f32 %v4945_v28, %v1565_v12  ;;  %v1663_v55 = vmul.f32 %v4945_v28, %v1566_v47  ;;  %v1953_v7 = vmul.f32 %v4947_v29, %v1856_v38  ;;  %v1258_v41 = vld [vmem:[#allocation6 + $0xb40] sm:$0xff]  ;;  %v1550_v51 = vld [vmem:[#allocation6 + $0xe48] sm:$0xff] }
 0x23a   :  { %v2322_v59 = vadd.f32 %v2226_v13, %v2031_v63  ;;  %v2323_v3 = vadd.f32 %v2227_v36, %v2032_v60  ;;  %v1176_v5 = vadd.f32 %v1080_v27, %v885_v0  ;;  %v1954_v19 = vmul.f32 %v4947_v29, %v1857_v33  ;;  %v289_v36 = vld [vmem:[#allocation15 + $0x248] sm:$0xff]  ;;  %v1841_v47 = vld [vmem:[#allocation6 + $0x1148] sm:$0xff] }
 0x23b   :  { %v1177_v61 = vadd.f32 %v1081_v57, %v886_v49  ;;  %v2244_v25 = vmul.f32 %v4954_v42, %v2147_v4  ;;  %v2245_v13 = vmul.f32 %v4954_v42, %v2148_v62  ;;  %v2535_v18 = vmul.f32 %v4957_v43, %v2438_v39  ;;  %v1549_v27 = vld [vmem:[#allocation6 + $0xe40] sm:$0xff]  ;;  %v2132_v33 = vld [vmem:[#allocation6 + $0x1448] sm:$0xff]  ;;  %v403_v62 = vld [vmem:[#allocation6 + $0x2d0] sm:$0xff] }
 0x23c   :  { %v2613_v20 = vadd.f32 %v2517_v31, %v2322_v59  ;;  %v2614_v21 = vadd.f32 %v2518_v2, %v2323_v3  ;;  %v1467_v23 = vadd.f32 %v1371_v30, %v1176_v5  ;;  %v482_v26 = vmul.f32 %v4928_v6, %v385_v1  ;;  %v1840_v53 = vld [vmem:[#allocation6 + $0x1140] sm:$0xff]  ;;  %v694_v1 = vld [vmem:[#allocation6 + $0x5d0] sm:$0xff] }
 0x23d   :  { %v1468_v34 = vadd.f32 %v1372_v50, %v1177_v61  ;;  %v483_v48 = vmul.f32 %v4928_v6, %v386_v52  ;;  %v773_v31 = vmul.f32 %v4932_v11, %v676_v22  ;;  %v774_v54 = vmul.f32 %v4932_v11, %v677_v40  ;;  %v2131_v30 = vld [vmem:[#allocation6 + $0x1440] sm:$0xff]  ;;  %v695_v52 = vld [vmem:[#allocation6 + $0x5d8] sm:$0xff]  ;;  %v306_v22 = vld [vmem:[#allocation15 + $0x2d0] sm:$0xff] }
 0x23e   :  { %v1064_v37 = vmul.f32 %v4936_v16, %v967_v10  ;;  %v4242_v32 = vpack.c.bf16 %v2614_v21, %v2613_v20  ;;  %v1758_v46 = vadd.f32 %v1662_v9, %v1467_v23  ;;  %v578_v15 = vadd.f32 %v482_v26, %v288_v14  ;;  %v2422_v60 = vld [vmem:[#allocation6 + $0x1740] sm:$0xff]  ;;  %v985_v40 = vld [vmem:[#allocation6 + $0x8d0] sm:$0xff]  ;;  %v986_v21 = vld [vmem:[#allocation6 + $0x8d8] sm:$0xff] }
 0x23f   :  { %v1759_v24 = vadd.f32 %v1663_v55, %v1468_v34  ;;  %v2536_v44 = vmul.f32 %v4957_v43, %v2439_v8  ;;  %v579_v56 = vadd.f32 %v483_v48, %v289_v36  ;;  %v1065_v58 = vmul.f32 %v4936_v16, %v968_v35  ;;  %v1276_v35 = vld [vmem:[#allocation6 + $0xbd0] sm:$0xff] }
 0x240   :  { %v1355_v12 = vmul.f32 %v4938_v17, %v1258_v41  ;;  %4243 = vmatpush3.bf16.msra.mxu0 %v4242_v32  ;;  %v2049_v38 = vadd.f32 %v1953_v7, %v1758_v46  ;;  %v869_v2 = vadd.f32 %v773_v31, %v578_v15  ;;  %v1356_v57 = vmul.f32 %v4938_v17, %v1259_v45  ;;  %v404_v7 = vld [vmem:[#allocation6 + $0x2d8] sm:$0xff] }
 0x241   :  { %v2050_v63 = vadd.f32 %v1954_v19, %v1759_v24  ;;  %v870_v0 = vadd.f32 %v774_v54, %v579_v56  ;;  %v1646_v49 = vmul.f32 %v4945_v28, %v1549_v27  ;;  %v1647_v50 = vmul.f32 %v4945_v28, %v1550_v51  ;;  %v1277_v41 = vld [vmem:[#allocation6 + $0xbd8] sm:$0xff]  ;;  %v1858_v27 = vld [vmem:[#allocation6 + $0x11d0] sm:$0xff] }
 0x242   :  { %v1937_v4 = vmul.f32 %v4947_v29, %v1840_v53  ;;  %v2340_v39 = vadd.f32 %v2244_v25, %v2049_v38  ;;  %v1160_v9 = vadd.f32 %v1064_v37, %v869_v2  ;;  %v1938_v55 = vmul.f32 %v4947_v29, %v1841_v47  ;;  %v2423_v25 = vld [vmem:[#allocation6 + $0x1748] sm:$0xff]  ;;  %v1567_v37 = vld [vmem:[#allocation6 + $0xed0] sm:$0xff]  ;;  %v1568_v45 = vld [vmem:[#allocation6 + $0xed8] sm:$0xff] }
 0x243   :  { %v2341_v59 = vadd.f32 %v2245_v13, %v2050_v63  ;;  %v1161_v3 = vadd.f32 %v1065_v58, %v870_v0  ;;  %v2228_v5 = vmul.f32 %v4954_v42, %v2131_v30  ;;  %v2229_v61 = vmul.f32 %v4954_v42, %v2132_v33  ;;  %v307_v13 = vld [vmem:[#allocation15 + $0x2d8] sm:$0xff]  ;;  %v1859_v51 = vld [vmem:[#allocation6 + $0x11d8] sm:$0xff] }
 0x244   :  { %v2519_v19 = vmul.f32 %v4957_v43, %v2422_v60  ;;  %v2631_v10 = vadd.f32 %v2535_v18, %v2340_v39  ;;  %v1451_v8 = vadd.f32 %v1355_v12, %v1160_v9  ;;  %v500_v14 = vmul.f32 %v4928_v6, %v403_v62  ;;  %v2149_v12 = vld [vmem:[#allocation6 + $0x14d0] sm:$0xff]  ;;  %v2150_v47 = vld [vmem:[#allocation6 + $0x14d8] sm:$0xff] }
 0x245   :  { %v2632_v20 = vadd.f32 %v2536_v44, %v2341_v59  ;;  %v1452_v23 = vadd.f32 %v1356_v57, %v1161_v3  ;;  %v501_v34 = vmul.f32 %v4928_v6, %v404_v7  ;;  %v791_v36 = vmul.f32 %v4932_v11, %v694_v1  ;;  %v2440_v30 = vld [vmem:[#allocation6 + $0x17d0] sm:$0xff]  ;;  %v290_v7 = vld [vmem:[#allocation15 + $0x250] sm:$0xff]  ;;  %v679_v1 = vld [vmem:[#allocation6 + $0x558] sm:$0xff] }
 0x246   :  { %v792_v26 = vmul.f32 %v4932_v11, %v695_v52  ;;  %v1742_v31 = vadd.f32 %v1646_v49, %v1451_v8  ;;  %v596_v54 = vadd.f32 %v500_v14, %v306_v22  ;;  %v1082_v18 = vmul.f32 %v4936_v16, %v985_v40  ;;  %v387_v33 = vld [vmem:[#allocation6 + $0x250] sm:$0xff] }
 0x247   :  { %v4244_v48 = vpack.c.bf16 %v2632_v20, %v2631_v10  ;;  %v1743_v32 = vadd.f32 %v1647_v50, %v1452_v23  ;;  %v2520_v46 = vmul.f32 %v4957_v43, %v2423_v25  ;;  %v597_v24 = vadd.f32 %v501_v34, %v307_v13  ;;  %v678_v62 = vld [vmem:[#allocation6 + $0x550] sm:$0xff]  ;;  %v970_v20 = vld [vmem:[#allocation6 + $0x858] sm:$0xff] }
 0x248   :  { %v1083_v15 = vmul.f32 %v4936_v16, %v986_v21  ;;  %v2033_v53 = vadd.f32 %v1937_v4, %v1742_v31  ;;  %v887_v44 = vadd.f32 %v791_v36, %v596_v54  ;;  %v1373_v56 = vmul.f32 %v4938_v17, %v1276_v35  ;;  %v388_v4 = vld [vmem:[#allocation6 + $0x258] sm:$0xff]  ;;  %v969_v52 = vld [vmem:[#allocation6 + $0x850] sm:$0xff] }
 0x249   :  { %4245 = vmatprep.subr.bf16.mxu0 %v4244_v48  ;;  %v1374_v58 = vmul.f32 %v4938_v17, %v1277_v41  ;;  %v2034_v38 = vadd.f32 %v1938_v55, %v1743_v32  ;;  %v888_v63 = vadd.f32 %v792_v26, %v597_v24  ;;  %v1664_v2 = vmul.f32 %v4945_v28, %v1567_v37  ;;  %v291_v40 = vld [vmem:[#allocation15 + $0x258] sm:$0xff]  ;;  %v2441_v13 = vld [vmem:[#allocation6 + $0x17d8] sm:$0xff] }
 0x24a   :  { %v1665_v57 = vmul.f32 %v4945_v28, %v1568_v45  ;;  %v2324_v60 = vadd.f32 %v2228_v5, %v2033_v53  ;;  %v1178_v0 = vadd.f32 %v1082_v18, %v887_v44  ;;  %v1955_v49 = vmul.f32 %v4947_v29, %v1858_v27  ;;  %v1260_v21 = vld [vmem:[#allocation6 + $0xb50] sm:$0xff]  ;;  %v1261_v26 = vld [vmem:[#allocation6 + $0xb58] sm:$0xff] }
 0x24b   :  { %v1956_v50 = vmul.f32 %v4947_v29, %v1859_v51  ;;  %v2325_v39 = vadd.f32 %v2229_v61, %v2034_v38  ;;  %v1179_v59 = vadd.f32 %v1083_v15, %v888_v63  ;;  %v2246_v9 = vmul.f32 %v4954_v42, %v2149_v12  ;;  %v1551_v35 = vld [vmem:[#allocation6 + $0xe50] sm:$0xff]  ;;  %v1552_v18 = vld [vmem:[#allocation6 + $0xe58] sm:$0xff] }
 0x24c   :  { %v2247_v55 = vmul.f32 %v4954_v42, %v2150_v47  ;;  %v2615_v3 = vadd.f32 %v2519_v19, %v2324_v60  ;;  %v1469_v22 = vadd.f32 %v1373_v56, %v1178_v0  ;;  %v2537_v5 = vmul.f32 %v4957_v43, %v2440_v30  ;;  %v1842_v37 = vld [vmem:[#allocation6 + $0x1150] sm:$0xff]  ;;  %v1843_v15 = vld [vmem:[#allocation6 + $0x1158] sm:$0xff]  ;;  %v406_v30 = vld [vmem:[#allocation6 + $0x2e8] sm:$0xff] }
 0x24d   :  { %v484_v10 = vmul.f32 %v4928_v6, %v387_v33  ;;  %v2616_v8 = vadd.f32 %v2520_v46, %v2325_v39  ;;  %v1470_v25 = vadd.f32 %v1374_v58, %v1179_v59  ;;  %v485_v61 = vmul.f32 %v4928_v6, %v388_v4  ;;  %v2133_v27 = vld [vmem:[#allocation6 + $0x1450] sm:$0xff]  ;;  %v2134_v58 = vld [vmem:[#allocation6 + $0x1458] sm:$0xff]  ;;  %v697_v4 = vld [vmem:[#allocation6 + $0x5e8] sm:$0xff] }
 0x24e   :  { %v775_v14 = vmul.f32 %v4932_v11, %v678_v62  ;;  %v1760_v23 = vadd.f32 %v1664_v2, %v1469_v22  ;;  %v776_v36 = vmul.f32 %v4932_v11, %v679_v1  ;;  %v1066_v19 = vmul.f32 %v4936_v16, %v969_v52  ;;  %v2424_v12 = vld [vmem:[#allocation6 + $0x1750] sm:$0xff]  ;;  %v987_v62 = vld [vmem:[#allocation6 + $0x8e0] sm:$0xff]  ;;  %v308_v1 = vld [vmem:[#allocation15 + $0x2e0] sm:$0xff] }
 0x24f   :  { %v580_v34 = vadd.f32 %v484_v10, %v290_v7  ;;  %v4246_v41 = vpack.c.bf16 %v2616_v8, %v2615_v3  ;;  %v1761_v48 = vadd.f32 %v1665_v57, %v1470_v25  ;;  %v581_v31 = vadd.f32 %v485_v61, %v291_v40  ;;  %v405_v57 = vld [vmem:[#allocation6 + $0x2e0] sm:$0xff]  ;;  %v2425_v40 = vld [vmem:[#allocation6 + $0x1758] sm:$0xff] }
 0x250   :  { %v1067_v54 = vmul.f32 %v4936_v16, %v970_v20  ;;  %v2051_v45 = vadd.f32 %v1955_v49, %v1760_v23  ;;  %v2538_v32 = vmul.f32 %v4957_v43, %v2441_v13  ;;  %v1357_v24 = vmul.f32 %v4938_v17, %v1260_v21  ;;  %v309_v52 = vld [vmem:[#allocation15 + $0x2e8] sm:$0xff]  ;;  %v988_v20 = vld [vmem:[#allocation6 + $0x8e8] sm:$0xff] }
 0x251   :  { %v871_v46 = vadd.f32 %v775_v14, %v580_v34  ;;  %4247 = vmatpush3.bf16.msra.mxu0 %v4246_v41  ;;  %v2052_v51 = vadd.f32 %v1956_v50, %v1761_v48  ;;  %v872_v53 = vadd.f32 %v776_v36, %v581_v31  ;;  %v1358_v44 = vmul.f32 %v4938_v17, %v1261_v26  ;;  %v696_v50 = vld [vmem:[#allocation6 + $0x5e0] sm:$0xff]  ;;  %v1279_v14 = vld [vmem:[#allocation6 + $0xbe8] sm:$0xff] }
 0x252   :  { %v1648_v56 = vmul.f32 %v4945_v28, %v1551_v35  ;;  %v2342_v47 = vadd.f32 %v2246_v9, %v2051_v45  ;;  %v1649_v63 = vmul.f32 %v4945_v28, %v1552_v18  ;;  %v1939_v2 = vmul.f32 %v4947_v29, %v1842_v37  ;;  %v1278_v8 = vld [vmem:[#allocation6 + $0xbe0] sm:$0xff]  ;;  %v1570_v26 = vld [vmem:[#allocation6 + $0xee8] sm:$0xff] }
 0x253   :  { %v1162_v38 = vadd.f32 %v1066_v19, %v871_v46  ;;  %v2343_v33 = vadd.f32 %v2247_v55, %v2052_v51  ;;  %v1163_v60 = vadd.f32 %v1067_v54, %v872_v53  ;;  %v1940_v0 = vmul.f32 %v4947_v29, %v1843_v15  ;;  %v1569_v19 = vld [vmem:[#allocation6 + $0xee0] sm:$0xff]  ;;  %v1861_v46 = vld [vmem:[#allocation6 + $0x11e8] sm:$0xff] }
 0x254   :  { %v2230_v49 = vmul.f32 %v4954_v42, %v2133_v27  ;;  %v2633_v39 = vadd.f32 %v2537_v5, %v2342_v47  ;;  %v2231_v9 = vmul.f32 %v4954_v42, %v2134_v58  ;;  %v2521_v7 = vmul.f32 %v4957_v43, %v2424_v12  ;;  %v1860_v54 = vld [vmem:[#allocation6 + $0x11e0] sm:$0xff]  ;;  %v2152_v15 = vld [vmem:[#allocation6 + $0x14e8] sm:$0xff] }
 0x255   :  { %v1453_v59 = vadd.f32 %v1357_v24, %v1162_v38  ;;  %v2634_v3 = vadd.f32 %v2538_v32, %v2343_v33  ;;  %v1454_v22 = vadd.f32 %v1358_v44, %v1163_v60  ;;  %v502_v55 = vmul.f32 %v4928_v6, %v405_v57  ;;  %v2151_v24 = vld [vmem:[#allocation6 + $0x14e0] sm:$0xff] }
 0x256   :  { %v503_v10 = vmul.f32 %v4928_v6, %v406_v30  ;;  %v793_v13 = vmul.f32 %v4932_v11, %v696_v50  ;;  %v794_v5 = vmul.f32 %v4932_v11, %v697_v4  ;;  %v1084_v61 = vmul.f32 %v4936_v16, %v987_v62  ;;  %v389_v44 = vld [vmem:[#allocation6 + $0x260] sm:$0xff]  ;;  %v292_v50 = vld [vmem:[#allocation15 + $0x260] sm:$0xff] }
 0x257   :  { %v1744_v25 = vadd.f32 %v1648_v56, %v1453_v59  ;;  %v4248_v21 = vpack.c.bf16 %v2634_v3, %v2633_v39  ;;  %v1745_v23 = vadd.f32 %v1649_v63, %v1454_v22  ;;  %v598_v34 = vadd.f32 %v502_v55, %v308_v1  ;;  %v390_v56 = vld [vmem:[#allocation6 + $0x268] sm:$0xff]  ;;  %v680_v63 = vld [vmem:[#allocation6 + $0x560] sm:$0xff] }
 0x258   :  { %v599_v36 = vadd.f32 %v503_v10, %v309_v52  ;;  %v2522_v41 = vmul.f32 %v4957_v43, %v2425_v40  ;;  %v1085_v48 = vmul.f32 %v4936_v16, %v988_v20  ;;  %v1375_v31 = vmul.f32 %v4938_v17, %v1278_v8  ;;  %v971_v57 = vld [vmem:[#allocation6 + $0x860] sm:$0xff]  ;;  %v2443_v59 = vld [vmem:[#allocation6 + $0x17e8] sm:$0xff] }
 0x259   :  { %v2035_v35 = vadd.f32 %v1939_v2, %v1744_v25  ;;  %4249 = vmatprep.subr.bf16.mxu0 %v4248_v21  ;;  %v2036_v18 = vadd.f32 %v1940_v0, %v1745_v23  ;;  %v889_v37 = vadd.f32 %v793_v13, %v598_v34  ;;  %v1376_v32 = vmul.f32 %v4938_v17, %v1279_v14  ;;  %v681_v2 = vld [vmem:[#allocation6 + $0x568] sm:$0xff]  ;;  %v1262_v55 = vld [vmem:[#allocation6 + $0xb60] sm:$0xff] }
 0x25a   :  { %v890_v45 = vadd.f32 %v794_v5, %v599_v36  ;;  %v1666_v51 = vmul.f32 %v4945_v28, %v1569_v19  ;;  %v1667_v53 = vmul.f32 %v4945_v28, %v1570_v26  ;;  %v1957_v38 = vmul.f32 %v4947_v29, %v1860_v54  ;;  %v972_v52 = vld [vmem:[#allocation6 + $0x868] sm:$0xff]  ;;  %v1553_v5 = vld [vmem:[#allocation6 + $0xe60] sm:$0xff] }
 0x25b   :  { %v2326_v27 = vadd.f32 %v2230_v49, %v2035_v35  ;;  %v2327_v58 = vadd.f32 %v2231_v9, %v2036_v18  ;;  %v1180_v12 = vadd.f32 %v1084_v61, %v889_v37  ;;  %v1958_v33 = vmul.f32 %v4947_v29, %v1861_v46  ;;  %v2442_v49 = vld [vmem:[#allocation6 + $0x17e0] sm:$0xff]  ;;  %v1263_v13 = vld [vmem:[#allocation6 + $0xb68] sm:$0xff]  ;;  %v407_v46 = vld [vmem:[#allocation6 + $0x2f0] sm:$0xff] }
 0x25c   :  { %v1181_v47 = vadd.f32 %v1085_v48, %v890_v45  ;;  %v2248_v60 = vmul.f32 %v4954_v42, %v2151_v24  ;;  %v2249_v0 = vmul.f32 %v4954_v42, %v2152_v15  ;;  %v293_v9 = vld [vmem:[#allocation15 + $0x268] sm:$0xff]  ;;  %v486_v1 = vmul.f32 %v4928_v6, %v389_v44  ;;  %v1554_v61 = vld [vmem:[#allocation6 + $0xe68] sm:$0xff]  ;;  %v698_v44 = vld [vmem:[#allocation6 + $0x5f0] sm:$0xff] }
 0x25d   :  { %v2617_v30 = vadd.f32 %v2521_v7, %v2326_v27  ;;  %v2618_v4 = vadd.f32 %v2522_v41, %v2327_v58  ;;  %v1471_v62 = vadd.f32 %v1375_v31, %v1180_v12  ;;  %v487_v3 = vmul.f32 %v4928_v6, %v390_v56  ;;  %v1844_v36 = vld [vmem:[#allocation6 + $0x1160] sm:$0xff]  ;;  %v1845_v48 = vld [vmem:[#allocation6 + $0x1168] sm:$0xff]  ;;  %v699_v56 = vld [vmem:[#allocation6 + $0x5f8] sm:$0xff] }
 0x25e   :  { %v1472_v39 = vadd.f32 %v1376_v32, %v1181_v47  ;;  %v777_v7 = vmul.f32 %v4932_v11, %v680_v63  ;;  %v778_v22 = vmul.f32 %v4932_v11, %v681_v2  ;;  %v1068_v40 = vmul.f32 %v4936_v16, %v971_v57  ;;  %v2135_v31 = vld [vmem:[#allocation6 + $0x1460] sm:$0xff]  ;;  %v2136_v54 = vld [vmem:[#allocation6 + $0x1468] sm:$0xff]  ;;  %v989_v2 = vld [vmem:[#allocation6 + $0x8f0] sm:$0xff] }
 0x25f   :  { %v4250_v10 = vpack.c.bf16 %v2618_v4, %v2617_v30  ;;  %v1762_v20 = vadd.f32 %v1666_v51, %v1471_v62  ;;  %v582_v25 = vadd.f32 %v486_v1, %v292_v50  ;;  %v2539_v14 = vmul.f32 %v4957_v43, %v2442_v49  ;;  %v310_v63 = vld [vmem:[#allocation15 + $0x2f0] sm:$0xff]  ;;  %v990_v50 = vld [vmem:[#allocation6 + $0x8f8] sm:$0xff]  ;;  %v1280_v1 = vld [vmem:[#allocation6 + $0xbf0] sm:$0xff] }
 0x260   :  { %v1763_v8 = vadd.f32 %v1667_v53, %v1472_v39  ;;  %v2540_v21 = vmul.f32 %v4957_v43, %v2443_v59  ;;  %v583_v23 = vadd.f32 %v487_v3, %v293_v9  ;;  %v1069_v34 = vmul.f32 %v4936_v16, %v972_v52  ;;  %v408_v53 = vld [vmem:[#allocation6 + $0x2f8] sm:$0xff]  ;;  %v2427_v62 = vld [vmem:[#allocation6 + $0x1768] sm:$0xff] }
 0x261   :  { %4251 = vmatpush3.bf16.msra.mxu0 %v4250_v10  ;;  %v2053_v19 = vadd.f32 %v1957_v38, %v1762_v20  ;;  %v873_v35 = vadd.f32 %v777_v7, %v582_v25  ;;  %v1359_v41 = vmul.f32 %v4938_v17, %v1262_v55  ;;  %v1360_v37 = vmul.f32 %v4938_v17, %v1263_v13  ;;  %v1571_v55 = vld [vmem:[#allocation6 + $0xef0] sm:$0xff]  ;;  %v1572_v13 = vld [vmem:[#allocation6 + $0xef8] sm:$0xff] }
 0x262   :  { %v2054_v26 = vadd.f32 %v1958_v33, %v1763_v8  ;;  %v874_v18 = vadd.f32 %v778_v22, %v583_v23  ;;  %v1650_v45 = vmul.f32 %v4945_v28, %v1553_v5  ;;  %v1651_v32 = vmul.f32 %v4945_v28, %v1554_v61  ;;  %v1862_v5 = vld [vmem:[#allocation6 + $0x11f0] sm:$0xff] }
 0x263   :  { %v2344_v24 = vadd.f32 %v2248_v60, %v2053_v19  ;;  %v1164_v27 = vadd.f32 %v1068_v40, %v873_v35  ;;  %v1941_v51 = vmul.f32 %v4947_v29, %v1844_v36  ;;  %v1942_v12 = vmul.f32 %v4947_v29, %v1845_v48  ;;  %v2426_v60 = vld [vmem:[#allocation6 + $0x1760] sm:$0xff]  ;;  %v1281_v40 = vld [vmem:[#allocation6 + $0xbf8] sm:$0xff]  ;;  %v2153_v36 = vld [vmem:[#allocation6 + $0x14f0] sm:$0xff] }
 0x264   :  { %v2345_v15 = vadd.f32 %v2249_v0, %v2054_v26  ;;  %v1165_v58 = vadd.f32 %v1069_v34, %v874_v18  ;;  %v2232_v47 = vmul.f32 %v4954_v42, %v2135_v31  ;;  %v2233_v38 = vmul.f32 %v4954_v42, %v2136_v54  ;;  %v311_v0 = vld [vmem:[#allocation15 + $0x2f8] sm:$0xff]  ;;  %v1863_v34 = vld [vmem:[#allocation6 + $0x11f8] sm:$0xff] }
 0x265   :  { %v2635_v57 = vadd.f32 %v2539_v14, %v2344_v24  ;;  %v1455_v33 = vadd.f32 %v1359_v41, %v1164_v27  ;;  %v504_v49 = vmul.f32 %v4928_v6, %v407_v46  ;;  %v505_v39 = vmul.f32 %v4928_v6, %v408_v53  ;;  %v2154_v48 = vld [vmem:[#allocation6 + $0x14f8] sm:$0xff]  ;;  %v391_v31 = vld [vmem:[#allocation6 + $0x270] sm:$0xff]  ;;  %v294_v53 = vld [vmem:[#allocation15 + $0x270] sm:$0xff] }
 0x266   :  { %v2636_v30 = vadd.f32 %v2540_v21, %v2345_v15  ;;  %v1456_v4 = vadd.f32 %v1360_v37, %v1165_v58  ;;  %v795_v59 = vmul.f32 %v4932_v11, %v698_v44  ;;  %v796_v9 = vmul.f32 %v4932_v11, %v699_v56  ;;  %v682_v46 = vld [vmem:[#allocation6 + $0x570] sm:$0xff]  ;;  %v683_v44 = vld [vmem:[#allocation6 + $0x578] sm:$0xff] }
 0x267   :  { %v1746_v3 = vadd.f32 %v1650_v45, %v1455_v33  ;;  %v600_v7 = vadd.f32 %v504_v49, %v310_v63  ;;  %v1086_v22 = vmul.f32 %v4936_v16, %v989_v2  ;;  %v2523_v20 = vmul.f32 %v4957_v43, %v2426_v60  ;;  %v973_v56 = vld [vmem:[#allocation6 + $0x870] sm:$0xff] }
 0x268   :  { %v4252_v52 = vpack.c.bf16 %v2636_v30, %v2635_v57  ;;  %v1747_v10 = vadd.f32 %v1651_v32, %v1456_v4  ;;  %v601_v8 = vadd.f32 %v505_v39, %v311_v0  ;;  %v1087_v25 = vmul.f32 %v4936_v16, %v990_v50  ;;  %v392_v32 = vld [vmem:[#allocation6 + $0x278] sm:$0xff]  ;;  %v295_v63 = vld [vmem:[#allocation15 + $0x278] sm:$0xff] }
 0x269   :  { %v2037_v61 = vadd.f32 %v1941_v51, %v1746_v3  ;;  %v2524_v14 = vmul.f32 %v4957_v43, %v2427_v62  ;;  %v891_v21 = vadd.f32 %v795_v59, %v600_v7  ;;  %v1377_v23 = vmul.f32 %v4938_v17, %v1280_v1  ;;  %v974_v57 = vld [vmem:[#allocation6 + $0x878] sm:$0xff]  ;;  %v2444_v60 = vld [vmem:[#allocation6 + $0x17f0] sm:$0xff] }
 0x26a   :  { %4253 = vmatprep.subr.bf16.mxu0 %v4252_v52  ;;  %v2038_v19 = vadd.f32 %v1942_v12, %v1747_v10  ;;  %v892_v26 = vadd.f32 %v796_v9, %v601_v8  ;;  %v1378_v35 = vmul.f32 %v4938_v17, %v1281_v40  ;;  %v1668_v41 = vmul.f32 %v4945_v28, %v1571_v55  ;;  %v1264_v49 = vld [vmem:[#allocation6 + $0xb70] sm:$0xff]  ;;  %v2445_v4 = vld [vmem:[#allocation6 + $0x17f8] sm:$0xff] }
 0x26b   :  { %v2328_v54 = vadd.f32 %v2232_v47, %v2037_v61  ;;  %v1182_v18 = vadd.f32 %v1086_v22, %v891_v21  ;;  %v1669_v37 = vmul.f32 %v4945_v28, %v1572_v13  ;;  %v1959_v45 = vmul.f32 %v4947_v29, %v1862_v5  ;;  %v1265_v9 = vld [vmem:[#allocation6 + $0xb78] sm:$0xff]  ;;  %v1555_v22 = vld [vmem:[#allocation6 + $0xe70] sm:$0xff] }
 0x26c   :  { %v2329_v24 = vadd.f32 %v2233_v38, %v2038_v19  ;;  %v1183_v15 = vadd.f32 %v1087_v25, %v892_v26  ;;  %v1960_v27 = vmul.f32 %v4947_v29, %v1863_v34  ;;  %v2250_v51 = vmul.f32 %v4954_v42, %v2153_v36  ;;  %v1556_v8 = vld [vmem:[#allocation6 + $0xe78] sm:$0xff] }
 0x26d   :  { %v2619_v58 = vadd.f32 %v2523_v20, %v2328_v54  ;;  %v1473_v12 = vadd.f32 %v1377_v23, %v1182_v18  ;;  %v2251_v47 = vmul.f32 %v4954_v42, %v2154_v48  ;;  %v488_v2 = vmul.f32 %v4928_v6, %v391_v31  ;;  %v1847_v36 = vld [vmem:[#allocation6 + $0x1178] sm:$0xff] }
 0x26e   :  { %v2620_v30 = vadd.f32 %v2524_v14, %v2329_v24  ;;  %v1474_v33 = vadd.f32 %v1378_v35, %v1183_v15  ;;  %v489_v38 = vmul.f32 %v4928_v6, %v392_v32  ;;  %v779_v0 = vmul.f32 %v4932_v11, %v682_v46  ;;  %v1846_v14 = vld [vmem:[#allocation6 + $0x1170] sm:$0xff]  ;;  %v2138_v18 = vld [vmem:[#allocation6 + $0x1478] sm:$0xff] }
 0x26f   :  { %v1764_v50 = vadd.f32 %v1668_v41, %v1473_v12  ;;  %v584_v62 = vadd.f32 %v488_v2, %v294_v53  ;;  %v780_v39 = vmul.f32 %v4932_v11, %v683_v44  ;;  %v1070_v59 = vmul.f32 %v4936_v16, %v973_v56  ;;  %v2137_v41 = vld [vmem:[#allocation6 + $0x1470] sm:$0xff]  ;;  %v2736_v12 = vld [vmem:[#allocation9 + $0x80] sm:$0xff]  ;;  %v2671_v2 = vld [vmem:[#allocation18] sm:$0xff] }
 0x270   :  { %v4254_v1 = vpack.c.bf16 %v2620_v30, %v2619_v58  ;;  %v1765_v52 = vadd.f32 %v1669_v37, %v1474_v33  ;;  %v585_v3 = vadd.f32 %v489_v38, %v295_v63  ;;  %v1071_v7 = vmul.f32 %v4936_v16, %v974_v57  ;;  %v2428_v46 = vld [vmem:[#allocation6 + $0x1770] sm:$0xff] }
 0x271   :  { %v2055_v40 = vadd.f32 %v1959_v45, %v1764_v50  ;;  %v2541_v55 = vmul.f32 %v4957_v43, %v2444_v60  ;;  %v875_v10 = vadd.f32 %v779_v0, %v584_v62  ;;  %v1361_v20 = vmul.f32 %v4938_v17, %v1264_v49  ;;  %v2688_v58 = vld [vmem:[#allocation9 + $0x8] sm:$0xff]  ;;  %v2672_v60 = vld [vmem:[#allocation18 + $0x8] sm:$0xff] }
 0x272   :  { %4255 = vmatpush3.bf16.msra.mxu0 %v4254_v1  ;;  %v2056_v25 = vadd.f32 %v1960_v27, %v1765_v52  ;;  %v2542_v13 = vmul.f32 %v4957_v43, %v2445_v4  ;;  %v876_v5 = vadd.f32 %v780_v39, %v585_v3  ;;  %v1362_v61 = vmul.f32 %v4938_v17, %v1265_v9  ;;  %v2429_v27 = vld [vmem:[#allocation6 + $0x1778] sm:$0xff]  ;;  %v2737_v57 = vld [vmem:[#allocation9 + $0x88] sm:$0xff]  ;;  %v2785_v0 = vld [vmem:[#allocation9 + $0x100] sm:$0xff] }
 0x273   :  { %v2346_v21 = vadd.f32 %v2250_v51, %v2055_v40  ;;  %v1166_v23 = vadd.f32 %v1070_v59, %v875_v10  ;;  %v1652_v34 = vmul.f32 %v4945_v28, %v1555_v22  ;;  %v1653_v35 = vmul.f32 %v4945_v28, %v1556_v8  ;;  %v2687_v51 = vld [vmem:[#allocation9] sm:$0xff]  ;;  %v2786_v39 = vld [vmem:[#allocation9 + $0x108] sm:$0xff] }
 0x274   :  { %v2347_v19 = vadd.f32 %v2251_v47, %v2056_v25  ;;  %v1167_v26 = vadd.f32 %v1071_v7, %v876_v5  ;;  %v1943_v54 = vmul.f32 %v4947_v29, %v1846_v14  ;;  %v1944_v32 = vmul.f32 %v4947_v29, %v1847_v36  ;;  %v2834_v52 = vld [vmem:[#allocation9 + $0x180] sm:$0xff]  ;;  %v2835_v3 = vld [vmem:[#allocation9 + $0x188] sm:$0xff] }
 0x275   :  { %v2637_v48 = vadd.f32 %v2541_v55, %v2346_v21  ;;  %v1457_v31 = vadd.f32 %v1361_v20, %v1166_v23  ;;  %v2234_v15 = vmul.f32 %v4954_v42, %v2137_v41  ;;  %v2235_v56 = vmul.f32 %v4954_v42, %v2138_v18  ;;  %v2883_v55 = vld [vmem:[#allocation9 + $0x200] sm:$0xff]  ;;  %v2640_v20 = vld [vmem:[#allocation7] sm:$0x1]  ;;  %v2933_v23 = vld [vmem:[#allocation9 + $0x288] sm:$0xff] }
 0x276   :  { %v2638_v37 = vadd.f32 %v2542_v13, %v2347_v19  ;;  %v1458_v45 = vadd.f32 %v1362_v61, %v1167_v26  ;;  %v2525_v63 = vmul.f32 %v4957_v43, %v2428_v46  ;;  %v2526_v33 = vmul.f32 %v4957_v43, %v2429_v27  ;;  %v2884_v13 = vld [vmem:[#allocation9 + $0x208] sm:$0xff]  ;;  %v2932_v21 = vld [vmem:[#allocation9 + $0x280] sm:$0xff]  ;;  %v3553_v19 = vld [vmem:[%s6080_s13 + $0x20] sm:$0xff]  ;;  %s4663_s13 = smov [#allocation24]  }
 0x277   :  { %v1748_v24 = vadd.f32 %v1652_v34, %v1457_v31  ;;  %v2703_v38 = vmul.f32 %v2687_v51, %v4928_v6  ;;  %v4660_v50 = vmov 0.0|0.0   ;;  %v2704_v4 = vmul.f32 %v2688_v58, %v4928_v6  ;;  %v2981_v34 = vld [vmem:[#allocation9 + $0x300] sm:$0xff]  ;;  %v2982_v41 = vld [vmem:[#allocation9 + $0x308] sm:$0xff]  ;;  %v2690_v31 = vld [vmem:[#allocation9 + $0x18] sm:$0xff]  ;;  %s3932_s26 = sshll.u32 %s4663_s13, 4  ;;  %s3933_s26 = int_to_ptr.vmem [resolvable:$true] %s3932_s26 }
 0x278   :  { %v4256_v53 = vpack.c.bf16 %v2638_v37, %v2637_v48  ;;  %v1749_v44 = vadd.f32 %v1653_v35, %v1458_v45  ;;  %4260 = vmatprep.subr.bf16.mxu1 %v4660_v50  ;;  %v2752_v62 = vmul.f32 %v2736_v12, %v4932_v11  ;;  %v2753_v1 = vmul.f32 %v2737_v57, %v4932_v11  ;;  %v2689_v48 = vld [vmem:[#allocation9 + $0x10] sm:$0xff]  ;;  %v3030_v45 = vld [vmem:[#allocation9 + $0x380] sm:$0xff]  ;;  %v2739_v46 = vld [vmem:[#allocation9 + $0x98] sm:$0xff]  ;;  %s4603_s27 = scalar_lea.vmem %s3933_s26, 128  ;;  %p4608_p2 = scmp.lt.s32.totalorder %s3933_s26, %s3933_s26 }
 0x279   :  { %v2039_v47 = vadd.f32 %v1943_v54, %v1748_v24  ;;  %v2719_v9 = vadd.f32 %v2703_v38, %v2671_v2  ;;  %v2720_v22 = vadd.f32 %v2704_v4, %v2672_v60  ;;  %v2801_v40 = vmul.f32 %v2785_v0, %v4936_v16  ;;  %v2788_v57 = vld [vmem:[#allocation9 + $0x118] sm:$0xff]  ;;  %v2639_v4 = vld [vmem:[#allocation16] sm:$0x1]  ;;  %p4604_p1 = scmp.ne.s32.totalorder %s3933_s26, %s4603_s27  ;;  %p4609_p3 = scmp.lt.s32.totalorder %s4603_s27, %s4603_s27 }
 0x27a   :  { %4257 = vmatprep.subr.bf16.mxu0 %v4256_v53  ;;  %v2040_v30 = vadd.f32 %v1944_v32, %v1749_v44  ;;  %v2802_v25 = vmul.f32 %v2786_v39, %v4936_v16  ;;  %v2850_v61 = vmul.f32 %v2834_v52, %v4938_v17  ;;  %v2851_v14 = vmul.f32 %v2835_v3, %v4938_v17  ;;  %v2738_v32 = vld [vmem:[#allocation9 + $0x90] sm:$0xff]  ;;  %v2673_v53 = vld [vmem:[#allocation18 + $0x10] sm:$0xff] }
 0x27b   :  { %v2330_v49 = vadd.f32 %v2234_v15, %v2039_v47  ;;  %v2768_v8 = vadd.f32 %v2752_v62, %v2719_v9  ;;  %v2769_v5 = vadd.f32 %v2753_v1, %v2720_v22  ;;  %v2899_v35 = vmul.f32 %v2883_v55, %v4945_v28  ;;  %v2674_v44 = vld [vmem:[#allocation18 + $0x18] sm:$0xff]  ;;  %v2644_v62 = vld [vmem:[#allocation7 + $0x1] sm:$0x1]  ;;  %p4610_p4 = por %p4609_p3, %p4608_p2 }
 0x27c   :  { %v2331_v59 = vadd.f32 %v2235_v56, %v2040_v30  ;;  %v2641_v54 = vmul.f32 %v2640_v20, %v4928_v6  ;;  %v2900_v37 = vmul.f32 %v2884_v13, %v4945_v28  ;;  %v2948_v15 = vmul.f32 %v2932_v21, %v4947_v29  ;;  %v2787_v56 = vld [vmem:[#allocation9 + $0x110] sm:$0xff]  ;;  %v3031_v47 = vld [vmem:[#allocation9 + $0x388] sm:$0xff]  ;;  %v2886_v55 = vld [vmem:[#allocation9 + $0x218] sm:$0xff] }
 0x27d   :  { %v2621_v7 = vadd.f32 %v2525_v63, %v2330_v49  ;;  %v2817_v26 = vadd.f32 %v2801_v40, %v2768_v8  ;;  %v2818_v18 = vadd.f32 %v2802_v25, %v2769_v5  ;;  %v2949_v27 = vmul.f32 %v2933_v23, %v4947_v29  ;;  %v2836_v30 = vld [vmem:[#allocation9 + $0x190] sm:$0xff]  ;;  %v2837_v49 = vld [vmem:[#allocation9 + $0x198] sm:$0xff]  ;;  %p4611_p5 = pnand %p4610_p4, %p4604_p1 }
 0x27e   :  { %v2622_v10 = vadd.f32 %v2526_v33, %v2331_v59  ;;  %v2997_v51 = vmul.f32 %v2981_v34, %v4954_v42  ;;  %v2998_v12 = vmul.f32 %v2982_v41, %v4954_v42  ;;  %v2705_v63 = vmul.f32 %v2689_v48, %v4928_v6  ;;  %v2885_v52 = vld [vmem:[#allocation9 + $0x210] sm:$0xff]  ;;  %v2935_v5 = vld [vmem:[#allocation9 + $0x298] sm:$0xff] }
 0x27f   :  { %v2866_v24 = vadd.f32 %v2850_v61, %v2817_v26  ;;  %v2867_v58 = vadd.f32 %v2851_v14, %v2818_v18  ;;  %v2706_v2 = vmul.f32 %v2690_v31, %v4928_v6  ;;  %v3046_v60 = vmul.f32 %v3030_v45, %v4957_v43  ;;  %v2934_v13 = vld [vmem:[#allocation9 + $0x290] sm:$0xff]  ;;  %v2691_v31 = vld [vmem:[#allocation9 + $0x20] sm:$0xff]  ;;  %v2692_v18 = vld [vmem:[#allocation9 + $0x28] sm:$0xff] }
 0x280   :  { %v4258_v36 = vpack.c.bf16 %v2622_v10, %v2621_v7  ;;  %v2754_v38 = vmul.f32 %v2738_v32, %v4932_v11  ;;  %v2755_v0 = vmul.f32 %v2739_v46, %v4932_v11  ;;  %v2721_v59 = vadd.f32 %v2705_v63, %v2673_v53  ;;  %v2983_v61 = vld [vmem:[#allocation9 + $0x310] sm:$0xff] }
 0x281   :  { %v2915_v33 = vadd.f32 %v2899_v35, %v2866_v24  ;;  %v2916_v39 = vadd.f32 %v2900_v37, %v2867_v58  ;;  %v2722_v9 = vadd.f32 %v2706_v2, %v2674_v44  ;;  %v2803_v1 = vmul.f32 %v2787_v56, %v4936_v16  ;;  %v2740_v37 = vld [vmem:[#allocation9 + $0xa0] sm:$0xff]  ;;  %v2675_v24 = vld [vmem:[#allocation18 + $0x20] sm:$0xff] }
 0x282   :  { %4259 = vmatpush3.bf16.msra.mxu0 %v4258_v36  ;;  %v3047_v7 = vmul.f32 %v3031_v47, %v4957_v43  ;;  %v2804_v22 = vmul.f32 %v2788_v57, %v4936_v16  ;;  %v2852_v40 = vmul.f32 %v2836_v30, %v4938_v17  ;;  %v2770_v20 = vadd.f32 %v2754_v38, %v2721_v59  ;;  %v2984_v36 = vld [vmem:[#allocation9 + $0x318] sm:$0xff]  ;;  %v2789_v58 = vld [vmem:[#allocation9 + $0x120] sm:$0xff] }
 0x283   :  { %4284 = vmatprep.subr.bf16.mxu0 %v4660_v50  ;;  %v2964_v3 = vadd.f32 %v2948_v15, %v2915_v33  ;;  %v2965_v10 = vadd.f32 %v2949_v27, %v2916_v39  ;;  %v2771_v8 = vadd.f32 %v2755_v0, %v2722_v9  ;;  %v2853_v25 = vmul.f32 %v2837_v49, %v4938_v17  ;;  %v2741_v15 = vld [vmem:[#allocation9 + $0xa8] sm:$0xff]  ;;  %v2676_v56 = vld [vmem:[#allocation18 + $0x28] sm:$0xff] }
 0x284   :  { %v5760_v14 = vadd.f32 %v2641_v54, %v2639_v4  ;;  %v5763_v21 = vmul.f32 %v2644_v62, %v4932_v11  ;;  %v2901_v34 = vmul.f32 %v2885_v52, %v4945_v28  ;;  %v2819_v35 = vadd.f32 %v2803_v1, %v2770_v20  ;;  %v3033_v47 = vld [vmem:[#allocation9 + $0x398] sm:$0xff]  ;;  %v2838_v33 = vld [vmem:[#allocation9 + $0x1a0] sm:$0xff]  ;;  %v2839_v4 = vld [vmem:[#allocation9 + $0x1a8] sm:$0xff] }
 0x285   :  { %3766 = vmatmul.mubr.f32.vlgmr.msra.gmra.mrb[2].mxu0 %v3553_v19  ;;  %v3013_v23 = vadd.f32 %v2997_v51, %v2964_v3  ;;  %v3032_v19 = vld [vmem:[#allocation9 + $0x390] sm:$0xff]  ;;  %v3014_v26 = vadd.f32 %v2998_v12, %v2965_v10  ;;  %v2820_v41 = vadd.f32 %v2804_v22, %v2771_v8  ;;  %v2902_v48 = vmul.f32 %v2886_v55, %v4945_v28  ;;  %v2790_v12 = vld [vmem:[#allocation9 + $0x128] sm:$0xff]  ;;  %v2887_v62 = vld [vmem:[#allocation9 + $0x220] sm:$0xff] }
 0x286   :  { %v2950_v54 = vmul.f32 %v2934_v13, %v4947_v29  ;;  %v2951_v32 = vmul.f32 %v2935_v5, %v4947_v29  ;;  %v2999_v46 = vmul.f32 %v2983_v61, %v4954_v42  ;;  %v2868_v51 = vadd.f32 %v2852_v40, %v2819_v35  ;;  %v2888_v52 = vld [vmem:[#allocation9 + $0x228] sm:$0xff]  ;;  %v2936_v3 = vld [vmem:[#allocation9 + $0x2a0] sm:$0xff]  ;;  %v2693_v35 = vld [vmem:[#allocation9 + $0x30] sm:$0xff] }
 0x287   :  { %v3062_v45 = vadd.f32 %v3046_v60, %v3013_v23  ;;  %v3063_v27 = vadd.f32 %v3047_v7, %v3014_v26  ;;  %v2869_v53 = vadd.f32 %v2853_v25, %v2820_v41  ;;  %v3000_v44 = vmul.f32 %v2984_v36, %v4954_v42  ;;  %v2937_v10 = vld [vmem:[#allocation9 + $0x2a8] sm:$0xff]  ;;  %v2985_v20 = vld [vmem:[#allocation9 + $0x320] sm:$0xff]  ;;  %v2694_v41 = vld [vmem:[#allocation9 + $0x38] sm:$0xff] }
 0x288   :  { %v3048_v63 = vmul.f32 %v3032_v19, %v4957_v43  ;;  %v2707_v2 = vmul.f32 %v2691_v31, %v4928_v6  ;;  %v2708_v57 = vmul.f32 %v2692_v18, %v4928_v6  ;;  %v2756_v30 = vmul.f32 %v2740_v37, %v4932_v11  ;;  %v2986_v61 = vld [vmem:[#allocation9 + $0x328] sm:$0xff]  ;;  %v3034_v23 = vld [vmem:[#allocation9 + $0x3a0] sm:$0xff] }
 0x289   :  { %v4261_v60 = vpack.c.bf16 %v3063_v27, %v3062_v45  ;;  %v2917_v38 = vadd.f32 %v2901_v34, %v2868_v51  ;;  %v2918_v0 = vadd.f32 %v2902_v48, %v2869_v53  ;;  %v2757_v49 = vmul.f32 %v2741_v15, %v4932_v11  ;;  %v2742_v45 = vld [vmem:[#allocation9 + $0xb0] sm:$0xff]  ;;  %v3035_v27 = vld [vmem:[#allocation9 + $0x3a8] sm:$0xff] }
 0x28a   :  { %v2723_v39 = vadd.f32 %v2707_v2, %v2675_v24  ;;  %v2724_v59 = vadd.f32 %v2708_v57, %v2676_v56  ;;  %v2805_v9 = vmul.f32 %v2789_v58, %v4936_v16  ;;  %v2806_v1 = vmul.f32 %v2790_v12, %v4936_v16  ;;  %v2677_v53 = vld [vmem:[#allocation18 + $0x30] sm:$0xff]  ;;  %v2792_v2 = vld [vmem:[#allocation9 + $0x138] sm:$0xff]  ;;  %v2840_v57 = vld [vmem:[#allocation9 + $0x1b0] sm:$0xff] }
 0x28b   :  { %4262 = vmatpush3.bf16.msra.mxu1 %v4261_v60  ;;  %v2966_v7 = vadd.f32 %v2950_v54, %v2917_v38  ;;  %v2967_v22 = vadd.f32 %v2951_v32, %v2918_v0  ;;  %v3049_v40 = vmul.f32 %v3033_v47, %v4957_v43  ;;  %v2854_v55 = vmul.f32 %v2838_v33, %v4938_v17  ;;  %v2743_v54 = vld [vmem:[#allocation9 + $0xb8] sm:$0xff]  ;;  %v2791_v32 = vld [vmem:[#allocation9 + $0x130] sm:$0xff] }
 0x28c   :  { %4263 = vmatprep.subr.bf16.mxu1 %v4660_v50  ;;  %v2772_v8 = vadd.f32 %v2756_v30, %v2723_v39  ;;  %v2773_v25 = vadd.f32 %v2757_v49, %v2724_v59  ;;  %v2855_v13 = vmul.f32 %v2839_v4, %v4938_v17  ;;  %v2903_v5 = vmul.f32 %v2887_v62, %v4945_v28  ;;  %v2841_v30 = vld [vmem:[#allocation9 + $0x1b8] sm:$0xff]  ;;  %v2889_v0 = vld [vmem:[#allocation9 + $0x230] sm:$0xff] }
 0x28d   :  { %v3015_v34 = vadd.f32 %v2999_v46, %v2966_v7  ;;  %v3016_v36 = vadd.f32 %v3000_v44, %v2967_v22  ;;  %v2904_v19 = vmul.f32 %v2888_v52, %v4945_v28  ;;  %v2952_v26 = vmul.f32 %v2936_v3, %v4947_v29  ;;  %v2678_v44 = vld [vmem:[#allocation18 + $0x38] sm:$0xff]  ;;  %v2890_v59 = vld [vmem:[#allocation9 + $0x238] sm:$0xff] }
 0x28e   :  { %v2821_v48 = vadd.f32 %v2805_v9, %v2772_v8  ;;  %v2822_v31 = vadd.f32 %v2806_v1, %v2773_v25  ;;  %v2953_v18 = vmul.f32 %v2937_v10, %v4947_v29  ;;  %v3001_v37 = vmul.f32 %v2985_v20, %v4954_v42  ;;  %v2938_v9 = vld [vmem:[#allocation9 + $0x2b0] sm:$0xff]  ;;  %v2939_v1 = vld [vmem:[#allocation9 + $0x2b8] sm:$0xff] }
 0x28f   :  { %v3064_v24 = vadd.f32 %v3048_v63, %v3015_v34  ;;  %v3065_v15 = vadd.f32 %v3049_v40, %v3016_v36  ;;  %v3002_v46 = vmul.f32 %v2986_v61, %v4954_v42  ;;  %v3050_v51 = vmul.f32 %v3034_v23, %v4957_v43  ;;  %v2987_v40 = vld [vmem:[#allocation9 + $0x330] sm:$0xff]  ;;  %v2988_v25 = vld [vmem:[#allocation9 + $0x338] sm:$0xff] }
 0x290   :  { %v2870_v56 = vadd.f32 %v2854_v55, %v2821_v48  ;;  %v2871_v58 = vadd.f32 %v2855_v13, %v2822_v31  ;;  %v2709_v12 = vmul.f32 %v2693_v35, %v4928_v6  ;;  %v2710_v47 = vmul.f32 %v2694_v41, %v4928_v6  ;;  %v3036_v13 = vld [vmem:[#allocation9 + $0x3b0] sm:$0xff] }
 0x291   :  { %v4264_v33 = vpack.c.bf16 %v3065_v15, %v3064_v24  ;;  %v2758_v63 = vmul.f32 %v2742_v45, %v4932_v11  ;;  %v2759_v60 = vmul.f32 %v2743_v54, %v4932_v11  ;;  %v2807_v38 = vmul.f32 %v2791_v32, %v4936_v16  ;;  %v2745_v45 = vld [vmem:[#allocation9 + $0xc8] sm:$0xff] }
 0x292   :  { %v2919_v49 = vadd.f32 %v2903_v5, %v2870_v56  ;;  %v2920_v4 = vadd.f32 %v2904_v19, %v2871_v58  ;;  %v2725_v62 = vadd.f32 %v2709_v12, %v2677_v53  ;;  %v2726_v39 = vadd.f32 %v2710_v47, %v2678_v44  ;;  %v2695_v5 = vld [vmem:[#allocation9 + $0x40] sm:$0xff]  ;;  %v2679_v19 = vld [vmem:[#allocation18 + $0x40] sm:$0xff] }
 0x293   :  { %4265 = vmatpush3.bf16.msra.mxu1 %v4264_v33  ;;  %v3051_v52 = vmul.f32 %v3035_v27, %v4957_v43  ;;  %v2808_v3 = vmul.f32 %v2792_v2, %v4936_v16  ;;  %v2856_v7 = vmul.f32 %v2840_v57, %v4938_v17  ;;  %v2857_v22 = vmul.f32 %v2841_v30, %v4938_v17  ;;  %v2793_v27 = vld [vmem:[#allocation9 + $0x140] sm:$0xff]  ;;  %v3037_v47 = vld [vmem:[#allocation9 + $0x3b8] sm:$0xff] }
 0x294   :  { %4266 = vmatprep.subr.bf16.mxu1 %v4660_v50  ;;  %v2968_v55 = vadd.f32 %v2952_v26, %v2919_v49  ;;  %v2969_v10 = vadd.f32 %v2953_v18, %v2920_v4  ;;  %v2774_v20 = vadd.f32 %v2758_v63, %v2725_v62  ;;  %v2775_v8 = vadd.f32 %v2759_v60, %v2726_v39  ;;  %v2696_v26 = vld [vmem:[#allocation9 + $0x48] sm:$0xff]  ;;  %v2744_v18 = vld [vmem:[#allocation9 + $0xc0] sm:$0xff] }
 0x295   :  { %v2905_v61 = vmul.f32 %v2889_v0, %v4945_v28  ;;  %v2906_v23 = vmul.f32 %v2890_v59, %v4945_v28  ;;  %v2954_v34 = vmul.f32 %v2938_v9, %v4947_v29  ;;  %v2955_v36 = vmul.f32 %v2939_v1, %v4947_v29  ;;  %v2842_v12 = vld [vmem:[#allocation9 + $0x1c0] sm:$0xff]  ;;  %v2843_v63 = vld [vmem:[#allocation9 + $0x1c8] sm:$0xff] }
 0x296   :  { %v3017_v35 = vadd.f32 %v3001_v37, %v2968_v55  ;;  %v3018_v41 = vadd.f32 %v3002_v46, %v2969_v10  ;;  %v2823_v48 = vadd.f32 %v2807_v38, %v2774_v20  ;;  %v2824_v31 = vadd.f32 %v2808_v3, %v2775_v8  ;;  %v2680_v37 = vld [vmem:[#allocation18 + $0x48] sm:$0xff]  ;;  %v2794_v46 = vld [vmem:[#allocation9 + $0x148] sm:$0xff] }
 0x297   :  { %v3003_v54 = vmul.f32 %v2987_v40, %v4954_v42  ;;  %v3004_v32 = vmul.f32 %v2988_v25, %v4954_v42  ;;  %v3052_v24 = vmul.f32 %v3036_v13, %v4957_v43  ;;  %v2711_v15 = vmul.f32 %v2695_v5, %v4928_v6  ;;  %v2891_v49 = vld [vmem:[#allocation9 + $0x240] sm:$0xff]  ;;  %v2892_v4 = vld [vmem:[#allocation9 + $0x248] sm:$0xff] }
 0x298   :  { %v3066_v53 = vadd.f32 %v3050_v51, %v3017_v35  ;;  %v3067_v44 = vadd.f32 %v3051_v52, %v3018_v41  ;;  %v2872_v56 = vadd.f32 %v2856_v7, %v2823_v48  ;;  %v2873_v58 = vadd.f32 %v2857_v22, %v2824_v31  ;;  %v2940_v1 = vld [vmem:[#allocation9 + $0x2c0] sm:$0xff]  ;;  %v2941_v52 = vld [vmem:[#allocation9 + $0x2c8] sm:$0xff]  ;;  %v2698_v35 = vld [vmem:[#allocation9 + $0x58] sm:$0xff] }
 0x299   :  { %v2712_v2 = vmul.f32 %v2696_v26, %v4928_v6  ;;  %v2727_v57 = vadd.f32 %v2711_v15, %v2679_v19  ;;  %v2760_v30 = vmul.f32 %v2744_v18, %v4932_v11  ;;  %v2761_v33 = vmul.f32 %v2745_v45, %v4932_v11  ;;  %v2989_v55 = vld [vmem:[#allocation9 + $0x340] sm:$0xff]  ;;  %v2990_v10 = vld [vmem:[#allocation9 + $0x348] sm:$0xff]  ;;  %v2746_v41 = vld [vmem:[#allocation9 + $0xd0] sm:$0xff] }
 0x29a   :  { %v4267_v60 = vpack.c.bf16 %v3067_v44, %v3066_v53  ;;  %v2921_v38 = vadd.f32 %v2905_v61, %v2872_v56  ;;  %v2922_v0 = vadd.f32 %v2906_v23, %v2873_v58  ;;  %v2809_v51 = vmul.f32 %v2793_v27, %v4936_v16  ;;  %v3038_v5 = vld [vmem:[#allocation9 + $0x3c0] sm:$0xff]  ;;  %v2697_v61 = vld [vmem:[#allocation9 + $0x50] sm:$0xff]  ;;  %v2747_v15 = vld [vmem:[#allocation9 + $0xd8] sm:$0xff] }
 0x29b   :  { %v2728_v62 = vadd.f32 %v2712_v2, %v2680_v37  ;;  %v2776_v39 = vadd.f32 %v2760_v30, %v2727_v57  ;;  %v2810_v59 = vmul.f32 %v2794_v46, %v4936_v16  ;;  %v2858_v9 = vmul.f32 %v2842_v12, %v4938_v17  ;;  %v2681_v45 = vld [vmem:[#allocation18 + $0x50] sm:$0xff]  ;;  %v2795_v27 = vld [vmem:[#allocation9 + $0x150] sm:$0xff]  ;;  %v2796_v58 = vld [vmem:[#allocation9 + $0x158] sm:$0xff] }
 0x29c   :  { %4268 = vmatpush3.bf16.msra.mxu1 %v4267_v60  ;;  %v2970_v3 = vadd.f32 %v2954_v34, %v2921_v38  ;;  %v2971_v7 = vadd.f32 %v2955_v36, %v2922_v0  ;;  %v3053_v22 = vmul.f32 %v3037_v47, %v4957_v43  ;;  %v2859_v40 = vmul.f32 %v2843_v63, %v4938_v17  ;;  %v3039_v12 = vld [vmem:[#allocation9 + $0x3c8] sm:$0xff]  ;;  %v2844_v57 = vld [vmem:[#allocation9 + $0x1d0] sm:$0xff]  ;;  %v2845_v60 = vld [vmem:[#allocation9 + $0x1d8] sm:$0xff] }
 0x29d   :  { %4269 = vmatprep.subr.bf16.mxu1 %v4660_v50  ;;  %v2777_v20 = vadd.f32 %v2761_v33, %v2728_v62  ;;  %v2825_v8 = vadd.f32 %v2809_v51, %v2776_v39  ;;  %v2907_v25 = vmul.f32 %v2891_v49, %v4945_v28  ;;  %v2908_v13 = vmul.f32 %v2892_v4, %v4945_v28  ;;  %v2648_v38 = vld [vmem:[#allocation7 + $0x2] sm:$0x1]  ;;  %v2893_v62 = vld [vmem:[#allocation9 + $0x250] sm:$0xff] }
 0x29e   :  { %v3019_v23 = vadd.f32 %v3003_v54, %v2970_v3  ;;  %v3020_v19 = vadd.f32 %v3004_v32, %v2971_v7  ;;  %v2956_v34 = vmul.f32 %v2940_v1, %v4947_v29  ;;  %v2957_v36 = vmul.f32 %v2941_v52, %v4947_v29  ;;  %v2682_v32 = vld [vmem:[#allocation18 + $0x58] sm:$0xff]  ;;  %v2894_v1 = vld [vmem:[#allocation9 + $0x258] sm:$0xff] }
 0x29f   :  { %v2826_v48 = vadd.f32 %v2810_v59, %v2777_v20  ;;  %v2874_v31 = vadd.f32 %v2858_v9, %v2825_v8  ;;  %v3005_v26 = vmul.f32 %v2989_v55, %v4954_v42  ;;  %v3006_v18 = vmul.f32 %v2990_v10, %v4954_v42 }
 0x2a0   :  { %v3068_v53 = vadd.f32 %v3052_v24, %v3019_v23  ;;  %v3069_v44 = vadd.f32 %v3053_v22, %v3020_v19  ;;  %v3054_v54 = vmul.f32 %v3038_v5, %v4957_v43  ;;  %v2713_v56 = vmul.f32 %v2697_v61, %v4928_v6 }
 0x2a1   :  { %v2875_v37 = vadd.f32 %v2859_v40, %v2826_v48  ;;  %v2923_v46 = vadd.f32 %v2907_v25, %v2874_v31  ;;  %v2714_v47 = vmul.f32 %v2698_v35, %v4928_v6  ;;  %v2762_v2 = vmul.f32 %v2746_v41, %v4932_v11  ;;  %v2942_v40 = vld [vmem:[#allocation9 + $0x2d0] sm:$0xff]  ;;  %v2943_v25 = vld [vmem:[#allocation9 + $0x2d8] sm:$0xff] }
 0x2a2   :  { %v4270_v30 = vpack.c.bf16 %v3069_v44, %v3068_v53  ;;  %v2729_v33 = vadd.f32 %v2713_v56, %v2681_v45  ;;  %v2763_v63 = vmul.f32 %v2747_v15, %v4932_v11  ;;  %v2811_v24 = vmul.f32 %v2795_v27, %v4936_v16  ;;  %v2992_v41 = vld [vmem:[#allocation9 + $0x358] sm:$0xff] }
 0x2a3   :  { %v2924_v0 = vadd.f32 %v2908_v13, %v2875_v37  ;;  %v2972_v51 = vadd.f32 %v2956_v34, %v2923_v46  ;;  %v2730_v49 = vadd.f32 %v2714_v47, %v2682_v32  ;;  %v2812_v4 = vmul.f32 %v2796_v58, %v4936_v16  ;;  %v2652_v13 = vld [vmem:[#allocation7 + $0x3] sm:$0x1]  ;;  %v2991_v34 = vld [vmem:[#allocation9 + $0x350] sm:$0xff]  ;;  %v2656_v53 = vld [vmem:[#allocation7 + $0x4] sm:$0x1] }
 0x2a4   :  { %4271 = vmatpush3.bf16.msra.mxu1 %v4270_v30  ;;  %v3055_v39 = vmul.f32 %v3039_v12, %v4957_v43  ;;  %v2778_v59 = vadd.f32 %v2762_v2, %v2729_v33  ;;  %v2860_v9 = vmul.f32 %v2844_v57, %v4938_v17  ;;  %v2861_v22 = vmul.f32 %v2845_v60, %v4938_v17  ;;  %v3041_v27 = vld [vmem:[#allocation9 + $0x3d8] sm:$0xff] }
 0x2a5   :  { %4272 = vmatprep.subr.bf16.mxu1 %v4660_v50  ;;  %v2973_v52 = vadd.f32 %v2957_v36, %v2924_v0  ;;  %v3021_v3 = vadd.f32 %v3005_v26, %v2972_v51  ;;  %v2779_v7 = vadd.f32 %v2763_v63, %v2730_v49  ;;  %v2646_v55 = vadd.f32 %v5763_v21, %v5760_v14  ;;  %v3040_v21 = vld [vmem:[#allocation9 + $0x3d0] sm:$0xff]  ;;  %v2660_v57 = vld [vmem:[#allocation7 + $0x5] sm:$0x1] }
 0x2a6   :  { %v2649_v10 = vmul.f32 %v2648_v38, %v4936_v16  ;;  %v2827_v20 = vadd.f32 %v2811_v24, %v2778_v59  ;;  %v2909_v8 = vmul.f32 %v2893_v62, %v4945_v28  ;;  %v2910_v19 = vmul.f32 %v2894_v1, %v4945_v28  ;;  %v2664_v38 = vld [vmem:[#allocation7 + $0x6] sm:$0x1]  ;;  %v2668_v62 = vld [vmem:[#allocation7 + $0x7] sm:$0x1] }
 0x2a7   :  { %v3022_v5 = vadd.f32 %v3006_v18, %v2973_v52  ;;  %v3070_v61 = vadd.f32 %v3054_v54, %v3021_v3  ;;  %v2828_v23 = vadd.f32 %v2812_v4, %v2779_v7  ;;  %v2958_v35 = vmul.f32 %v2942_v40, %v4947_v29  ;;  %v2699_v7 = vld [vmem:[#allocation9 + $0x60] sm:$0xff] }
 0x2a8   :  { %v2876_v36 = vadd.f32 %v2860_v9, %v2827_v20  ;;  %v2959_v14 = vmul.f32 %v2943_v25, %v4947_v29  ;;  %v2650_v26 = vadd.f32 %v2649_v10, %v2646_v55  ;;  %v2653_v45 = vmul.f32 %v2652_v13, %v4938_v17  ;;  %v2683_v25 = vld [vmem:[#allocation18 + $0x60] sm:$0xff]  ;;  %v2684_v13 = vld [vmem:[#allocation18 + $0x68] sm:$0xff] }
 0x2a9   :  { %v3071_v48 = vadd.f32 %v3055_v39, %v3022_v5  ;;  %v2877_v31 = vadd.f32 %v2861_v22, %v2828_v23  ;;  %v3007_v18 = vmul.f32 %v2991_v34, %v4954_v42  ;;  %v3008_v32 = vmul.f32 %v2992_v41, %v4954_v42  ;;  %v2700_v22 = vld [vmem:[#allocation9 + $0x68] sm:$0xff]  ;;  %v2748_v5 = vld [vmem:[#allocation9 + $0xe0] sm:$0xff] }
 0x2aa   :  { %v2925_v15 = vadd.f32 %v2909_v8, %v2876_v36  ;;  %v3056_v58 = vmul.f32 %v3040_v21, %v4957_v43  ;;  %v3057_v46 = vmul.f32 %v3041_v27, %v4957_v43  ;;  %v2654_v12 = vadd.f32 %v2653_v45, %v2650_v26  ;;  %v2798_v41 = vld [vmem:[#allocation9 + $0x168] sm:$0xff]  ;;  %v2702_v26 = vld [vmem:[#allocation9 + $0x78] sm:$0xff]  ;;  %v2846_v27 = vld [vmem:[#allocation9 + $0x1e0] sm:$0xff] }
 0x2ab   :  { %v4273_v44 = vpack.c.bf16 %v3071_v48, %v3070_v61  ;;  %v2926_v54 = vadd.f32 %v2910_v19, %v2877_v31  ;;  %v2657_v47 = vmul.f32 %v2656_v53, %v4945_v28  ;;  %v2661_v60 = vmul.f32 %v2660_v57, %v4947_v29  ;;  %v2749_v19 = vld [vmem:[#allocation9 + $0xe8] sm:$0xff]  ;;  %v2701_v48 = vld [vmem:[#allocation9 + $0x70] sm:$0xff]  ;;  %v2895_v57 = vld [vmem:[#allocation9 + $0x260] sm:$0xff] }
 0x2ac   :  { %v2974_v56 = vadd.f32 %v2958_v35, %v2925_v15  ;;  %v2665_v49 = vmul.f32 %v2664_v38, %v4954_v42  ;;  %v3556_v4 = vlaneseq  ;;  %v2669_v59 = vmul.f32 %v2668_v62, %v4957_v43  ;;  %v2797_v35 = vld [vmem:[#allocation9 + $0x160] sm:$0xff]  ;;  %v2847_v53 = vld [vmem:[#allocation9 + $0x1e8] sm:$0xff] }
 0x2ad   :  { %4274 = vmatpush3.bf16.msra.mxu1 %v4273_v44  ;;  %v2975_v37 = vadd.f32 %v2959_v14, %v2926_v54  ;;  %v2658_v24 = vadd.f32 %v2657_v47, %v2654_v12  ;;  %v2715_v55 = vmul.f32 %v2699_v7, %v4928_v6  ;;  %v2716_v10 = vmul.f32 %v2700_v22, %v4928_v6  ;;  %v2685_v44 = vld [vmem:[#allocation18 + $0x70] sm:$0xff]  ;;  %v2750_v12 = vld [vmem:[#allocation9 + $0xf0] sm:$0xff]  ;;  %v2751_v47 = vld [vmem:[#allocation9 + $0xf8] sm:$0xff] }
 0x2ae   :  { %4275 = vmatprep.subr.bf16.mxu1 %v4660_v50  ;;  %v3023_v2 = vadd.f32 %v3007_v18, %v2974_v56  ;;  %v3557_v9 = vshrl.u32 %v3556_v4, 7  ;;  %v2764_v34 = vmul.f32 %v2748_v5, %v4932_v11  ;;  %v2765_v36 = vmul.f32 %v2749_v19, %v4932_v11  ;;  %v2848_v7 = vld [vmem:[#allocation9 + $0x1f0] sm:$0xff] }
 0x2af   :  { %v3024_v30 = vadd.f32 %v3008_v32, %v2975_v37  ;;  %v2662_v51 = vadd.f32 %v2661_v60, %v2658_v24  ;;  %v2731_v61 = vadd.f32 %v2715_v55, %v2683_v25  ;;  %v2732_v23 = vadd.f32 %v2716_v10, %v2684_v13  ;;  %v2686_v37 = vld [vmem:[#allocation18 + $0x78] sm:$0xff]  ;;  %v2849_v10 = vld [vmem:[#allocation9 + $0x1f8] sm:$0xff]  ;;  %v2993_v25 = vld [vmem:[#allocation9 + $0x360] sm:$0xff] }
 0x2b0   :  { %v3072_v33 = vadd.f32 %v3056_v58, %v3023_v2  ;;  %v5851_v52 = vsub.s32 0, %v3557_v9  ;;  %v2813_v14 = vmul.f32 %v2797_v35, %v4936_v16  ;;  %v2814_v21 = vmul.f32 %v2798_v41, %v4936_v16  ;;  %v2799_v60 = vld [vmem:[#allocation9 + $0x170] sm:$0xff]  ;;  %v2994_v13 = vld [vmem:[#allocation9 + $0x368] sm:$0xff]  ;;  %v2898_v41 = vld [vmem:[#allocation9 + $0x278] sm:$0xff] }
 0x2b1   :  { %v3073_v63 = vadd.f32 %v3057_v46, %v3024_v30  ;;  %v2666_v39 = vadd.f32 %v2665_v49, %v2662_v51  ;;  %v2780_v31 = vadd.f32 %v2764_v34, %v2731_v61  ;;  %v2717_v45 = vmul.f32 %v2701_v48, %v4928_v6  ;;  %v2896_v30 = vld [vmem:[#allocation9 + $0x268] sm:$0xff]  ;;  %v2800_v49 = vld [vmem:[#allocation9 + $0x178] sm:$0xff]  ;;  %v2897_v19 = vld [vmem:[#allocation9 + $0x270] sm:$0xff] }
 0x2b2   :  { %v2781_v18 = vadd.f32 %v2765_v36, %v2732_v23  ;;  %v2718_v54 = vmul.f32 %v2702_v26, %v4928_v6  ;;  %v2862_v56 = vmul.f32 %v2846_v27, %v4938_v17  ;;  %v2863_v58 = vmul.f32 %v2847_v53, %v4938_v17  ;;  %v2946_v27 = vld [vmem:[#allocation9 + $0x2f0] sm:$0xff] }
 0x2b3   :  { %v4276_v0 = vpack.c.bf16 %v3073_v63, %v3072_v33  ;;  %v2670_v1 = vadd.f32 %v2669_v59, %v2666_v39  ;;  %v2829_v32 = vadd.f32 %v2813_v14, %v2780_v31  ;;  %v2733_v46 = vadd.f32 %v2717_v45, %v2685_v44  ;;  %v2944_v39 = vld [vmem:[#allocation9 + $0x2e0] sm:$0xff]  ;;  %v2945_v59 = vld [vmem:[#allocation9 + $0x2e8] sm:$0xff] }
 0x2b4   :  { %v2830_v2 = vadd.f32 %v2814_v21, %v2781_v18  ;;  %v2734_v33 = vadd.f32 %v2718_v54, %v2686_v37  ;;  %v2766_v63 = vmul.f32 %v2750_v12, %v4932_v11  ;;  %v2767_v24 = vmul.f32 %v2751_v47, %v4932_v11  ;;  %v3042_v14 = vld [vmem:[#allocation9 + $0x3e0] sm:$0xff]  ;;  %v3043_v21 = vld [vmem:[#allocation9 + $0x3e8] sm:$0xff] }
 0x2b5   :  { %4277 = vmatpush3.bf16.msra.mxu1 %v4276_v0  ;;  %v3559_v20 = vrot.slane %v2670_v1, %v5851_v52  ;;  %v2878_v38 = vadd.f32 %v2862_v56, %v2829_v32  ;;  %v2911_v0 = vmul.f32 %v2895_v57, %v4945_v28  ;;  %v2912_v51 = vmul.f32 %v2896_v30, %v4945_v28  ;;  %v2947_v32 = vld [vmem:[#allocation9 + $0x2f8] sm:$0xff] }
 0x2b6   :  { %4278 = vmatprep.subr.bf16.mxu1 %v4660_v50  ;;  %v2815_v4 = vmul.f32 %v2799_v60, %v4936_v16  ;;  %v2879_v62 = vadd.f32 %v2863_v58, %v2830_v2  ;;  %v2782_v9 = vadd.f32 %v2766_v63, %v2733_v46  ;;  %v2783_v1 = vadd.f32 %v2767_v24, %v2734_v33  ;;  %v2995_v2 = vld [vmem:[#allocation9 + $0x370] sm:$0xff]  ;;  %v2996_v57 = vld [vmem:[#allocation9 + $0x378] sm:$0xff] }
 0x2b7   :  { %v2927_v22 = vadd.f32 %v2911_v0, %v2878_v38  ;;  %v2961_v55 = vmul.f32 %v2945_v59, %v4947_v29  ;;  %v2865_v23 = vmul.f32 %v2849_v10, %v4938_v17  ;;  %v3009_v36 = vmul.f32 %v2993_v25, %v4954_v42  ;;  %v3110_v10 = vld [vmem:[#allocation21] sm:$0xff] }
 0x2b8   :  { %v2831_v5 = vadd.f32 %v2815_v4, %v2782_v9  ;;  %v3010_v35 = vmul.f32 %v2994_v13, %v4954_v42  ;;  %v2913_v48 = vmul.f32 %v2897_v19, %v4945_v28  ;;  %v2914_v18 = vmul.f32 %v2898_v41, %v4945_v28  ;;  %v3045_v4 = vld [vmem:[#allocation9 + $0x3f8] sm:$0xff]  ;;  %v3127_v25 = vld [vmem:[#allocation12 + $0x8] sm:$0xff]  ;;  %v3175_v13 = vld [vmem:[#allocation12 + $0x80] sm:$0xff] }
 0x2b9   :  { %v3058_v44 = vmul.f32 %v3042_v14, %v4957_v43  ;;  %v3059_v54 = vmul.f32 %v3043_v21, %v4957_v43  ;;  %v2962_v56 = vmul.f32 %v2946_v27, %v4947_v29  ;;  %v2963_v47 = vmul.f32 %v2947_v32, %v4947_v29  ;;  %v3322_v14 = vld [vmem:[#allocation12 + $0x200] sm:$0xff]  ;;  %v3323_v21 = vld [vmem:[#allocation12 + $0x208] sm:$0xff] }
 0x2ba   :  { %v3011_v63 = vmul.f32 %v2995_v2, %v4954_v42  ;;  %v3012_v24 = vmul.f32 %v2996_v57, %v4954_v42 }
 0x2c4   :  { %v3987_v3 = vpop.f32.mrb[0].mxu0 }
 0x2c5   :  { %v3988_v40 = vpop.f32.mrb[1].mxu0 }
 0x2c6   :  { %v3989_v8 = vadd.f32 %v3988_v40, %v3987_v3  ;;  %v2816_v3 = vmul.f32 %v2800_v49, %v4936_v16  ;;  %v2960_v40 = vmul.f32 %v2944_v39, %v4947_v29  ;;  %v3044_v49 = vld [vmem:[#allocation9 + $0x3f0] sm:$0xff]  ;;  %v3061_v39 = vmul.f32 %v3045_v4, %v4957_v43 }
 0x2c8   :  { %v5861_v15 = vadd.f32 %v3989_v8, %v3559_v20  ;;  %v2864_v20 = vmul.f32 %v2848_v7, %v4938_v17  ;;  %v2928_v8 = vadd.f32 %v2912_v51, %v2879_v62  ;;  %v2832_v61 = vadd.f32 %v2816_v3, %v2783_v1 }
 0x2c9   :  { %v2976_v34 = vadd.f32 %v2960_v40, %v2927_v22  ;;  %v3060_v62 = vmul.f32 %v3044_v49, %v4957_v43  ;;  %v3129_v49 = vld [vmem:[#allocation12 + $0x18] sm:$0xff] }
 0x2ca   :  { %v2977_v31 = vadd.f32 %v2961_v55, %v2928_v8  ;;  %v2880_v26 = vadd.f32 %v2864_v20, %v2831_v5  ;;  %v2881_v45 = vadd.f32 %v2865_v23, %v2832_v61  ;;  %v4662_v55 = vmov 0.0   ;;  %v3111_v20 = vld [vmem:[#allocation21 + $0x8] sm:$0xff]  ;;  %v3126_v8 = vld [vmem:[#allocation12] sm:$0xff]  ;;  %v3176_v5 = vld [vmem:[#allocation12 + $0x88] sm:$0xff] }
 0x2cb   :  { %v3025_v53 = vadd.f32 %v3009_v36, %v2976_v34  ;;  %4126 = vmatprep.mubr.msk.f32.mxu1 %vm4661_vm0, %v4662_v55  ;;  %4161 = vmatprep.mubr.msk.f32.mxu0 %vm4661_vm0, %v4662_v55  ;;  %v3143_v61 = vmul.f32 %v3127_v25, %v4928_v6  ;;  %v3191_v23 = vmul.f32 %v3175_v13, %v4932_v11  ;;  %v3224_v34 = vld [vmem:[#allocation12 + $0x100] sm:$0xff]  ;;  %v3225_v36 = vld [vmem:[#allocation12 + $0x108] sm:$0xff]  ;;  %v3275_v55 = vld [vmem:[#allocation12 + $0x190] sm:$0xff] }
 0x2cc   :  { %v3026_v37 = vadd.f32 %v3010_v35, %v2977_v31  ;;  %v2929_v46 = vadd.f32 %v2913_v48, %v2880_v26  ;;  %v2930_v12 = vadd.f32 %v2914_v18, %v2881_v45  ;;  %v3192_v19 = vmul.f32 %v3176_v5, %v4932_v11  ;;  %v3273_v35 = vld [vmem:[#allocation12 + $0x180] sm:$0xff]  ;;  %v3274_v31 = vld [vmem:[#allocation12 + $0x188] sm:$0xff]  ;;  %v3324_v13 = vld [vmem:[#allocation12 + $0x210] sm:$0xff] }
 0x2cd   :  { %v3074_v33 = vadd.f32 %v3058_v44, %v3025_v53  ;;  %v3240_v48 = vmul.f32 %v3224_v34, %v4936_v16  ;;  %v3159_v26 = vadd.f32 %v3143_v61, %v3111_v20  ;;  %v3241_v45 = vmul.f32 %v3225_v36, %v4936_v16  ;;  %v3371_v53 = vld [vmem:[#allocation12 + $0x280] sm:$0xff]  ;;  %v3372_v44 = vld [vmem:[#allocation12 + $0x288] sm:$0xff]  ;;  %v3325_v5 = vld [vmem:[#allocation12 + $0x218] sm:$0xff] }
 0x2ce   :  { %v3075_v38 = vadd.f32 %v3059_v54, %v3026_v37  ;;  %v2978_v0 = vadd.f32 %v2962_v56, %v2929_v46  ;;  %v2979_v51 = vadd.f32 %v2963_v47, %v2930_v12  ;;  %v3289_v18 = vmul.f32 %v3273_v35, %v4938_v17  ;;  %v3420_v54 = vld [vmem:[#allocation12 + $0x300] sm:$0xff]  ;;  %v3421_v46 = vld [vmem:[#allocation12 + $0x308] sm:$0xff]  ;;  %v3373_v36 = vld [vmem:[#allocation12 + $0x290] sm:$0xff] }
 0x2cf   :  { %v3290_v27 = vmul.f32 %v3274_v31, %v4938_v17  ;;  %v3338_v56 = vmul.f32 %v3322_v14, %v4945_v28  ;;  %v3387_v37 = vmul.f32 %v3371_v53, %v4947_v29  ;;  %v3469_v12 = vld [vmem:[#allocation12 + $0x380] sm:$0xff]  ;;  %v3470_v47 = vld [vmem:[#allocation12 + $0x388] sm:$0xff]  ;;  %v3208_v2 = vadd.f32 %v3192_v19, %v3159_v26  ;;  %v3374_v35 = vld [vmem:[#allocation12 + $0x298] sm:$0xff] }
 0x2d0   :  { %v4279_v9 = vpack.c.bf16 %v3075_v38, %v3074_v33  ;;  %v3027_v1 = vadd.f32 %v3011_v63, %v2978_v0  ;;  %v3028_v3 = vadd.f32 %v3012_v24, %v2979_v51  ;;  %v3388_v57 = vmul.f32 %v3372_v44, %v4947_v29  ;;  %v3112_v63 = vld [vmem:[#allocation21 + $0x10] sm:$0xff]  ;;  %v3113_v24 = vld [vmem:[#allocation21 + $0x18] sm:$0xff] }
 0x2d1   :  { %v5906_v33 = vmul.f32 %v3421_v46, %v4954_v42  ;;  %v5909_v0 = vmul.f32 %v3469_v12, %v4957_v43  ;;  %v5912_v51 = vmul.f32 %v3470_v47, %v4957_v43  ;;  %v3291_v19 = vmul.f32 %v3275_v55, %v4938_v17  ;;  %v3423_v26 = vld [vmem:[#allocation12 + $0x318] sm:$0xff] }
 0x2d2   :  { %4280 = vmatpush3.bf16.msra.mxu1 %v4279_v9  ;;  %v3076_v7 = vadd.f32 %v3060_v62, %v3027_v1  ;;  %v3077_v22 = vadd.f32 %v3061_v39, %v3028_v3  ;;  %v3177_v62 = vld [vmem:[#allocation12 + $0x90] sm:$0xff]  ;;  %v3178_v39 = vld [vmem:[#allocation12 + $0x98] sm:$0xff]  ;;  %v3257_v9 = vadd.f32 %v3241_v45, %v3208_v2  ;;  %v3145_v1 = vmul.f32 %v3129_v49, %v4928_v6  ;;  %v3131_v2 = vld [vmem:[#allocation12 + $0x28] sm:$0xff] }
 0x2d3   :  { %4281 = vmatprep.subr.bf16.mxu1 %v4660_v50  ;;  %v3193_v3 = vmul.f32 %v3177_v62, %v4932_v11  ;;  %v3340_v14 = vmul.f32 %v3324_v13, %v4945_v28  ;;  %v3471_v45 = vld [vmem:[#allocation12 + $0x390] sm:$0xff]  ;;  %v3326_v13 = vld [vmem:[#allocation12 + $0x220] sm:$0xff] }
 0x2d4   :  { %v4022_v58 = vpop.f32.mrb[0].mxu1  ;;  %v4282_v40 = vpack.c.bf16 %v3077_v22, %v3076_v7  ;;  %v3194_v7 = vmul.f32 %v3178_v39, %v4932_v11  ;;  %v3226_v22 = vld [vmem:[#allocation12 + $0x110] sm:$0xff]  ;;  %v3306_v61 = vadd.f32 %v3290_v27, %v3257_v9  ;;  %v3389_v27 = vmul.f32 %v3373_v36, %v4947_v29 }
 0x2d5   :  { %v4023_v30 = vpop.f32.mrb[1].mxu1  ;;  %v3487_v49 = vmul.f32 %v3471_v45, %v4957_v43  ;;  %v3115_v62 = vld [vmem:[#allocation21 + $0x28] sm:$0xff] }
 0x2d6   :  { %v4024_v60 = vadd.f32 %v4023_v30, %v4022_v58  ;;  %4283 = vmatpush3.bf16.msra.mxu1 %v4282_v40  ;;  %v3339_v58 = vmul.f32 %v3323_v21, %v4945_v28  ;;  %v3436_v30 = vmul.f32 %v3420_v54, %v4954_v42  ;;  %v3227_v40 = vld [vmem:[#allocation12 + $0x118] sm:$0xff]  ;;  %v3341_v21 = vmul.f32 %v3325_v5, %v4945_v28 }
 0x2d7   :  { %v3243_v25 = vmul.f32 %v3227_v40, %v4936_v16  ;;  %v3390_v54 = vmul.f32 %v3374_v35, %v4947_v29 }
 0x2d8   :  { %v5889_v59 = vadd.f32 %v4024_v60, %v5861_v15  ;;  %v3142_v15 = vmul.f32 %v3126_v8, %v4928_v6  ;;  %v3128_v60 = vld [vmem:[#allocation12 + $0x10] sm:$0xff]  ;;  %v3242_v8 = vmul.f32 %v3226_v22, %v4936_v16  ;;  %v3355_v53 = vadd.f32 %v3339_v58, %v3306_v61 }
 0x2d9   :  { %v3144_v4 = vmul.f32 %v3128_v60, %v4928_v6 }
 0x2da   :  { %v3158_v41 = vadd.f32 %v3142_v15, %v3110_v10  ;;  %v3276_v15 = vld [vmem:[#allocation12 + $0x198] sm:$0xff]  ;;  %v3404_v60 = vadd.f32 %v3388_v57, %v3355_v53 }
 0x2db   :  { %v3160_v20 = vadd.f32 %v3144_v4, %v3112_v63  ;;  %v3292_v34 = vmul.f32 %v3276_v15, %v4938_v17  ;;  %v3179_v63 = vld [vmem:[#allocation12 + $0xa0] sm:$0xff]  ;;  %v3114_v4 = vld [vmem:[#allocation21 + $0x20] sm:$0xff] }
 0x2dc   :  { %v3207_v32 = vadd.f32 %v3191_v23, %v3158_v41  ;;  %v3161_v23 = vadd.f32 %v3145_v1, %v3113_v24  ;;  %v3422_v41 = vld [vmem:[#allocation12 + $0x310] sm:$0xff]  ;;  %v3180_v24 = vld [vmem:[#allocation12 + $0xa8] sm:$0xff]  ;;  %v3147_v1 = vmul.f32 %v3131_v2, %v4928_v6  ;;  %v3453_v22 = vadd.f32 %v5906_v33, %v3404_v60  ;;  %v3133_v60 = vld [vmem:[#allocation12 + $0x38] sm:$0xff] }
 0x2dd   :  { %v3209_v31 = vadd.f32 %v3193_v3, %v3160_v20  ;;  %v3438_v47 = vmul.f32 %v3422_v41, %v4954_v42  ;;  %v3228_v3 = vld [vmem:[#allocation12 + $0x120] sm:$0xff]  ;;  %v3195_v57 = vmul.f32 %v3179_v63, %v4932_v11  ;;  %v3196_v55 = vmul.f32 %v3180_v24, %v4932_v11  ;;  %v3278_v15 = vld [vmem:[#allocation12 + $0x1a8] sm:$0xff] }
 0x2de   :  { %v3256_v38 = vadd.f32 %v3240_v48, %v3207_v32  ;;  %v3210_v44 = vadd.f32 %v3194_v7, %v3161_v23  ;;  %v3130_v32 = vld [vmem:[#allocation12 + $0x20] sm:$0xff]  ;;  %v3229_v7 = vld [vmem:[#allocation12 + $0x128] sm:$0xff]  ;;  %v3502_v5 = vadd.f32 %v5912_v51, %v3453_v22  ;;  %v3244_v23 = vmul.f32 %v3228_v3, %v4936_v16 }
 0x2df   :  { %v3258_v12 = vadd.f32 %v3242_v8, %v3209_v31  ;;  %v3245_v33 = vmul.f32 %v3229_v7, %v4936_v16  ;;  %v3424_v31 = vld [vmem:[#allocation12 + $0x320] sm:$0xff]  ;;  %v3294_v45 = vmul.f32 %v3278_v15, %v4938_v17  ;;  %v3342_v51 = vmul.f32 %v3326_v13, %v4945_v28 }
 0x2e0   :  { %v3305_v10 = vadd.f32 %v3289_v18, %v3256_v38  ;;  %v3472_v18 = vld [vmem:[#allocation12 + $0x398] sm:$0xff]  ;;  %v3259_v38 = vadd.f32 %v3243_v25, %v3210_v44  ;;  %v3117_v22 = vld [vmem:[#allocation21 + $0x38] sm:$0xff] }
 0x2e1   :  { %v3488_v58 = vmul.f32 %v3472_v18, %v4957_v43  ;;  %v3307_v9 = vadd.f32 %v3291_v19, %v3258_v12  ;;  %v3327_v19 = vld [vmem:[#allocation12 + $0x228] sm:$0xff]  ;;  %v3132_v12 = vld [vmem:[#allocation12 + $0x30] sm:$0xff] }
 0x2e2   :  { %v3354_v48 = vadd.f32 %v3338_v56, %v3305_v10  ;;  %v3439_v56 = vmul.f32 %v3423_v26, %v4954_v42  ;;  %v3308_v40 = vadd.f32 %v3292_v34, %v3259_v38  ;;  %v3277_v10 = vld [vmem:[#allocation12 + $0x1a0] sm:$0xff]  ;;  %v3181_v38 = vld [vmem:[#allocation12 + $0xb0] sm:$0xff] }
 0x2e3   :  { %v3356_v8 = vadd.f32 %v3340_v14, %v3307_v9  ;;  %v3293_v41 = vmul.f32 %v3277_v10, %v4938_v17  ;;  %v3116_v9 = vld [vmem:[#allocation21 + $0x30] sm:$0xff] }
 0x2e4   :  { %v3403_v46 = vadd.f32 %v3387_v37, %v3354_v48  ;;  %v3146_v37 = vmul.f32 %v3130_v32, %v4928_v6  ;;  %v3357_v61 = vadd.f32 %v3341_v21, %v3308_v40  ;;  %v3375_v48 = vld [vmem:[#allocation12 + $0x2a0] sm:$0xff]  ;;  %v3425_v21 = vld [vmem:[#allocation12 + $0x328] sm:$0xff]  ;;  %v3343_v32 = vmul.f32 %v3327_v19, %v4945_v28 }
 0x2e5   :  { %v3405_v34 = vadd.f32 %v3389_v27, %v3356_v8  ;;  %v3473_v27 = vld [vmem:[#allocation12 + $0x3a0] sm:$0xff]  ;;  %v3391_v63 = vmul.f32 %v3375_v48, %v4947_v29  ;;  %v3148_v40 = vmul.f32 %v3132_v12, %v4928_v6  ;;  %v3279_v8 = vld [vmem:[#allocation12 + $0x1b0] sm:$0xff]  ;;  %v3135_v12 = vld [vmem:[#allocation12 + $0x48] sm:$0xff] }
 0x2e6   :  { %v3452_v39 = vadd.f32 %v3436_v30, %v3403_v46  ;;  %v3162_v25 = vadd.f32 %v3146_v37, %v3114_v4  ;;  %v3163_v30 = vadd.f32 %v3147_v1, %v3115_v62  ;;  %v3406_v26 = vadd.f32 %v3390_v54, %v3357_v61  ;;  %v3474_v46 = vld [vmem:[#allocation12 + $0x3a8] sm:$0xff]  ;;  %v3182_v37 = vld [vmem:[#allocation12 + $0xb8] sm:$0xff]  ;;  %v3230_v1 = vld [vmem:[#allocation12 + $0x130] sm:$0xff] }
 0x2e7   :  { %v3454_v18 = vadd.f32 %v3438_v47, %v3405_v34  ;;  %v3440_v54 = vmul.f32 %v3424_v31, %v4954_v42  ;;  %v3490_v7 = vmul.f32 %v3474_v46, %v4957_v43  ;;  %v3164_v15 = vadd.f32 %v3148_v40, %v3116_v9  ;;  %v3329_v34 = vld [vmem:[#allocation12 + $0x238] sm:$0xff]  ;;  %v3426_v31 = vld [vmem:[#allocation12 + $0x330] sm:$0xff] }
 0x2e8   :  { %v3501_v20 = vadd.f32 %v5909_v0, %v3452_v39  ;;  %v3211_v36 = vadd.f32 %v3195_v57, %v3162_v25  ;;  %v3212_v35 = vadd.f32 %v3196_v55, %v3163_v30  ;;  %v3376_v0 = vld [vmem:[#allocation12 + $0x2a8] sm:$0xff]  ;;  %v3455_v2 = vadd.f32 %v3439_v56, %v3406_v26  ;;  %v3231_v57 = vld [vmem:[#allocation12 + $0x138] sm:$0xff] }
 0x2e9   :  { %v3392_v24 = vmul.f32 %v3376_v0, %v4947_v29  ;;  %v3503_v47 = vadd.f32 %v3487_v49, %v3454_v18  ;;  %v3441_v39 = vmul.f32 %v3425_v21, %v4954_v42  ;;  %v3489_v56 = vmul.f32 %v3473_v27, %v4957_v43  ;;  %v3280_v25 = vld [vmem:[#allocation12 + $0x1b8] sm:$0xff]  ;;  %v3475_v18 = vld [vmem:[#allocation12 + $0x3b0] sm:$0xff] }
 0x2ea   :  { %v4285_v14 = vpack.c.bf16 %v3502_v5, %v3501_v20  ;;  %v3260_v53 = vadd.f32 %v3244_v23, %v3211_v36  ;;  %v3261_v44 = vadd.f32 %v3245_v33, %v3212_v35  ;;  %v3504_v3 = vadd.f32 %v3488_v58, %v3455_v2  ;;  %v3328_v5 = vld [vmem:[#allocation12 + $0x230] sm:$0xff]  ;;  %v3378_v35 = vld [vmem:[#allocation12 + $0x2b8] sm:$0xff]  ;;  %v3183_v2 = vld [vmem:[#allocation12 + $0xc0] sm:$0xff] }
 0x2eb   :  { %v3149_v49 = vmul.f32 %v3133_v60, %v4928_v6  ;;  %v3197_v20 = vmul.f32 %v3181_v38, %v4932_v11  ;;  %v3198_v58 = vmul.f32 %v3182_v37, %v4932_v11  ;;  %v3246_v13 = vmul.f32 %v3230_v1, %v4936_v16  ;;  %v3377_v36 = vld [vmem:[#allocation12 + $0x2b0] sm:$0xff]  ;;  %v3427_v21 = vld [vmem:[#allocation12 + $0x338] sm:$0xff] }
 0x2ec   :  { %4286 = vmatpush3.bf16.msra.mxu0 %v4285_v14  ;;  %v3309_v4 = vadd.f32 %v3293_v41, %v3260_v53  ;;  %v3310_v62 = vadd.f32 %v3294_v45, %v3261_v44  ;;  %v4288_v30 = vpack.c.bf16 %v3504_v3, %v3503_v47  ;;  %v3247_v19 = vmul.f32 %v3231_v57, %v4936_v16  ;;  %v3134_v53 = vld [vmem:[#allocation12 + $0x40] sm:$0xff]  ;;  %v3118_v38 = vld [vmem:[#allocation21 + $0x40] sm:$0xff]  ;;  %v3476_v9 = vld [vmem:[#allocation12 + $0x3b8] sm:$0xff] }
 0x2ed   :  { %4287 = vmatprep.subr.bf16.mxu0 %v4660_v50  ;;  %v3165_v33 = vadd.f32 %v3149_v49, %v3117_v22  ;;  %v3213_v41 = vadd.f32 %v3197_v20, %v3164_v15  ;;  %v3295_v48 = vmul.f32 %v3279_v8, %v4938_v17  ;;  %v3296_v0 = vmul.f32 %v3280_v25, %v4938_v17  ;;  %v3184_v47 = vld [vmem:[#allocation12 + $0xc8] sm:$0xff]  ;;  %v3119_v1 = vld [vmem:[#allocation21 + $0x48] sm:$0xff] }
 0x2ee   :  { %v3358_v55 = vadd.f32 %v3342_v51, %v3309_v4  ;;  %v3359_v10 = vadd.f32 %v3343_v32, %v3310_v62  ;;  %v3344_v51 = vmul.f32 %v3328_v5, %v4945_v28  ;;  %v3345_v32 = vmul.f32 %v3329_v34, %v4945_v28  ;;  %v3232_v4 = vld [vmem:[#allocation12 + $0x140] sm:$0xff]  ;;  %v3233_v22 = vld [vmem:[#allocation12 + $0x148] sm:$0xff] }
 0x2ef   :  { %v3214_v45 = vadd.f32 %v3198_v58, %v3165_v33  ;;  %v3262_v44 = vadd.f32 %v3246_v13, %v3213_v41  ;;  %v3393_v27 = vmul.f32 %v3377_v36, %v4947_v29  ;;  %v3394_v46 = vmul.f32 %v3378_v35, %v4947_v29  ;;  %v3331_v15 = vld [vmem:[#allocation12 + $0x248] sm:$0xff]  ;;  %v3428_v41 = vld [vmem:[#allocation12 + $0x340] sm:$0xff] }
 0x2f0   :  { %v3407_v61 = vadd.f32 %v3391_v63, %v3358_v55  ;;  %v3408_v23 = vadd.f32 %v3392_v24, %v3359_v10  ;;  %4289 = vmatpush3.bf16.msra.mxu0 %v4288_v30  ;;  %v3491_v37 = vmul.f32 %v3475_v18, %v4957_v43  ;;  %v3150_v3 = vmul.f32 %v3134_v53, %v4928_v6  ;;  %v3281_v55 = vld [vmem:[#allocation12 + $0x1c0] sm:$0xff]  ;;  %v3282_v10 = vld [vmem:[#allocation12 + $0x1c8] sm:$0xff] }
 0x2f1   :  { %4290 = vmatprep.subr.bf16.mxu0 %v4660_v50  ;;  %v3263_v60 = vadd.f32 %v3247_v19, %v3214_v45  ;;  %v3311_v62 = vadd.f32 %v3295_v48, %v3262_v44  ;;  %v3200_v8 = vmul.f32 %v3184_v47, %v4932_v11  ;;  %v3248_v25 = vmul.f32 %v3232_v4, %v4936_v16  ;;  %v3330_v30 = vld [vmem:[#allocation12 + $0x240] sm:$0xff]  ;;  %v3380_v33 = vld [vmem:[#allocation12 + $0x2c8] sm:$0xff] }
 0x2f2   :  { %v3456_v14 = vadd.f32 %v3440_v54, %v3407_v61  ;;  %v3457_v26 = vadd.f32 %v3441_v39, %v3408_v23  ;;  %v3442_v54 = vmul.f32 %v3426_v31, %v4954_v42  ;;  %v3443_v39 = vmul.f32 %v3427_v21, %v4954_v42  ;;  %v3379_v23 = vld [vmem:[#allocation12 + $0x2c0] sm:$0xff]  ;;  %v3429_v48 = vld [vmem:[#allocation12 + $0x348] sm:$0xff] }
 0x2f3   :  { %v3312_v57 = vadd.f32 %v3296_v0, %v3263_v60  ;;  %v3360_v49 = vadd.f32 %v3344_v51, %v3311_v62  ;;  %v3166_v20 = vadd.f32 %v3150_v3, %v3118_v38  ;;  %v3492_v13 = vmul.f32 %v3476_v9, %v4957_v43  ;;  %v3477_v45 = vld [vmem:[#allocation12 + $0x3c0] sm:$0xff]  ;;  %v3136_v51 = vld [vmem:[#allocation12 + $0x50] sm:$0xff]  ;;  %v3186_v60 = vld [vmem:[#allocation12 + $0xd8] sm:$0xff] }
 0x2f4   :  { %v3505_v63 = vadd.f32 %v3489_v56, %v3456_v14  ;;  %v3506_v24 = vadd.f32 %v3490_v7, %v3457_v26  ;;  %v3151_v56 = vmul.f32 %v3135_v12, %v4928_v6  ;;  %v3199_v7 = vmul.f32 %v3183_v2, %v4932_v11  ;;  %v3234_v38 = vld [vmem:[#allocation12 + $0x150] sm:$0xff]  ;;  %v3121_v62 = vld [vmem:[#allocation21 + $0x58] sm:$0xff] }
 0x2f5   :  { %v3361_v58 = vadd.f32 %v3345_v32, %v3312_v57  ;;  %v3249_v61 = vmul.f32 %v3233_v22, %v4936_v16  ;;  %v3409_v19 = vadd.f32 %v3393_v27, %v3360_v49  ;;  %v3297_v36 = vmul.f32 %v3281_v55, %v4938_v17  ;;  %v3137_v32 = vld [vmem:[#allocation12 + $0x58] sm:$0xff]  ;;  %v3185_v27 = vld [vmem:[#allocation12 + $0xd0] sm:$0xff] }
 0x2f6   :  { %v4291_v40 = vpack.c.bf16 %v3506_v24, %v3505_v63  ;;  %v3167_v5 = vadd.f32 %v3151_v56, %v3119_v1  ;;  %v3215_v34 = vadd.f32 %v3199_v7, %v3166_v20  ;;  %v3298_v35 = vmul.f32 %v3282_v10, %v4938_v17  ;;  %v3120_v24 = vld [vmem:[#allocation21 + $0x50] sm:$0xff]  ;;  %v3283_v56 = vld [vmem:[#allocation12 + $0x1d0] sm:$0xff] }
 0x2f7   :  { %v3410_v0 = vadd.f32 %v3394_v46, %v3361_v58  ;;  %v3346_v14 = vmul.f32 %v3330_v30, %v4945_v28  ;;  %v3347_v26 = vmul.f32 %v3331_v15, %v4945_v28  ;;  %v3458_v21 = vadd.f32 %v3442_v54, %v3409_v19  ;;  %v3235_v1 = vld [vmem:[#allocation12 + $0x158] sm:$0xff]  ;;  %v3332_v20 = vld [vmem:[#allocation12 + $0x250] sm:$0xff] }
 0x2f8   :  { %4292 = vmatpush3.bf16.msra.mxu0 %v4291_v40  ;;  %v3216_v31 = vadd.f32 %v3200_v8, %v3167_v5  ;;  %v3264_v18 = vadd.f32 %v3248_v25, %v3215_v34  ;;  %v3395_v53 = vmul.f32 %v3379_v23, %v4947_v29  ;;  %v3396_v44 = vmul.f32 %v3380_v33, %v4947_v29  ;;  %v3478_v40 = vld [vmem:[#allocation12 + $0x3c8] sm:$0xff]  ;;  %v3284_v49 = vld [vmem:[#allocation12 + $0x1d8] sm:$0xff]  ;;  %v3430_v34 = vld [vmem:[#allocation12 + $0x350] sm:$0xff] }
 0x2f9   :  { %4293 = vmatprep.subr.bf16.mxu0 %v4660_v50  ;;  %v3459_v12 = vadd.f32 %v3443_v39, %v3410_v0  ;;  %v3444_v63 = vmul.f32 %v3428_v41, %v4954_v42  ;;  %v3445_v46 = vmul.f32 %v3429_v48, %v4954_v42  ;;  %v3507_v47 = vadd.f32 %v3491_v37, %v3458_v21  ;;  %v3333_v58 = vld [vmem:[#allocation12 + $0x258] sm:$0xff]  ;;  %v3138_v21 = vld [vmem:[#allocation12 + $0x60] sm:$0xff] }
 0x2fa   :  { %v3265_v2 = vadd.f32 %v3249_v61, %v3216_v31  ;;  %v3313_v4 = vadd.f32 %v3297_v36, %v3264_v18  ;;  %v3493_v54 = vmul.f32 %v3477_v45, %v4957_v43  ;;  %v3152_v9 = vmul.f32 %v3136_v51, %v4928_v6  ;;  %v3382_v19 = vld [vmem:[#allocation12 + $0x2d8] sm:$0xff]  ;;  %v3479_v31 = vld [vmem:[#allocation12 + $0x3d0] sm:$0xff]  ;;  %v3139_v18 = vld [vmem:[#allocation12 + $0x68] sm:$0xff] }
 0x2fb   :  { %v3508_v3 = vadd.f32 %v3492_v13, %v3459_v12  ;;  %v3153_v39 = vmul.f32 %v3137_v32, %v4928_v6  ;;  %v3201_v57 = vmul.f32 %v3185_v27, %v4932_v11  ;;  %v3202_v10 = vmul.f32 %v3186_v60, %v4932_v11  ;;  %v3381_v13 = vld [vmem:[#allocation12 + $0x2d0] sm:$0xff]  ;;  %v3431_v0 = vld [vmem:[#allocation12 + $0x358] sm:$0xff]  ;;  %v3187_v12 = vld [vmem:[#allocation12 + $0xe0] sm:$0xff] }
 0x2fc   :  { %v3314_v22 = vadd.f32 %v3298_v35, %v3265_v2  ;;  %v3362_v7 = vadd.f32 %v3346_v14, %v3313_v4  ;;  %v3168_v55 = vadd.f32 %v3152_v9, %v3120_v24  ;;  %v3250_v37 = vmul.f32 %v3234_v38, %v4936_v16  ;;  %v3188_v2 = vld [vmem:[#allocation12 + $0xe8] sm:$0xff]  ;;  %v3236_v24 = vld [vmem:[#allocation12 + $0x160] sm:$0xff] }
 0x2fd   :  { %v4294_v8 = vpack.c.bf16 %v3508_v3, %v3507_v47  ;;  %v3169_v30 = vadd.f32 %v3153_v39, %v3121_v62  ;;  %v3251_v15 = vmul.f32 %v3235_v1, %v4936_v16  ;;  %v3494_v61 = vmul.f32 %v3478_v40, %v4957_v43  ;;  %v3122_v4 = vld [vmem:[#allocation21 + $0x60] sm:$0xff]  ;;  %v3123_v62 = vld [vmem:[#allocation21 + $0x68] sm:$0xff]  ;;  %v3285_v39 = vld [vmem:[#allocation12 + $0x1e0] sm:$0xff] }
 0x2fe   :  { %v3363_v25 = vadd.f32 %v3347_v26, %v3314_v22  ;;  %v3411_v5 = vadd.f32 %v3395_v53, %v3362_v7  ;;  %v3217_v23 = vadd.f32 %v3201_v57, %v3168_v55  ;;  %v3299_v33 = vmul.f32 %v3283_v56, %v4938_v17  ;;  %v3480_v3 = vld [vmem:[#allocation12 + $0x3d8] sm:$0xff]  ;;  %v3237_v40 = vld [vmem:[#allocation12 + $0x168] sm:$0xff] }
 0x2ff   :  { %4295 = vmatpush3.bf16.msra.mxu0 %v4294_v8  ;;  %v3218_v35 = vadd.f32 %v3202_v10, %v3169_v30  ;;  %v3300_v41 = vmul.f32 %v3284_v49, %v4938_v17  ;;  %v3348_v48 = vmul.f32 %v3332_v20, %v4945_v28  ;;  %v3349_v45 = vmul.f32 %v3333_v58, %v4945_v28  ;;  %v3286_v55 = vld [vmem:[#allocation12 + $0x1e8] sm:$0xff]  ;;  %v3334_v8 = vld [vmem:[#allocation12 + $0x260] sm:$0xff] }
 0x300   :  { %v3412_v36 = vadd.f32 %v3396_v44, %v3363_v25  ;;  %4296 = vmatprep.subr.bf16.mxu0 %v4660_v50  ;;  %v3460_v14 = vadd.f32 %v3444_v63, %v3411_v5  ;;  %v3266_v26 = vadd.f32 %v3250_v37, %v3217_v23  ;;  %v3397_v51 = vmul.f32 %v3381_v13, %v4947_v29  ;;  %v3335_v13 = vld [vmem:[#allocation12 + $0x268] sm:$0xff] }
 0x301   :  { %v3267_v32 = vadd.f32 %v3251_v15, %v3218_v35  ;;  %v3398_v44 = vmul.f32 %v3382_v19, %v4947_v29  ;;  %v3446_v27 = vmul.f32 %v3430_v34, %v4954_v42  ;;  %v3447_v63 = vmul.f32 %v3431_v0, %v4954_v42  ;;  %v3383_v19 = vld [vmem:[#allocation12 + $0x2e0] sm:$0xff]  ;;  %v3384_v35 = vld [vmem:[#allocation12 + $0x2e8] sm:$0xff] }
 0x302   :  { %v3461_v53 = vadd.f32 %v3445_v46, %v3412_v36  ;;  %v3509_v60 = vadd.f32 %v3493_v54, %v3460_v14  ;;  %v3315_v38 = vadd.f32 %v3299_v33, %v3266_v26  ;;  %v3495_v47 = vmul.f32 %v3479_v31, %v4957_v43  ;;  %v3432_v14 = vld [vmem:[#allocation12 + $0x360] sm:$0xff] }
 0x303   :  { %v3316_v1 = vadd.f32 %v3300_v41, %v3267_v32  ;;  %v3154_v46 = vmul.f32 %v3138_v21, %v4928_v6  ;;  %v3155_v22 = vmul.f32 %v3139_v18, %v4928_v6  ;;  %v3203_v56 = vmul.f32 %v3187_v12, %v4932_v11  ;;  %v3482_v12 = vld [vmem:[#allocation12 + $0x3e8] sm:$0xff] }
 0x304   :  { %v3510_v9 = vadd.f32 %v3494_v61, %v3461_v53  ;;  %v3364_v57 = vadd.f32 %v3348_v48, %v3315_v38  ;;  %v3204_v54 = vmul.f32 %v3188_v2, %v4932_v11  ;;  %v3252_v7 = vmul.f32 %v3236_v24, %v4936_v16 }
 0x305   :  { %v3365_v37 = vadd.f32 %v3349_v45, %v3316_v1  ;;  %v3170_v49 = vadd.f32 %v3154_v46, %v3122_v4  ;;  %v3171_v20 = vadd.f32 %v3155_v22, %v3123_v62  ;;  %v3496_v30 = vmul.f32 %v3480_v3, %v4957_v43 }
 0x306   :  { %v4297_v10 = vpack.c.bf16 %v3510_v9, %v3509_v60  ;;  %v3413_v25 = vadd.f32 %v3397_v51, %v3364_v57  ;;  %v3253_v15 = vmul.f32 %v3237_v40, %v4936_v16  ;;  %v3301_v58 = vmul.f32 %v3285_v39, %v4938_v17  ;;  %v3433_v51 = vld [vmem:[#allocation12 + $0x368] sm:$0xff] }
 0x307   :  { %v3414_v5 = vadd.f32 %v3398_v44, %v3365_v37  ;;  %v3219_v61 = vadd.f32 %v3203_v56, %v3170_v49  ;;  %v3220_v23 = vadd.f32 %v3204_v54, %v3171_v20  ;;  %v3302_v33 = vmul.f32 %v3286_v55, %v4938_v17  ;;  %v3141_v55 = vld [vmem:[#allocation12 + $0x78] sm:$0xff]  ;;  %v3125_v20 = vld [vmem:[#allocation21 + $0x78] sm:$0xff] }
 0x308   :  { %4298 = vmatpush3.bf16.msra.mxu0 %v4297_v10  ;;  %v3462_v34 = vadd.f32 %v3446_v27, %v3413_v25  ;;  %v3350_v36 = vmul.f32 %v3334_v8, %v4945_v28  ;;  %v3351_v31 = vmul.f32 %v3335_v13, %v4945_v28  ;;  %v3399_v45 = vmul.f32 %v3383_v19, %v4947_v29  ;;  %v3481_v27 = vld [vmem:[#allocation12 + $0x3e0] sm:$0xff]  ;;  %v3189_v8 = vld [vmem:[#allocation12 + $0xf0] sm:$0xff] }
 0x309   :  { %4299 = vmatprep.subr.bf16.mxu0 %v4660_v50  ;;  %v3463_v41 = vadd.f32 %v3447_v63, %v3414_v5  ;;  %v3268_v48 = vadd.f32 %v3252_v7, %v3219_v61  ;;  %v3269_v0 = vadd.f32 %v3253_v15, %v3220_v23  ;;  %v3400_v32 = vmul.f32 %v3384_v35, %v4947_v29  ;;  %v3140_v7 = vld [vmem:[#allocation12 + $0x70] sm:$0xff]  ;;  %v3124_v49 = vld [vmem:[#allocation21 + $0x70] sm:$0xff] }
 0x30a   :  { %v3511_v26 = vadd.f32 %v3495_v47, %v3462_v34  ;;  %v3448_v44 = vmul.f32 %v3432_v14, %v4954_v42  ;;  %v3449_v38 = vmul.f32 %v3433_v51, %v4954_v42  ;;  %v3497_v4 = vmul.f32 %v3481_v27, %v4957_v43  ;;  %v3190_v15 = vld [vmem:[#allocation12 + $0xf8] sm:$0xff]  ;;  %v3238_v13 = vld [vmem:[#allocation12 + $0x170] sm:$0xff] }
 0x30b   :  { %v3512_v21 = vadd.f32 %v3496_v30, %v3463_v41  ;;  %v3317_v18 = vadd.f32 %v3301_v58, %v3268_v48  ;;  %v3318_v53 = vadd.f32 %v3302_v33, %v3269_v0  ;;  %v3498_v62 = vmul.f32 %v3482_v12, %v4957_v43  ;;  %v3287_v19 = vld [vmem:[#allocation12 + $0x1f0] sm:$0xff]  ;;  %v3288_v34 = vld [vmem:[#allocation12 + $0x1f8] sm:$0xff] }
 0x30c   :  { %v3156_v10 = vmul.f32 %v3140_v7, %v4928_v6  ;;  %v3157_v37 = vmul.f32 %v3141_v55, %v4928_v6  ;;  %v3206_v58 = vmul.f32 %v3190_v15, %v4932_v11  ;;  %v3254_v61 = vmul.f32 %v3238_v13, %v4936_v16  ;;  %v3336_v0 = vld [vmem:[#allocation12 + $0x270] sm:$0xff] }
 0x30d   :  { %v4300_v2 = vpack.c.bf16 %v3512_v21, %v3511_v26  ;;  %v3366_v24 = vadd.f32 %v3350_v36, %v3317_v18  ;;  %v3367_v60 = vadd.f32 %v3351_v31, %v3318_v53  ;;  %v3303_v35 = vmul.f32 %v3287_v19, %v4938_v17  ;;  %v3337_v31 = vld [vmem:[#allocation12 + $0x278] sm:$0xff]  ;;  %v3385_v21 = vld [vmem:[#allocation12 + $0x2f0] sm:$0xff] }
 0x30e   :  { %v3172_v25 = vadd.f32 %v3156_v10, %v3124_v49  ;;  %v3173_v30 = vadd.f32 %v3157_v37, %v3125_v20  ;;  %v3304_v41 = vmul.f32 %v3288_v34, %v4938_v17  ;;  %v3352_v26 = vmul.f32 %v3336_v0, %v4945_v28  ;;  %v3386_v18 = vld [vmem:[#allocation12 + $0x2f8] sm:$0xff]  ;;  %v3434_v12 = vld [vmem:[#allocation12 + $0x370] sm:$0xff] }
 0x30f   :  { %4301 = vmatpush3.bf16.msra.mxu0 %v4300_v2  ;;  %v3415_v63 = vadd.f32 %v3399_v45, %v3366_v24  ;;  %v3416_v47 = vadd.f32 %v3400_v32, %v3367_v60  ;;  %v3353_v45 = vmul.f32 %v3337_v31, %v4945_v28  ;;  %v3401_v32 = vmul.f32 %v3385_v21, %v4947_v29  ;;  %v3435_v2 = vld [vmem:[#allocation12 + $0x378] sm:$0xff] }
 0x310   :  { %4302 = vmatprep.subr.bf16.mxu0 %v4660_v50  ;;  %v3222_v33 = vadd.f32 %v3206_v58, %v3173_v30  ;;  %v3450_v60 = vmul.f32 %v3434_v12, %v4954_v42  ;;  %v3087_v10 = vld [vmem:[#allocation10 + $0x2] sm:$0x1]  ;;  %v3091_v20 = vld [vmem:[#allocation10 + $0x3] sm:$0x1]  ;;  %v3095_v30 = vld [vmem:[#allocation10 + $0x4] sm:$0x1] }
 0x311   :  { %v3464_v9 = vadd.f32 %v3448_v44, %v3415_v63  ;;  %v3465_v1 = vadd.f32 %v3449_v38, %v3416_v47  ;;  %v3402_v44 = vmul.f32 %v3386_v18, %v4947_v29  ;;  %v3451_v38 = vmul.f32 %v3435_v2, %v4954_v42  ;;  %v3483_v47 = vld [vmem:[#allocation12 + $0x3f0] sm:$0xff]  ;;  %v3099_v58 = vld [vmem:[#allocation10 + $0x5] sm:$0x1] }
 0x312   :  { %v3088_v49 = vmul.f32 %v3087_v10, %v4936_v16 }
 0x313   :  { %v3513_v3 = vadd.f32 %v3497_v4, %v3464_v9  ;;  %v3514_v46 = vadd.f32 %v3498_v62, %v3465_v1  ;;  %v3484_v4 = vld [vmem:[#allocation12 + $0x3f8] sm:$0xff]  ;;  %v3499_v9 = vmul.f32 %v3483_v47, %v4957_v43 }
 0x314   :  { %v3500_v1 = vmul.f32 %v3484_v4, %v4957_v43  ;;  %v3542_v4 = vld [vmem:[#allocation13 + $0x6] sm:$0x1] }
 0x315   :  { %v4303_v22 = vpack.c.bf16 %v3514_v46, %v3513_v3 }
 0x317   :  { %4304 = vmatpush3.bf16.msra.mxu0 %v4303_v22 }
 0x318   :  { %4305 = vmatprep.subr.bf16.mxu0 %v4660_v50  ;;  %v3205_v50 = vmul.f32 %v3189_v8, %v4932_v11 }
 0x31a   :  { %v3221_v5 = vadd.f32 %v3205_v50, %v3172_v25  ;;  %v3092_v25 = vmul.f32 %v3091_v20, %v4938_v17  ;;  %v3096_v50 = vmul.f32 %v3095_v30, %v4945_v28 }
 0x31c   :  { %v3270_v36 = vadd.f32 %v3254_v61, %v3221_v5  ;;  %v3103_v5 = vld [vmem:[#allocation10 + $0x6] sm:$0x1] }
 0x31e   :  { %v3319_v14 = vadd.f32 %v3303_v35, %v3270_v36 }
 0x320   :  { %v3368_v53 = vadd.f32 %v3352_v26, %v3319_v14  ;;  %v3518_v14 = vld [vmem:[#allocation13] sm:$0x1] }
 0x321   :  { %v3519_v26 = vmul.f32 %v3518_v14, %v4928_v6 }
 0x322   :  { %v3417_v24 = vadd.f32 %v3401_v32, %v3368_v53  ;;  %v3526_v53 = vld [vmem:[#allocation13 + $0x2] sm:$0x1] }
 0x324   :  { %v3466_v62 = vadd.f32 %v3450_v60, %v3417_v24  ;;  %v3534_v24 = vld [vmem:[#allocation13 + $0x4] sm:$0x1] }
 0x326   :  { %v3515_v46 = vadd.f32 %v3499_v9, %v3466_v62  ;;  %v3546_v9 = vld [vmem:[#allocation13 + $0x7] sm:$0x1] }
 0x358   :  { %v4057_v40 = vpop.f32.mrb[2].mxu0 }
 0x359   :  { %v4058_v39 = vpop.f32.mrb[3].mxu0 }
 0x35a   :  { %v4059_v57 = vadd.f32 %v4058_v39, %v4057_v40  ;;  %v3079_v39 = vld [vmem:[#allocation10] sm:$0x1] }
 0x35c   :  { %v3768_v56 = vadd.f32 %v4059_v57, %v5889_v59  ;;  %v3239_v59 = vld [vmem:[#allocation12 + $0x178] sm:$0xff]  ;;  %v3080_v57 = vmul.f32 %v3079_v39, %v4928_v6 }
 0x35d   :  { %v3255_v23 = vmul.f32 %v3239_v59, %v4936_v16  ;;  %v3100_v59 = vmul.f32 %v3099_v58, %v4947_v29 }
 0x35e   :  { %v3771_v54 = vmax.f32 %v3768_v56, 0.0  ;;  %v3078_v56 = vld [vmem:[#allocation19] sm:$0x1] }
 0x35f   :  { %v3271_v48 = vadd.f32 %v3255_v23, %v3222_v33  ;;  %v3081_v7 = vadd.f32 %v3080_v57, %v3078_v56  ;;  %v3104_v23 = vmul.f32 %v3103_v5, %v4954_v42  ;;  %v3107_v33 = vld [vmem:[#allocation10 + $0x7] sm:$0x1] }
 0x360   :  { %4127 = vmatmul.mubr.f32.vlgmr.msra.gmra.mrb[2].mxu1 %v3771_v54  ;;  %v3083_v54 = vld [vmem:[#allocation10 + $0x1] sm:$0x1]  ;;  %v3108_v34 = vmul.f32 %v3107_v33, %v4957_v43 }
 0x361   :  { %v3320_v51 = vadd.f32 %v3304_v41, %v3271_v48  ;;  %v3084_v55 = vmul.f32 %v3083_v54, %v4932_v11 }
 0x363   :  { %v3369_v27 = vadd.f32 %v3353_v45, %v3320_v51  ;;  %v3085_v37 = vadd.f32 %v3084_v55, %v3081_v7  ;;  %v3517_v45 = vld [vmem:[#allocation22] sm:$0x1]  ;;  %v3522_v51 = vld [vmem:[#allocation13 + $0x1] sm:$0x1] }
 0x364   :  { %v3520_v21 = vadd.f32 %v3519_v26, %v3517_v45  ;;  %v3523_v18 = vmul.f32 %v3522_v51, %v4932_v11  ;;  %v3543_v11 = vmul.f32 %v3542_v4, %v4954_v42 }
 0x365   :  { %v3418_v63 = vadd.f32 %v3402_v44, %v3369_v27  ;;  %v3089_v8 = vadd.f32 %v3088_v49, %v3085_v37  ;;  %v3527_v44 = vmul.f32 %v3526_v53, %v4936_v16  ;;  %v3530_v27 = vld [vmem:[#allocation13 + $0x3] sm:$0x1]  ;;  %v3547_v16 = vmul.f32 %v3546_v9, %v4957_v43 }
 0x366   :  { %v3524_v32 = vadd.f32 %v3523_v18, %v3520_v21  ;;  %v3531_v2 = vmul.f32 %v3530_v27, %v4938_v17 }
 0x367   :  { %v3467_v3 = vadd.f32 %v3451_v38, %v3418_v63  ;;  %v3093_v15 = vadd.f32 %v3092_v25, %v3089_v8  ;;  %v3535_v38 = vmul.f32 %v3534_v24, %v4945_v28  ;;  %v3538_v63 = vld [vmem:[#allocation13 + $0x5] sm:$0x1] }
 0x368   :  { %v3528_v12 = vadd.f32 %v3527_v44, %v3524_v32  ;;  %v3539_v6 = vmul.f32 %v3538_v63, %v4947_v29 }
 0x369   :  { %v3516_v22 = vadd.f32 %v3500_v1, %v3467_v3  ;;  %v3097_v13 = vadd.f32 %v3096_v50, %v3093_v15 }
 0x36a   :  { %v3532_v60 = vadd.f32 %v3531_v2, %v3528_v12 }
 0x36b   :  { %v4306_v40 = vpack.c.bf16 %v3516_v22, %v3515_v46  ;;  %v3101_v61 = vadd.f32 %v3100_v59, %v3097_v13 }
 0x36c   :  { %v3536_v47 = vadd.f32 %v3535_v38, %v3532_v60 }
 0x36d   :  { %4307 = vmatpush3.bf16.msra.mxu0 %v4306_v40  ;;  %v3105_v19 = vadd.f32 %v3104_v23, %v3101_v61 }
 0x36e   :  { %v3540_v62 = vadd.f32 %v3539_v6, %v3536_v47 }
 0x36f   :  { %v3109_v36 = vadd.f32 %v3108_v34, %v3105_v19 }
 0x370   :  { %v3544_v1 = vadd.f32 %v3543_v11, %v3540_v62 }
 0x371   :  { %v3776_v35 = vrot.slane %v3109_v36, %v5851_v52 }
 0x372   :  { %v3548_v3 = vadd.f32 %v3547_v16, %v3544_v1 }
 0x374   :  { %v3853_v46 = vrot.slane %v3548_v3, %v5851_v52 }
 0x433   :  { %v3844_v41 = vpop.f32.mrb[2].mxu1 }
 0x434   :  { %v3845_v48 = vadd.f32 %v3844_v41, %v3776_v35  ;;  %v4128_v0 = vpop.f32.mrb[3].mxu1 }
 0x436   :  { %v3848_v31 = vmax.f32 %v3845_v48, 0.0 }
 0x438   :  { %4162 = vmatmul.mubr.f32.vlgmr.msra.gmra.mrb[4].mxu0 %v3848_v31 }
 0x50b   :  { %v3921_v17 = vpop.f32.mrb[4].mxu0 }
 0x50c   :  { %v3922_v22 = vadd.f32 %v3921_v17, %v3853_v46  ;;  %v4163_v28 = vpop.f32.mrb[5].mxu0 }
 0x50e   :  { %3925 = vst [vmem:[#allocation24] sm:$0xff] %v3922_v22 }
 0x50f   :  { %4614 = shalt.err (!%p4611_p5)
}
 0x510   :  { %s4615_s16 = scalar_lea.hbm %s6081_s14, 128 }
 0x511   :  { %p4616_p6 = scmp.ne.s32.totalorder %s6081_s14, %s4615_s16  ;;  %p4619_p7 = scmp.lt.u32.totalorder %s4615_s16, %s6081_s14 }
 0x513   :  { %p4621_p8 = pnand %p4619_p7, %p4616_p6 }
 0x515   :  { %4624 = shalt.err (!%p4621_p8)
}
 0x516   :  { %3935 = dma.vmem_to_hbm [thread:$0]  %s3933_s26, 128, %s6081_s14, [#allocation4]  }
 0x517   :  { %4641 = dma.done.wait [#allocation4], 128  }
 0x518   :  { %4642 = vsyncadd [#allocation4], 4294967168 }
 0x519   :  { %3939 = vsyncpa [#allocation3], 1 }
 0x51a   :  { %3940 = vsyncpa [#allocation8], 1 }
 0x51b   :  { %3941 = vsyncpa [#allocation11], 1 }
 0x51c   :  { %3942 = vsyncpa [#allocation14], 1 }
 0x51d   :  { %3943 = vsyncpa [#allocation17], 1 }
 0x51e   :  { %3944 = vsyncpa [#allocation20], 1 }
 0x51f   :  { %3945 = vsyncpa [#allocation23], 1 }
 0x520   :  { %3946 = vsyncpa [#allocation4], 1 }
 0x521   :  { %3947 = vsyncpa [#allocation5], 1 }

</bundles_post_ra>
